<compile_context>
chip_gen: v7x
topology: tpu7x:2x2x1
jax: 0.10.0
libtpu: 0.0.40
codegen_flags: <defaults>
</compile_context>

<pallas_src>
import functools

import jax
import jax.numpy as jnp
from jax.experimental import pallas as pl
from jax.experimental.pallas import tpu as pltpu


def _pick_tile(n, target=256):
    """Largest tile <= target that divides n and is a multiple of 8 (else n itself)."""
    if n <= target:
        return n
    t = (target // 8) * 8
    while t >= 8:
        if n % t == 0:
            return t
        t -= 8
    return n


# ----------------------------------------------------------------------------
# Kernel 1: fused k-NN.
#   d[i, j] = -||x_i - x_j||^2 = 2 x_i.x_j - ||x_i||^2 - ||x_j||^2
# Top-k (largest) is done in-kernel with k unrolled max/mask passes; only the
# (B, N, k) index tensor ever touches HBM.  Distances stay f32 so the selected
# neighbor set matches the PyTorch reference.
# ----------------------------------------------------------------------------
def _knn_kernel(k, xq_ref, xa_ref, idx_ref):
    xq = xq_ref[0]                                                 # (TQ, C) f32
    xa = xa_ref[0]                                                 # (N,  C) f32
    g = jnp.dot(xq, xa.T, preferred_element_type=jnp.float32)      # (TQ, N) on MXU
    sq_q = jnp.sum(xq * xq, axis=1, keepdims=True)                 # (TQ, 1)
    sq_a = jnp.sum(xa * xa, axis=1, keepdims=True)                 # (N, 1)
    d = 2.0 * g - sq_q - sq_a.T                                    # (TQ, N) f32

    tq, n = d.shape
    colf = jax.lax.broadcasted_iota(jnp.int32, (tq, n), 1).astype(jnp.float32)
    kcol = jax.lax.broadcasted_iota(jnp.int32, (tq, k), 1)
    idx_acc = jnp.zeros((tq, k), jnp.int32)
    neg_inf = jnp.float32(-jnp.inf)
    for j in range(k):                                             # k small -> unrolled
        m = jnp.max(d, axis=1, keepdims=True)                      # (TQ, 1)
        sel = jnp.min(jnp.where(d >= m, colf, jnp.float32(n)),
                      axis=1, keepdims=True)                       # lowest-index argmax
        idx_acc = jnp.where(kcol == j, sel.astype(jnp.int32), idx_acc)
        d = jnp.where(colf == sel, neg_inf, d)                     # mask out selected
    idx_ref[0] = idx_acc


def knn_idx(x, k, *, tile_n=256):
    B, N, C = x.shape
    tq = _pick_tile(N, tile_n)
    return pl.pallas_call(
        functools.partial(_knn_kernel, k),
        out_shape=jax.ShapeDtypeStruct((B, N, k), jnp.int32),
        grid=(B, N // tq),
        in_specs=[
            pl.BlockSpec((1, tq, C), lambda b, i: (b, i, 0)),      # query rows
            pl.BlockSpec((1, N, C), lambda b, i: (b, 0, 0)),       # all points of batch b
        ],
        out_specs=pl.BlockSpec((1, tq, k), lambda b, i: (b, i, 0)),
        compiler_params=pltpu.CompilerParams(
            dimension_semantics=("parallel", "parallel")),
    )(x, x)


# ----------------------------------------------------------------------------
# Kernel 2: fused EdgeConv block with W-split.
#   e = concat(neigh - center, center);  e @ W = neigh @ W_a + center @ (W_b - W_a)
#   out = max_k( LeakyReLU( BN( e @ W ) ) )
# neigh arrives pre-flattened as (B, N*k, C) bf16 so the kernel runs a single
# (TN*k, C)@(C, Cout) MXU matmul; the per-center term is a k-times-smaller matmul.
# Emits the result both in f32 (for the next k-NN) and bf16 (for the next gather /
# center operand / conv5), saving a wrapper-side cast round-trip through HBM.
# ----------------------------------------------------------------------------
def _edgeconv_kernel(k, nb_ref, xc_ref, wa_ref, wc_ref, s_ref, b_ref,
                     o_ref, obf_ref):
    yn = jnp.dot(nb_ref[0], wa_ref[...],
                 preferred_element_type=jnp.float32)               # (TN*k, Cout)
    yc = jnp.dot(xc_ref[0], wc_ref[...],
                 preferred_element_type=jnp.float32)               # (TN, Cout)
    tn, cout = yc.shape
    y = yn.reshape(tn, k, cout) + yc[:, None, :]                   # (TN, k, Cout)
    y = y * s_ref[0] + b_ref[0]                                    # folded BatchNorm
    y = jnp.where(y > 0.0, y, 0.2 * y)                             # LeakyReLU(0.2)
    ymax = jnp.max(y, axis=1)                                      # max over k
    o_ref[0] = ymax
    obf_ref[0] = ymax.astype(jnp.bfloat16)


def edge_conv(neigh_flat, x_center_bf, w, scale, shift, *, k, tile_n=256):
    B, NK, C = neigh_flat.shape
    N = NK // k
    Cout = w.shape[1]
    tn = _pick_tile(N, tile_n)
    wa = w[:C].astype(jnp.bfloat16)                                # acts on (neigh-center)
    wc = (w[C:] - w[:C]).astype(jnp.bfloat16)                      # acts on center
    return pl.pallas_call(
        functools.partial(_edgeconv_kernel, k),
        out_shape=(
            jax.ShapeDtypeStruct((B, N, Cout), jnp.float32),
            jax.ShapeDtypeStruct((B, N, Cout), jnp.bfloat16),
        ),
        grid=(B, N // tn),
        in_specs=[
            pl.BlockSpec((1, tn * k, C), lambda b, i: (b, i, 0)),
            pl.BlockSpec((1, tn, C), lambda b, i: (b, i, 0)),
            pl.BlockSpec((C, Cout), lambda b, i: (0, 0)),
            pl.BlockSpec((C, Cout), lambda b, i: (0, 0)),
            pl.BlockSpec((1, Cout), lambda b, i: (0, 0)),
            pl.BlockSpec((1, Cout), lambda b, i: (0, 0)),
        ],
        out_specs=(
            pl.BlockSpec((1, tn, Cout), lambda b, i: (b, i, 0)),
            pl.BlockSpec((1, tn, Cout), lambda b, i: (b, i, 0)),
        ),
        compiler_params=pltpu.CompilerParams(
            dimension_semantics=("parallel", "parallel")),
    )(neigh_flat, x_center_bf, wa, wc, scale, shift)


# ----------------------------------------------------------------------------
# Kernel 3: fused conv5 (1x1 Conv1d + BN1d + LeakyReLU) + global max / avg pool.
# Takes x1..x4 as separate bf16 inputs and slices the (512, emb) weight statically
# in-kernel (no HBM concat of the 512-channel tensor).  Tiled over N with running
# max / sum kept resident in the pooled output blocks.
# ----------------------------------------------------------------------------
def _conv5_kernel(inv_n, splits, *refs):
    n_in = len(splits)
    x_refs = refs[:n_in]
    w_ref, s_ref, b_ref, f_ref, mx_ref, av_ref = refs[n_in:]
    i = pl.program_id(1)

    off = 0
    y = None
    for xr, c in zip(x_refs, splits):                              # static unrolled
        part = jnp.dot(xr[0], w_ref[off:off + c, :],
                       preferred_element_type=jnp.float32)
        y = part if y is None else y + part
        off += c
    y = y * s_ref[0] + b_ref[0]                                    # folded BatchNorm
    y = jnp.where(y > 0.0, y, 0.2 * y)                             # LeakyReLU(0.2)
    f_ref[0] = y                                                   # per-point features
    tmax = jnp.max(y, axis=0, keepdims=True)                       # (1, Cout)
    tsum = jnp.sum(y, axis=0, keepdims=True)

    @pl.when(i == 0)
    def _():
        mx_ref[0] = tmax
        av_ref[0] = tsum

    @pl.when(i > 0)
    def _():
        mx_ref[0] = jnp.maximum(mx_ref[0], tmax)
        av_ref[0] = av_ref[0] + tsum

    @pl.when(i == pl.num_programs(1) - 1)
    def _():
        av_ref[0] = av_ref[0] * inv_n


def conv5(xs, w, scale, shift, *, tile_n=512):
    B, N, _ = xs[0].shape
    cins = tuple(int(xx.shape[-1]) for xx in xs)
    Cin = sum(cins)
    Cout = w.shape[1]
    tn = _pick_tile(N, tile_n)
    wb = w.astype(jnp.bfloat16)
    x_specs = [pl.BlockSpec((1, tn, c), lambda b, i: (b, i, 0)) for c in cins]
    return pl.pallas_call(
        functools.partial(_conv5_kernel, 1.0 / float(N), cins),
        out_shape=(
            jax.ShapeDtypeStruct((B, N, Cout), jnp.float32),
            jax.ShapeDtypeStruct((B, 1, Cout), jnp.float32),
            jax.ShapeDtypeStruct((B, 1, Cout), jnp.float32),
        ),
        grid=(B, N // tn),
        in_specs=x_specs + [
            pl.BlockSpec((Cin, Cout), lambda b, i: (0, 0)),
            pl.BlockSpec((1, Cout), lambda b, i: (0, 0)),
            pl.BlockSpec((1, Cout), lambda b, i: (0, 0)),
        ],
        out_specs=(
            pl.BlockSpec((1, tn, Cout), lambda b, i: (b, i, 0)),
            pl.BlockSpec((1, 1, Cout), lambda b, i: (b, 0, 0)),
            pl.BlockSpec((1, 1, Cout), lambda b, i: (b, 0, 0)),
        ),
        compiler_params=pltpu.CompilerParams(
            dimension_semantics=("parallel", "arbitrary")),
    )(*xs, wb, scale, shift)


# ----------------------------------------------------------------------------
# Neighbor gather (XLA glue): only the half-size neigh tensor is materialized,
# already in bf16, pre-flattened to (B, N*k, C) for lane/sublane-dense DMA.
# TODO(synk): a fully in-kernel gather would need data-dependent per-row DMA or a
# Mosaic dynamic-gather; the row gather is left to XLA while the concat/subtract is
# eliminated algebraically and all other tensor work stays in the kernels.
# ----------------------------------------------------------------------------
def gather_neighbors(x_bf, idx):
    B, N, k = idx.shape
    idx_flat = idx.reshape(B, N * k)
    return jax.vmap(lambda xb, ib: jnp.take(xb, ib, axis=0))(x_bf, idx_flat)


# ----------------------------------------------------------------------------
# Deterministic parameter init (shapes implied by DGCNN.__init__, BN folded).
# ----------------------------------------------------------------------------
def _make_layer(key, cin, cout):
    kw, kg, kb, km, kv = jax.random.split(key, 5)
    w = (jax.random.normal(kw, (cin, cout), jnp.float32)
         * jnp.sqrt(2.0 / cin)).astype(jnp.float32)
    gamma = jax.random.uniform(kg, (cout,), minval=0.8, maxval=1.2)
    beta = 0.1 * jax.random.normal(kb, (cout,))
    mean = 0.1 * jax.random.normal(km, (cout,))
    var = 1.0 + 0.1 * jax.random.uniform(kv, (cout,))
    scale = gamma / jnp.sqrt(var + 1e-5)
    shift = beta - mean * scale
    return (w,
            scale.reshape(1, cout).astype(jnp.float32),
            shift.reshape(1, cout).astype(jnp.float32))


def init_params(key, emb_dims):
    keys = jax.random.split(key, 5)
    return {
        "conv1": _make_layer(keys[0], 6, 64),
        "conv2": _make_layer(keys[1], 128, 64),
        "conv3": _make_layer(keys[2], 128, 128),
        "conv4": _make_layer(keys[3], 256, 256),
        "conv5": _make_layer(keys[4], 512, emb_dims),
    }


# ----------------------------------------------------------------------------
# Forward pass (mirrors DGCNN.forward).
# ----------------------------------------------------------------------------
def dgcnn_forward(pc, params, k):
    # pc: (B, 3, N), same axis convention as the PyTorch module input.
    x = jnp.transpose(pc, (0, 2, 1)).astype(jnp.float32)           # (B, N, 3)
    x_bf = x.astype(jnp.bfloat16)

    def edge_layer(feat_f32, feat_bf, layer_params):
        idx = knn_idx(feat_f32, k)                                 # (B, N, k) int32
        neigh = gather_neighbors(feat_bf, idx)                     # (B, N*k, C) bf16
        return edge_conv(neigh, feat_bf, *layer_params, k=k)       # (f32, bf16)

    x1, x1_bf = edge_layer(x, x_bf, params["conv1"])               # (B, N, 64)
    x2, x2_bf = edge_layer(x1, x1_bf, params["conv2"])             # (B, N, 64)
    x3, x3_bf = edge_layer(x2, x2_bf, params["conv3"])             # (B, N, 128)
    x4, x4_bf = edge_layer(x3, x3_bf, params["conv4"])             # (B, N, 256)

    feats, xmax, xavg = conv5((x1_bf, x2_bf, x3_bf, x4_bf),
                              *params["conv5"])                    # (B,N,emb), (B,1,emb) x2

    out = jnp.concatenate([xmax[:, 0, :], xavg[:, 0, :]], axis=-1)  # (B, 2*emb)
    # TODO(synk): sample_and_group() is not defined in the reference module, so the
    # `pcl` output cannot be reproduced; per-point features are returned instead.
    return out, feats


if __name__ == "__main__":
    B, C, N = 2, 3, 16
    K = 4
    EMB = 32

    key = jax.random.PRNGKey(0)
    kp, kx = jax.random.split(key)
    params = init_params(kp, EMB)
    pc = jax.random.normal(kx, (B, C, N), jnp.float32)

    fwd = jax.jit(dgcnn_forward, static_argnums=(2,))
    out, feats = fwd(pc, params, K)
    jax.block_until_ready((out, feats))

    assert out.shape == (B, 2 * EMB)
    assert feats.shape == (B, N, EMB)
    assert bool(jnp.all(jnp.isfinite(out)))
    assert bool(jnp.all(jnp.isfinite(feats)))
    print("KERNEL_OK")
</pallas_src>

<mosaic_0001>
module attributes {stable_mosaic.version = 11 : i64} {
  func.func @_knn_kernel(%arg0: i32, %arg1: i32, %arg2: memref<1x16x3xf32, #tpu.memory_space<vmem>>, %arg3: memref<1x16x3xf32, #tpu.memory_space<vmem>>, %arg4: memref<1x16x4xi32, #tpu.memory_space<vmem>>) attributes {dimension_semantics = [#tpu.dimension_semantics<parallel>, #tpu.dimension_semantics<parallel>], iteration_bounds = array<i64: 2, 1>, scalar_prefetch = 0 : i64, scratch_operands = 0 : i64, tpu.core_type = #tpu.core_type<tc>, window_params = [{transform_indices = @transform_0, window_bounds = array<i64: 1, 16, 3>}, {transform_indices = @transform_1, window_bounds = array<i64: 1, 16, 3>}, {transform_indices = @transform_2, window_bounds = array<i64: 1, 16, 4>}]} {
    %c0 = arith.constant 0 : index
    %c0_0 = arith.constant 0 : index
    %c0_1 = arith.constant 0 : index
    %0 = vector.load %arg2[%c0, %c0_0, %c0_1] : memref<1x16x3xf32, #tpu.memory_space<vmem>>, vector<1x16x3xf32>
    %1 = vector.shape_cast %0 : vector<1x16x3xf32> to vector<16x3xf32>
    %c0_2 = arith.constant 0 : index
    %c0_3 = arith.constant 0 : index
    %c0_4 = arith.constant 0 : index
    %2 = vector.load %arg3[%c0_2, %c0_3, %c0_4] : memref<1x16x3xf32, #tpu.memory_space<vmem>>, vector<1x16x3xf32>
    %3 = vector.shape_cast %2 : vector<1x16x3xf32> to vector<16x3xf32>
    %4 = tpu.transpose %3, [1, 0] : vector<16x3xf32> -> vector<3x16xf32>
    %cst = arith.constant dense<0.000000e+00> : vector<16x16xf32>
    %5 = tpu.matmul %1, %4, %cst {dimension_numbers = #tpu.dot_dimension_numbers<[1], [0], [0], [1], [0, 0, 1, 1], [], []>} : vector<16x3xf32>, vector<3x16xf32>, vector<16x16xf32> -> vector<16x16xf32>
    %6 = arith.mulf %1, %1 : vector<16x3xf32>
    %cst_5 = arith.constant dense<0.000000e+00> : vector<16xf32>
    %7 = vector.multi_reduction <add>, %6, %cst_5 [1] : vector<16x3xf32> to vector<16xf32>
    %8 = vector.shape_cast %7 : vector<16xf32> to vector<16x1xf32>
    %9 = arith.mulf %3, %3 : vector<16x3xf32>
    %cst_6 = arith.constant dense<0.000000e+00> : vector<16xf32>
    %10 = vector.multi_reduction <add>, %9, %cst_6 [1] : vector<16x3xf32> to vector<16xf32>
    %11 = vector.shape_cast %10 : vector<16xf32> to vector<16x1xf32>
    %cst_7 = arith.constant 2.000000e+00 : f32
    %12 = vector.broadcast %cst_7 : f32 to vector<16x16xf32>
    %13 = arith.mulf %12, %5 : vector<16x16xf32>
    %14 = vector.broadcast %8 : vector<16x1xf32> to vector<16x16xf32>
    %15 = arith.subf %13, %14 : vector<16x16xf32>
    %16 = tpu.transpose %11, [1, 0] : vector<16x1xf32> -> vector<1x16xf32>
    %17 = vector.broadcast %16 : vector<1x16xf32> to vector<16x16xf32>
    %18 = arith.subf %15, %17 : vector<16x16xf32>
    %19 = tpu.iota {dimensions = array<i32: 1>} : vector<16x16xi32>
    %20 = arith.sitofp %19 : vector<16x16xi32> to vector<16x16xf32>
    %21 = tpu.iota {dimensions = array<i32: 1>} : vector<16x4xi32>
    %c0_i32 = arith.constant 0 : i32
    %22 = vector.broadcast %c0_i32 : i32 to vector<16x4xi32>
    %cst_8 = arith.constant dense<0xFF800000> : vector<16xf32>
    %23 = vector.multi_reduction <maximumf>, %18, %cst_8 [1] : vector<16x16xf32> to vector<16xf32>
    %24 = vector.shape_cast %23 : vector<16xf32> to vector<16x1xf32>
    %25 = vector.broadcast %24 : vector<16x1xf32> to vector<16x16xf32>
    %26 = arith.cmpf oge, %18, %25 : vector<16x16xf32>
    %cst_9 = arith.constant 1.600000e+01 : f32
    %27 = vector.broadcast %cst_9 : f32 to vector<16x16xf32>
    %28 = arith.select %26, %20, %27 : vector<16x16xi1>, vector<16x16xf32>
    %cst_10 = arith.constant dense<0x7F800000> : vector<16xf32>
    %29 = vector.multi_reduction <minimumf>, %28, %cst_10 [1] : vector<16x16xf32> to vector<16xf32>
    %30 = vector.shape_cast %29 : vector<16xf32> to vector<16x1xf32>
    %c0_i32_11 = arith.constant 0 : i32
    %31 = vector.broadcast %c0_i32_11 : i32 to vector<16x4xi32>
    %32 = arith.cmpi eq, %21, %31 : vector<16x4xi32>
    %33 = arith.fptosi %30 : vector<16x1xf32> to vector<16x1xi32>
    %34 = vector.shape_cast %33 : vector<16x1xi32> to vector<16x1xi32>
    %35 = vector.broadcast %34 : vector<16x1xi32> to vector<16x4xi32>
    %36 = arith.select %32, %35, %22 : vector<16x4xi1>, vector<16x4xi32>
    %37 = vector.broadcast %30 : vector<16x1xf32> to vector<16x16xf32>
    %38 = arith.cmpf oeq, %20, %37 : vector<16x16xf32>
    %cst_12 = arith.constant 0xFF800000 : f32
    %39 = vector.broadcast %cst_12 : f32 to vector<16x16xf32>
    %40 = arith.select %38, %39, %18 : vector<16x16xi1>, vector<16x16xf32>
    %cst_13 = arith.constant dense<0xFF800000> : vector<16xf32>
    %41 = vector.multi_reduction <maximumf>, %40, %cst_13 [1] : vector<16x16xf32> to vector<16xf32>
    %42 = vector.shape_cast %41 : vector<16xf32> to vector<16x1xf32>
    %43 = vector.broadcast %42 : vector<16x1xf32> to vector<16x16xf32>
    %44 = arith.cmpf oge, %40, %43 : vector<16x16xf32>
    %cst_14 = arith.constant 1.600000e+01 : f32
    %45 = vector.broadcast %cst_14 : f32 to vector<16x16xf32>
    %46 = arith.select %44, %20, %45 : vector<16x16xi1>, vector<16x16xf32>
    %cst_15 = arith.constant dense<0x7F800000> : vector<16xf32>
    %47 = vector.multi_reduction <minimumf>, %46, %cst_15 [1] : vector<16x16xf32> to vector<16xf32>
    %48 = vector.shape_cast %47 : vector<16xf32> to vector<16x1xf32>
    %c1_i32 = arith.constant 1 : i32
    %49 = vector.broadcast %c1_i32 : i32 to vector<16x4xi32>
    %50 = arith.cmpi eq, %21, %49 : vector<16x4xi32>
    %51 = arith.fptosi %48 : vector<16x1xf32> to vector<16x1xi32>
    %52 = vector.shape_cast %51 : vector<16x1xi32> to vector<16x1xi32>
    %53 = vector.broadcast %52 : vector<16x1xi32> to vector<16x4xi32>
    %54 = arith.select %50, %53, %36 : vector<16x4xi1>, vector<16x4xi32>
    %55 = vector.broadcast %48 : vector<16x1xf32> to vector<16x16xf32>
    %56 = arith.cmpf oeq, %20, %55 : vector<16x16xf32>
    %cst_16 = arith.constant 0xFF800000 : f32
    %57 = vector.broadcast %cst_16 : f32 to vector<16x16xf32>
    %58 = arith.select %56, %57, %40 : vector<16x16xi1>, vector<16x16xf32>
    %cst_17 = arith.constant dense<0xFF800000> : vector<16xf32>
    %59 = vector.multi_reduction <maximumf>, %58, %cst_17 [1] : vector<16x16xf32> to vector<16xf32>
    %60 = vector.shape_cast %59 : vector<16xf32> to vector<16x1xf32>
    %61 = vector.broadcast %60 : vector<16x1xf32> to vector<16x16xf32>
    %62 = arith.cmpf oge, %58, %61 : vector<16x16xf32>
    %cst_18 = arith.constant 1.600000e+01 : f32
    %63 = vector.broadcast %cst_18 : f32 to vector<16x16xf32>
    %64 = arith.select %62, %20, %63 : vector<16x16xi1>, vector<16x16xf32>
    %cst_19 = arith.constant dense<0x7F800000> : vector<16xf32>
    %65 = vector.multi_reduction <minimumf>, %64, %cst_19 [1] : vector<16x16xf32> to vector<16xf32>
    %66 = vector.shape_cast %65 : vector<16xf32> to vector<16x1xf32>
    %c2_i32 = arith.constant 2 : i32
    %67 = vector.broadcast %c2_i32 : i32 to vector<16x4xi32>
    %68 = arith.cmpi eq, %21, %67 : vector<16x4xi32>
    %69 = arith.fptosi %66 : vector<16x1xf32> to vector<16x1xi32>
    %70 = vector.shape_cast %69 : vector<16x1xi32> to vector<16x1xi32>
    %71 = vector.broadcast %70 : vector<16x1xi32> to vector<16x4xi32>
    %72 = arith.select %68, %71, %54 : vector<16x4xi1>, vector<16x4xi32>
    %73 = vector.broadcast %66 : vector<16x1xf32> to vector<16x16xf32>
    %74 = arith.cmpf oeq, %20, %73 : vector<16x16xf32>
    %cst_20 = arith.constant 0xFF800000 : f32
    %75 = vector.broadcast %cst_20 : f32 to vector<16x16xf32>
    %76 = arith.select %74, %75, %58 : vector<16x16xi1>, vector<16x16xf32>
    %cst_21 = arith.constant dense<0xFF800000> : vector<16xf32>
    %77 = vector.multi_reduction <maximumf>, %76, %cst_21 [1] : vector<16x16xf32> to vector<16xf32>
    %78 = vector.shape_cast %77 : vector<16xf32> to vector<16x1xf32>
    %79 = vector.broadcast %78 : vector<16x1xf32> to vector<16x16xf32>
    %80 = arith.cmpf oge, %76, %79 : vector<16x16xf32>
    %cst_22 = arith.constant 1.600000e+01 : f32
    %81 = vector.broadcast %cst_22 : f32 to vector<16x16xf32>
    %82 = arith.select %80, %20, %81 : vector<16x16xi1>, vector<16x16xf32>
    %cst_23 = arith.constant dense<0x7F800000> : vector<16xf32>
    %83 = vector.multi_reduction <minimumf>, %82, %cst_23 [1] : vector<16x16xf32> to vector<16xf32>
    %84 = vector.shape_cast %83 : vector<16xf32> to vector<16x1xf32>
    %c3_i32 = arith.constant 3 : i32
    %85 = vector.broadcast %c3_i32 : i32 to vector<16x4xi32>
    %86 = arith.cmpi eq, %21, %85 : vector<16x4xi32>
    %87 = arith.fptosi %84 : vector<16x1xf32> to vector<16x1xi32>
    %88 = vector.shape_cast %87 : vector<16x1xi32> to vector<16x1xi32>
    %89 = vector.broadcast %88 : vector<16x1xi32> to vector<16x4xi32>
    %90 = arith.select %86, %89, %72 : vector<16x4xi1>, vector<16x4xi32>
    %c0_24 = arith.constant 0 : index
    %c0_25 = arith.constant 0 : index
    %c0_26 = arith.constant 0 : index
    %91 = vector.load %arg4[%c0_24, %c0_25, %c0_26] : memref<1x16x4xi32, #tpu.memory_space<vmem>>, vector<1x16x4xi32>
    %92 = vector.shape_cast %91 : vector<1x16x4xi32> to vector<16x4xi32>
    %93 = vector.shape_cast %90 : vector<16x4xi32> to vector<1x16x4xi32>
    tpu.vector_store %arg4[%c0_24, %c0_25, %c0_26], %93 {strides = array<i32>} : memref<1x16x4xi32, #tpu.memory_space<vmem>>, vector<1x16x4xi32>,
    return
  }
  func.func @transform_0(%arg0: i32, %arg1: i32) -> (i32, i32, i32) {
    %c0_i32 = arith.constant 0 : i32
    %c0_i32_0 = arith.constant 0 : i32
    return %arg0, %arg1, %c0_i32 : i32, i32, i32
  }
  func.func @transform_1(%arg0: i32, %arg1: i32) -> (i32, i32, i32) {
    %c0_i32 = arith.constant 0 : i32
    %c0_i32_0 = arith.constant 0 : i32
    %c0_i32_1 = arith.constant 0 : i32
    return %arg0, %c0_i32, %c0_i32_0 : i32, i32, i32
  }
  func.func @transform_2(%arg0: i32, %arg1: i32) -> (i32, i32, i32) {
    %c0_i32 = arith.constant 0 : i32
    %c0_i32_0 = arith.constant 0 : i32
    return %arg0, %arg1, %c0_i32 : i32, i32, i32
  }
}

module attributes {stable_mosaic.version = 11 : i64} {
  func.func @_knn_kernel(%arg0: i32, %arg1: i32, %arg2: memref<1x16x64xf32, #tpu.memory_space<vmem>>, %arg3: memref<1x16x64xf32, #tpu.memory_space<vmem>>, %arg4: memref<1x16x4xi32, #tpu.memory_space<vmem>>) attributes {dimension_semantics = [#tpu.dimension_semantics<parallel>, #tpu.dimension_semantics<parallel>], iteration_bounds = array<i64: 2, 1>, scalar_prefetch = 0 : i64, scratch_operands = 0 : i64, tpu.core_type = #tpu.core_type<tc>, window_params = [{transform_indices = @transform_0, window_bounds = array<i64: 1, 16, 64>}, {transform_indices = @transform_1, window_bounds = array<i64: 1, 16, 64>}, {transform_indices = @transform_2, window_bounds = array<i64: 1, 16, 4>}]} {
    %c0 = arith.constant 0 : index
    %c0_0 = arith.constant 0 : index
    %c0_1 = arith.constant 0 : index
    %0 = vector.load %arg2[%c0, %c0_0, %c0_1] : memref<1x16x64xf32, #tpu.memory_space<vmem>>, vector<1x16x64xf32>
    %1 = vector.shape_cast %0 : vector<1x16x64xf32> to vector<16x64xf32>
    %c0_2 = arith.constant 0 : index
    %c0_3 = arith.constant 0 : index
    %c0_4 = arith.constant 0 : index
    %2 = vector.load %arg3[%c0_2, %c0_3, %c0_4] : memref<1x16x64xf32, #tpu.memory_space<vmem>>, vector<1x16x64xf32>
    %3 = vector.shape_cast %2 : vector<1x16x64xf32> to vector<16x64xf32>
    %4 = tpu.transpose %3, [1, 0] : vector<16x64xf32> -> vector<64x16xf32>
    %cst = arith.constant dense<0.000000e+00> : vector<16x16xf32>
    %5 = tpu.matmul %1, %4, %cst {dimension_numbers = #tpu.dot_dimension_numbers<[1], [0], [0], [1], [0, 0, 1, 1], [], []>} : vector<16x64xf32>, vector<64x16xf32>, vector<16x16xf32> -> vector<16x16xf32>
    %6 = arith.mulf %1, %1 : vector<16x64xf32>
    %cst_5 = arith.constant dense<0.000000e+00> : vector<16xf32>
    %7 = vector.multi_reduction <add>, %6, %cst_5 [1] : vector<16x64xf32> to vector<16xf32>
    %8 = vector.shape_cast %7 : vector<16xf32> to vector<16x1xf32>
    %9 = arith.mulf %3, %3 : vector<16x64xf32>
    %cst_6 = arith.constant dense<0.000000e+00> : vector<16xf32>
    %10 = vector.multi_reduction <add>, %9, %cst_6 [1] : vector<16x64xf32> to vector<16xf32>
    %11 = vector.shape_cast %10 : vector<16xf32> to vector<16x1xf32>
    %cst_7 = arith.constant 2.000000e+00 : f32
    %12 = vector.broadcast %cst_7 : f32 to vector<16x16xf32>
    %13 = arith.mulf %12, %5 : vector<16x16xf32>
    %14 = vector.broadcast %8 : vector<16x1xf32> to vector<16x16xf32>
    %15 = arith.subf %13, %14 : vector<16x16xf32>
    %16 = tpu.transpose %11, [1, 0] : vector<16x1xf32> -> vector<1x16xf32>
    %17 = vector.broadcast %16 : vector<1x16xf32> to vector<16x16xf32>
    %18 = arith.subf %15, %17 : vector<16x16xf32>
    %19 = tpu.iota {dimensions = array<i32: 1>} : vector<16x16xi32>
    %20 = arith.sitofp %19 : vector<16x16xi32> to vector<16x16xf32>
    %21 = tpu.iota {dimensions = array<i32: 1>} : vector<16x4xi32>
    %c0_i32 = arith.constant 0 : i32
    %22 = vector.broadcast %c0_i32 : i32 to vector<16x4xi32>
    %cst_8 = arith.constant dense<0xFF800000> : vector<16xf32>
    %23 = vector.multi_reduction <maximumf>, %18, %cst_8 [1] : vector<16x16xf32> to vector<16xf32>
    %24 = vector.shape_cast %23 : vector<16xf32> to vector<16x1xf32>
    %25 = vector.broadcast %24 : vector<16x1xf32> to vector<16x16xf32>
    %26 = arith.cmpf oge, %18, %25 : vector<16x16xf32>
    %cst_9 = arith.constant 1.600000e+01 : f32
    %27 = vector.broadcast %cst_9 : f32 to vector<16x16xf32>
    %28 = arith.select %26, %20, %27 : vector<16x16xi1>, vector<16x16xf32>
    %cst_10 = arith.constant dense<0x7F800000> : vector<16xf32>
    %29 = vector.multi_reduction <minimumf>, %28, %cst_10 [1] : vector<16x16xf32> to vector<16xf32>
    %30 = vector.shape_cast %29 : vector<16xf32> to vector<16x1xf32>
    %c0_i32_11 = arith.constant 0 : i32
    %31 = vector.broadcast %c0_i32_11 : i32 to vector<16x4xi32>
    %32 = arith.cmpi eq, %21, %31 : vector<16x4xi32>
    %33 = arith.fptosi %30 : vector<16x1xf32> to vector<16x1xi32>
    %34 = vector.shape_cast %33 : vector<16x1xi32> to vector<16x1xi32>
    %35 = vector.broadcast %34 : vector<16x1xi32> to vector<16x4xi32>
    %36 = arith.select %32, %35, %22 : vector<16x4xi1>, vector<16x4xi32>
    %37 = vector.broadcast %30 : vector<16x1xf32> to vector<16x16xf32>
    %38 = arith.cmpf oeq, %20, %37 : vector<16x16xf32>
    %cst_12 = arith.constant 0xFF800000 : f32
    %39 = vector.broadcast %cst_12 : f32 to vector<16x16xf32>
    %40 = arith.select %38, %39, %18 : vector<16x16xi1>, vector<16x16xf32>
    %cst_13 = arith.constant dense<0xFF800000> : vector<16xf32>
    %41 = vector.multi_reduction <maximumf>, %40, %cst_13 [1] : vector<16x16xf32> to vector<16xf32>
    %42 = vector.shape_cast %41 : vector<16xf32> to vector<16x1xf32>
    %43 = vector.broadcast %42 : vector<16x1xf32> to vector<16x16xf32>
    %44 = arith.cmpf oge, %40, %43 : vector<16x16xf32>
    %cst_14 = arith.constant 1.600000e+01 : f32
    %45 = vector.broadcast %cst_14 : f32 to vector<16x16xf32>
    %46 = arith.select %44, %20, %45 : vector<16x16xi1>, vector<16x16xf32>
    %cst_15 = arith.constant dense<0x7F800000> : vector<16xf32>
    %47 = vector.multi_reduction <minimumf>, %46, %cst_15 [1] : vector<16x16xf32> to vector<16xf32>
    %48 = vector.shape_cast %47 : vector<16xf32> to vector<16x1xf32>
    %c1_i32 = arith.constant 1 : i32
    %49 = vector.broadcast %c1_i32 : i32 to vector<16x4xi32>
    %50 = arith.cmpi eq, %21, %49 : vector<16x4xi32>
    %51 = arith.fptosi %48 : vector<16x1xf32> to vector<16x1xi32>
    %52 = vector.shape_cast %51 : vector<16x1xi32> to vector<16x1xi32>
    %53 = vector.broadcast %52 : vector<16x1xi32> to vector<16x4xi32>
    %54 = arith.select %50, %53, %36 : vector<16x4xi1>, vector<16x4xi32>
    %55 = vector.broadcast %48 : vector<16x1xf32> to vector<16x16xf32>
    %56 = arith.cmpf oeq, %20, %55 : vector<16x16xf32>
    %cst_16 = arith.constant 0xFF800000 : f32
    %57 = vector.broadcast %cst_16 : f32 to vector<16x16xf32>
    %58 = arith.select %56, %57, %40 : vector<16x16xi1>, vector<16x16xf32>
    %cst_17 = arith.constant dense<0xFF800000> : vector<16xf32>
    %59 = vector.multi_reduction <maximumf>, %58, %cst_17 [1] : vector<16x16xf32> to vector<16xf32>
    %60 = vector.shape_cast %59 : vector<16xf32> to vector<16x1xf32>
    %61 = vector.broadcast %60 : vector<16x1xf32> to vector<16x16xf32>
    %62 = arith.cmpf oge, %58, %61 : vector<16x16xf32>
    %cst_18 = arith.constant 1.600000e+01 : f32
    %63 = vector.broadcast %cst_18 : f32 to vector<16x16xf32>
    %64 = arith.select %62, %20, %63 : vector<16x16xi1>, vector<16x16xf32>
    %cst_19 = arith.constant dense<0x7F800000> : vector<16xf32>
    %65 = vector.multi_reduction <minimumf>, %64, %cst_19 [1] : vector<16x16xf32> to vector<16xf32>
    %66 = vector.shape_cast %65 : vector<16xf32> to vector<16x1xf32>
    %c2_i32 = arith.constant 2 : i32
    %67 = vector.broadcast %c2_i32 : i32 to vector<16x4xi32>
    %68 = arith.cmpi eq, %21, %67 : vector<16x4xi32>
    %69 = arith.fptosi %66 : vector<16x1xf32> to vector<16x1xi32>
    %70 = vector.shape_cast %69 : vector<16x1xi32> to vector<16x1xi32>
    %71 = vector.broadcast %70 : vector<16x1xi32> to vector<16x4xi32>
    %72 = arith.select %68, %71, %54 : vector<16x4xi1>, vector<16x4xi32>
    %73 = vector.broadcast %66 : vector<16x1xf32> to vector<16x16xf32>
    %74 = arith.cmpf oeq, %20, %73 : vector<16x16xf32>
    %cst_20 = arith.constant 0xFF800000 : f32
    %75 = vector.broadcast %cst_20 : f32 to vector<16x16xf32>
    %76 = arith.select %74, %75, %58 : vector<16x16xi1>, vector<16x16xf32>
    %cst_21 = arith.constant dense<0xFF800000> : vector<16xf32>
    %77 = vector.multi_reduction <maximumf>, %76, %cst_21 [1] : vector<16x16xf32> to vector<16xf32>
    %78 = vector.shape_cast %77 : vector<16xf32> to vector<16x1xf32>
    %79 = vector.broadcast %78 : vector<16x1xf32> to vector<16x16xf32>
    %80 = arith.cmpf oge, %76, %79 : vector<16x16xf32>
    %cst_22 = arith.constant 1.600000e+01 : f32
    %81 = vector.broadcast %cst_22 : f32 to vector<16x16xf32>
    %82 = arith.select %80, %20, %81 : vector<16x16xi1>, vector<16x16xf32>
    %cst_23 = arith.constant dense<0x7F800000> : vector<16xf32>
    %83 = vector.multi_reduction <minimumf>, %82, %cst_23 [1] : vector<16x16xf32> to vector<16xf32>
    %84 = vector.shape_cast %83 : vector<16xf32> to vector<16x1xf32>
    %c3_i32 = arith.constant 3 : i32
    %85 = vector.broadcast %c3_i32 : i32 to vector<16x4xi32>
    %86 = arith.cmpi eq, %21, %85 : vector<16x4xi32>
    %87 = arith.fptosi %84 : vector<16x1xf32> to vector<16x1xi32>
    %88 = vector.shape_cast %87 : vector<16x1xi32> to vector<16x1xi32>
    %89 = vector.broadcast %88 : vector<16x1xi32> to vector<16x4xi32>
    %90 = arith.select %86, %89, %72 : vector<16x4xi1>, vector<16x4xi32>
    %c0_24 = arith.constant 0 : index
    %c0_25 = arith.constant 0 : index
    %c0_26 = arith.constant 0 : index
    %91 = vector.load %arg4[%c0_24, %c0_25, %c0_26] : memref<1x16x4xi32, #tpu.memory_space<vmem>>, vector<1x16x4xi32>
    %92 = vector.shape_cast %91 : vector<1x16x4xi32> to vector<16x4xi32>
    %93 = vector.shape_cast %90 : vector<16x4xi32> to vector<1x16x4xi32>
    tpu.vector_store %arg4[%c0_24, %c0_25, %c0_26], %93 {strides = array<i32>} : memref<1x16x4xi32, #tpu.memory_space<vmem>>, vector<1x16x4xi32>,
    return
  }
  func.func @transform_0(%arg0: i32, %arg1: i32) -> (i32, i32, i32) {
    %c0_i32 = arith.constant 0 : i32
    %c0_i32_0 = arith.constant 0 : i32
    return %arg0, %arg1, %c0_i32 : i32, i32, i32
  }
  func.func @transform_1(%arg0: i32, %arg1: i32) -> (i32, i32, i32) {
    %c0_i32 = arith.constant 0 : i32
    %c0_i32_0 = arith.constant 0 : i32
    %c0_i32_1 = arith.constant 0 : i32
    return %arg0, %c0_i32, %c0_i32_0 : i32, i32, i32
  }
  func.func @transform_2(%arg0: i32, %arg1: i32) -> (i32, i32, i32) {
    %c0_i32 = arith.constant 0 : i32
    %c0_i32_0 = arith.constant 0 : i32
    return %arg0, %arg1, %c0_i32 : i32, i32, i32
  }
}

module attributes {stable_mosaic.version = 11 : i64} {
  func.func @_edgeconv_kernel(%arg0: i32, %arg1: i32, %arg2: memref<1x64x3xbf16, #tpu.memory_space<vmem>>, %arg3: memref<1x16x3xbf16, #tpu.memory_space<vmem>>, %arg4: memref<3x64xbf16, #tpu.memory_space<vmem>>, %arg5: memref<3x64xbf16, #tpu.memory_space<vmem>>, %arg6: memref<1x64xf32, #tpu.memory_space<vmem>>, %arg7: memref<1x64xf32, #tpu.memory_space<vmem>>, %arg8: memref<1x16x64xf32, #tpu.memory_space<vmem>>, %arg9: memref<1x16x64xbf16, #tpu.memory_space<vmem>>) attributes {dimension_semantics = [#tpu.dimension_semantics<parallel>, #tpu.dimension_semantics<parallel>], iteration_bounds = array<i64: 2, 1>, scalar_prefetch = 0 : i64, scratch_operands = 0 : i64, tpu.core_type = #tpu.core_type<tc>, window_params = [{transform_indices = @transform_0, window_bounds = array<i64: 1, 64, 3>}, {transform_indices = @transform_1, window_bounds = array<i64: 1, 16, 3>}, {pipeline_mode = #tpu.pipeline_mode<synchronous>, transform_indices = @transform_2, window_bounds = array<i64: 3, 64>}, {pipeline_mode = #tpu.pipeline_mode<synchronous>, transform_indices = @transform_3, window_bounds = array<i64: 3, 64>}, {pipeline_mode = #tpu.pipeline_mode<synchronous>, transform_indices = @transform_4, window_bounds = array<i64: 1, 64>}, {pipeline_mode = #tpu.pipeline_mode<synchronous>, transform_indices = @transform_5, window_bounds = array<i64: 1, 64>}, {transform_indices = @transform_6, window_bounds = array<i64: 1, 16, 64>}, {transform_indices = @transform_7, window_bounds = array<i64: 1, 16, 64>}]} {
    %c0 = arith.constant 0 : index
    %c0_0 = arith.constant 0 : index
    %c0_1 = arith.constant 0 : index
    %0 = vector.load %arg2[%c0, %c0_0, %c0_1] : memref<1x64x3xbf16, #tpu.memory_space<vmem>>, vector<1x64x3xbf16>
    %1 = vector.shape_cast %0 : vector<1x64x3xbf16> to vector<64x3xbf16>
    %c0_2 = arith.constant 0 : index
    %c0_3 = arith.constant 0 : index
    %2 = vector.load %arg4[%c0_2, %c0_3] : memref<3x64xbf16, #tpu.memory_space<vmem>>, vector<3x64xbf16>
    %cst = arith.constant dense<0.000000e+00> : vector<64x64xf32>
    %3 = tpu.matmul %1, %2, %cst {dimension_numbers = #tpu.dot_dimension_numbers<[1], [0], [0], [1], [0, 0, 1, 1], [], []>} : vector<64x3xbf16>, vector<3x64xbf16>, vector<64x64xf32> -> vector<64x64xf32>
    %c0_4 = arith.constant 0 : index
    %c0_5 = arith.constant 0 : index
    %c0_6 = arith.constant 0 : index
    %4 = vector.load %arg3[%c0_4, %c0_5, %c0_6] : memref<1x16x3xbf16, #tpu.memory_space<vmem>>, vector<1x16x3xbf16>
    %5 = vector.shape_cast %4 : vector<1x16x3xbf16> to vector<16x3xbf16>
    %c0_7 = arith.constant 0 : index
    %c0_8 = arith.constant 0 : index
    %6 = vector.load %arg5[%c0_7, %c0_8] : memref<3x64xbf16, #tpu.memory_space<vmem>>, vector<3x64xbf16>
    %cst_9 = arith.constant dense<0.000000e+00> : vector<16x64xf32>
    %7 = tpu.matmul %5, %6, %cst_9 {dimension_numbers = #tpu.dot_dimension_numbers<[1], [0], [0], [1], [0, 0, 1, 1], [], []>} : vector<16x3xbf16>, vector<3x64xbf16>, vector<16x64xf32> -> vector<16x64xf32>
    %8 = vector.shape_cast %3 : vector<64x64xf32> to vector<16x4x64xf32>
    %9 = vector.shape_cast %7 : vector<16x64xf32> to vector<16x1x64xf32>
    %10 = vector.broadcast %9 : vector<16x1x64xf32> to vector<16x4x64xf32>
    %11 = arith.addf %8, %10 : vector<16x4x64xf32>
    %c0_10 = arith.constant 0 : index
    %c0_11 = arith.constant 0 : index
    %12 = vector.load %arg6[%c0_10, %c0_11] : memref<1x64xf32, #tpu.memory_space<vmem>>, vector<1x64xf32>
    %13 = vector.shape_cast %12 : vector<1x64xf32> to vector<64xf32>
    %14 = vector.shape_cast %13 : vector<64xf32> to vector<1x1x64xf32>
    %15 = vector.broadcast %14 : vector<1x1x64xf32> to vector<16x4x64xf32>
    %16 = arith.mulf %11, %15 : vector<16x4x64xf32>
    %c0_12 = arith.constant 0 : index
    %c0_13 = arith.constant 0 : index
    %17 = vector.load %arg7[%c0_12, %c0_13] : memref<1x64xf32, #tpu.memory_space<vmem>>, vector<1x64xf32>
    %18 = vector.shape_cast %17 : vector<1x64xf32> to vector<64xf32>
    %19 = vector.shape_cast %18 : vector<64xf32> to vector<1x1x64xf32>
    %20 = vector.broadcast %19 : vector<1x1x64xf32> to vector<16x4x64xf32>
    %21 = arith.addf %16, %20 : vector<16x4x64xf32>
    %cst_14 = arith.constant 0.000000e+00 : f32
    %22 = vector.broadcast %cst_14 : f32 to vector<16x4x64xf32>
    %23 = arith.cmpf ogt, %21, %22 : vector<16x4x64xf32>
    %cst_15 = arith.constant 2.000000e-01 : f32
    %24 = vector.broadcast %cst_15 : f32 to vector<16x4x64xf32>
    %25 = arith.mulf %24, %21 : vector<16x4x64xf32>
    %26 = arith.select %23, %21, %25 : vector<16x4x64xi1>, vector<16x4x64xf32>
    %cst_16 = arith.constant dense<0xFF800000> : vector<16x64xf32>
    %27 = vector.multi_reduction <maximumf>, %26, %cst_16 [1] : vector<16x4x64xf32> to vector<16x64xf32>
    %c0_17 = arith.constant 0 : index
    %c0_18 = arith.constant 0 : index
    %c0_19 = arith.constant 0 : index
    %28 = vector.load %arg8[%c0_17, %c0_18, %c0_19] : memref<1x16x64xf32, #tpu.memory_space<vmem>>, vector<1x16x64xf32>
    %29 = vector.shape_cast %28 : vector<1x16x64xf32> to vector<16x64xf32>
    %30 = vector.shape_cast %27 : vector<16x64xf32> to vector<1x16x64xf32>
    tpu.vector_store %arg8[%c0_17, %c0_18, %c0_19], %30 {strides = array<i32>} : memref<1x16x64xf32, #tpu.memory_space<vmem>>, vector<1x16x64xf32>,
    %31 = arith.truncf %27 : vector<16x64xf32> to vector<16x64xbf16>
    %c0_20 = arith.constant 0 : index
    %c0_21 = arith.constant 0 : index
    %c0_22 = arith.constant 0 : index
    %32 = vector.load %arg9[%c0_20, %c0_21, %c0_22] : memref<1x16x64xbf16, #tpu.memory_space<vmem>>, vector<1x16x64xbf16>
    %33 = vector.shape_cast %32 : vector<1x16x64xbf16> to vector<16x64xbf16>
    %34 = vector.shape_cast %31 : vector<16x64xbf16> to vector<1x16x64xbf16>
    tpu.vector_store %arg9[%c0_20, %c0_21, %c0_22], %34 {strides = array<i32>} : memref<1x16x64xbf16, #tpu.memory_space<vmem>>, vector<1x16x64xbf16>,
    return
  }
  func.func @transform_0(%arg0: i32, %arg1: i32) -> (i32, i32, i32) {
    %c0_i32 = arith.constant 0 : i32
    %c0_i32_0 = arith.constant 0 : i32
    return %arg0, %arg1, %c0_i32 : i32, i32, i32
  }
  func.func @transform_1(%arg0: i32, %arg1: i32) -> (i32, i32, i32) {
    %c0_i32 = arith.constant 0 : i32
    %c0_i32_0 = arith.constant 0 : i32
    return %arg0, %arg1, %c0_i32 : i32, i32, i32
  }
  func.func @transform_2(%arg0: i32, %arg1: i32) -> (i32, i32) {
    %c0_i32 = arith.constant 0 : i32
    %c0_i32_0 = arith.constant 0 : i32
    %c0_i32_1 = arith.constant 0 : i32
    return %c0_i32, %c0_i32_0 : i32, i32
  }
  func.func @transform_3(%arg0: i32, %arg1: i32) -> (i32, i32) {
    %c0_i32 = arith.constant 0 : i32
    %c0_i32_0 = arith.constant 0 : i32
    %c0_i32_1 = arith.constant 0 : i32
    return %c0_i32, %c0_i32_0 : i32, i32
  }
  func.func @transform_4(%arg0: i32, %arg1: i32) -> (i32, i32) {
    %c0_i32 = arith.constant 0 : i32
    %c0_i32_0 = arith.constant 0 : i32
    %c0_i32_1 = arith.constant 0 : i32
    return %c0_i32, %c0_i32_0 : i32, i32
  }
  func.func @transform_5(%arg0: i32, %arg1: i32) -> (i32, i32) {
    %c0_i32 = arith.constant 0 : i32
    %c0_i32_0 = arith.constant 0 : i32
    %c0_i32_1 = arith.constant 0 : i32
    return %c0_i32, %c0_i32_0 : i32, i32
  }
  func.func @transform_6(%arg0: i32, %arg1: i32) -> (i32, i32, i32) {
    %c0_i32 = arith.constant 0 : i32
    %c0_i32_0 = arith.constant 0 : i32
    return %arg0, %arg1, %c0_i32 : i32, i32, i32
  }
  func.func @transform_7(%arg0: i32, %arg1: i32) -> (i32, i32, i32) {
    %c0_i32 = arith.constant 0 : i32
    %c0_i32_0 = arith.constant 0 : i32
    return %arg0, %arg1, %c0_i32 : i32, i32, i32
  }
}

module attributes {stable_mosaic.version = 11 : i64} {
  func.func @_edgeconv_kernel(%arg0: i32, %arg1: i32, %arg2: memref<1x64x64xbf16, #tpu.memory_space<vmem>>, %arg3: memref<1x16x64xbf16, #tpu.memory_space<vmem>>, %arg4: memref<64x64xbf16, #tpu.memory_space<vmem>>, %arg5: memref<64x64xbf16, #tpu.memory_space<vmem>>, %arg6: memref<1x64xf32, #tpu.memory_space<vmem>>, %arg7: memref<1x64xf32, #tpu.memory_space<vmem>>, %arg8: memref<1x16x64xf32, #tpu.memory_space<vmem>>, %arg9: memref<1x16x64xbf16, #tpu.memory_space<vmem>>) attributes {dimension_semantics = [#tpu.dimension_semantics<parallel>, #tpu.dimension_semantics<parallel>], iteration_bounds = array<i64: 2, 1>, scalar_prefetch = 0 : i64, scratch_operands = 0 : i64, tpu.core_type = #tpu.core_type<tc>, window_params = [{transform_indices = @transform_0, window_bounds = array<i64: 1, 64, 64>}, {transform_indices = @transform_1, window_bounds = array<i64: 1, 16, 64>}, {pipeline_mode = #tpu.pipeline_mode<synchronous>, transform_indices = @transform_2, window_bounds = array<i64: 64, 64>}, {pipeline_mode = #tpu.pipeline_mode<synchronous>, transform_indices = @transform_3, window_bounds = array<i64: 64, 64>}, {pipeline_mode = #tpu.pipeline_mode<synchronous>, transform_indices = @transform_4, window_bounds = array<i64: 1, 64>}, {pipeline_mode = #tpu.pipeline_mode<synchronous>, transform_indices = @transform_5, window_bounds = array<i64: 1, 64>}, {transform_indices = @transform_6, window_bounds = array<i64: 1, 16, 64>}, {transform_indices = @transform_7, window_bounds = array<i64: 1, 16, 64>}]} {
    %c0 = arith.constant 0 : index
    %c0_0 = arith.constant 0 : index
    %c0_1 = arith.constant 0 : index
    %0 = vector.load %arg2[%c0, %c0_0, %c0_1] : memref<1x64x64xbf16, #tpu.memory_space<vmem>>, vector<1x64x64xbf16>
    %1 = vector.shape_cast %0 : vector<1x64x64xbf16> to vector<64x64xbf16>
    %c0_2 = arith.constant 0 : index
    %c0_3 = arith.constant 0 : index
    %2 = vector.load %arg4[%c0_2, %c0_3] : memref<64x64xbf16, #tpu.memory_space<vmem>>, vector<64x64xbf16>
    %cst = arith.constant dense<0.000000e+00> : vector<64x64xf32>
    %3 = tpu.matmul %1, %2, %cst {dimension_numbers = #tpu.dot_dimension_numbers<[1], [0], [0], [1], [0, 0, 1, 1], [], []>} : vector<64x64xbf16>, vector<64x64xbf16>, vector<64x64xf32> -> vector<64x64xf32>
    %c0_4 = arith.constant 0 : index
    %c0_5 = arith.constant 0 : index
    %c0_6 = arith.constant 0 : index
    %4 = vector.load %arg3[%c0_4, %c0_5, %c0_6] : memref<1x16x64xbf16, #tpu.memory_space<vmem>>, vector<1x16x64xbf16>
    %5 = vector.shape_cast %4 : vector<1x16x64xbf16> to vector<16x64xbf16>
    %c0_7 = arith.constant 0 : index
    %c0_8 = arith.constant 0 : index
    %6 = vector.load %arg5[%c0_7, %c0_8] : memref<64x64xbf16, #tpu.memory_space<vmem>>, vector<64x64xbf16>
    %cst_9 = arith.constant dense<0.000000e+00> : vector<16x64xf32>
    %7 = tpu.matmul %5, %6, %cst_9 {dimension_numbers = #tpu.dot_dimension_numbers<[1], [0], [0], [1], [0, 0, 1, 1], [], []>} : vector<16x64xbf16>, vector<64x64xbf16>, vector<16x64xf32> -> vector<16x64xf32>
    %8 = vector.shape_cast %3 : vector<64x64xf32> to vector<16x4x64xf32>
    %9 = vector.shape_cast %7 : vector<16x64xf32> to vector<16x1x64xf32>
    %10 = vector.broadcast %9 : vector<16x1x64xf32> to vector<16x4x64xf32>
    %11 = arith.addf %8, %10 : vector<16x4x64xf32>
    %c0_10 = arith.constant 0 : index
    %c0_11 = arith.constant 0 : index
    %12 = vector.load %arg6[%c0_10, %c0_11] : memref<1x64xf32, #tpu.memory_space<vmem>>, vector<1x64xf32>
    %13 = vector.shape_cast %12 : vector<1x64xf32> to vector<64xf32>
    %14 = vector.shape_cast %13 : vector<64xf32> to vector<1x1x64xf32>
    %15 = vector.broadcast %14 : vector<1x1x64xf32> to vector<16x4x64xf32>
    %16 = arith.mulf %11, %15 : vector<16x4x64xf32>
    %c0_12 = arith.constant 0 : index
    %c0_13 = arith.constant 0 : index
    %17 = vector.load %arg7[%c0_12, %c0_13] : memref<1x64xf32, #tpu.memory_space<vmem>>, vector<1x64xf32>
    %18 = vector.shape_cast %17 : vector<1x64xf32> to vector<64xf32>
    %19 = vector.shape_cast %18 : vector<64xf32> to vector<1x1x64xf32>
    %20 = vector.broadcast %19 : vector<1x1x64xf32> to vector<16x4x64xf32>
    %21 = arith.addf %16, %20 : vector<16x4x64xf32>
    %cst_14 = arith.constant 0.000000e+00 : f32
    %22 = vector.broadcast %cst_14 : f32 to vector<16x4x64xf32>
    %23 = arith.cmpf ogt, %21, %22 : vector<16x4x64xf32>
    %cst_15 = arith.constant 2.000000e-01 : f32
    %24 = vector.broadcast %cst_15 : f32 to vector<16x4x64xf32>
    %25 = arith.mulf %24, %21 : vector<16x4x64xf32>
    %26 = arith.select %23, %21, %25 : vector<16x4x64xi1>, vector<16x4x64xf32>
    %cst_16 = arith.constant dense<0xFF800000> : vector<16x64xf32>
    %27 = vector.multi_reduction <maximumf>, %26, %cst_16 [1] : vector<16x4x64xf32> to vector<16x64xf32>
    %c0_17 = arith.constant 0 : index
    %c0_18 = arith.constant 0 : index
    %c0_19 = arith.constant 0 : index
    %28 = vector.load %arg8[%c0_17, %c0_18, %c0_19] : memref<1x16x64xf32, #tpu.memory_space<vmem>>, vector<1x16x64xf32>
    %29 = vector.shape_cast %28 : vector<1x16x64xf32> to vector<16x64xf32>
    %30 = vector.shape_cast %27 : vector<16x64xf32> to vector<1x16x64xf32>
    tpu.vector_store %arg8[%c0_17, %c0_18, %c0_19], %30 {strides = array<i32>} : memref<1x16x64xf32, #tpu.memory_space<vmem>>, vector<1x16x64xf32>,
    %31 = arith.truncf %27 : vector<16x64xf32> to vector<16x64xbf16>
    %c0_20 = arith.constant 0 : index
    %c0_21 = arith.constant 0 : index
    %c0_22 = arith.constant 0 : index
    %32 = vector.load %arg9[%c0_20, %c0_21, %c0_22] : memref<1x16x64xbf16, #tpu.memory_space<vmem>>, vector<1x16x64xbf16>
    %33 = vector.shape_cast %32 : vector<1x16x64xbf16> to vector<16x64xbf16>
    %34 = vector.shape_cast %31 : vector<16x64xbf16> to vector<1x16x64xbf16>
    tpu.vector_store %arg9[%c0_20, %c0_21, %c0_22], %34 {strides = array<i32>} : memref<1x16x64xbf16, #tpu.memory_space<vmem>>, vector<1x16x64xbf16>,
    return
  }
  func.func @transform_0(%arg0: i32, %arg1: i32) -> (i32, i32, i32) {
    %c0_i32 = arith.constant 0 : i32
    %c0_i32_0 = arith.constant 0 : i32
    return %arg0, %arg1, %c0_i32 : i32, i32, i32
  }
  func.func @transform_1(%arg0: i32, %arg1: i32) -> (i32, i32, i32) {
    %c0_i32 = arith.constant 0 : i32
    %c0_i32_0 = arith.constant 0 : i32
    return %arg0, %arg1, %c0_i32 : i32, i32, i32
  }
  func.func @transform_2(%arg0: i32, %arg1: i32) -> (i32, i32) {
    %c0_i32 = arith.constant 0 : i32
    %c0_i32_0 = arith.constant 0 : i32
    %c0_i32_1 = arith.constant 0 : i32
    return %c0_i32, %c0_i32_0 : i32, i32
  }
  func.func @transform_3(%arg0: i32, %arg1: i32) -> (i32, i32) {
    %c0_i32 = arith.constant 0 : i32
    %c0_i32_0 = arith.constant 0 : i32
    %c0_i32_1 = arith.constant 0 : i32
    return %c0_i32, %c0_i32_0 : i32, i32
  }
  func.func @transform_4(%arg0: i32, %arg1: i32) -> (i32, i32) {
    %c0_i32 = arith.constant 0 : i32
    %c0_i32_0 = arith.constant 0 : i32
    %c0_i32_1 = arith.constant 0 : i32
    return %c0_i32, %c0_i32_0 : i32, i32
  }
  func.func @transform_5(%arg0: i32, %arg1: i32) -> (i32, i32) {
    %c0_i32 = arith.constant 0 : i32
    %c0_i32_0 = arith.constant 0 : i32
    %c0_i32_1 = arith.constant 0 : i32
    return %c0_i32, %c0_i32_0 : i32, i32
  }
  func.func @transform_6(%arg0: i32, %arg1: i32) -> (i32, i32, i32) {
    %c0_i32 = arith.constant 0 : i32
    %c0_i32_0 = arith.constant 0 : i32
    return %arg0, %arg1, %c0_i32 : i32, i32, i32
  }
  func.func @transform_7(%arg0: i32, %arg1: i32) -> (i32, i32, i32) {
    %c0_i32 = arith.constant 0 : i32
    %c0_i32_0 = arith.constant 0 : i32
    return %arg0, %arg1, %c0_i32 : i32, i32, i32
  }
}

module attributes {stable_mosaic.version = 11 : i64} {
  func.func @_edgeconv_kernel(%arg0: i32, %arg1: i32, %arg2: memref<1x64x64xbf16, #tpu.memory_space<vmem>>, %arg3: memref<1x16x64xbf16, #tpu.memory_space<vmem>>, %arg4: memref<64x128xbf16, #tpu.memory_space<vmem>>, %arg5: memref<64x128xbf16, #tpu.memory_space<vmem>>, %arg6: memref<1x128xf32, #tpu.memory_space<vmem>>, %arg7: memref<1x128xf32, #tpu.memory_space<vmem>>, %arg8: memref<1x16x128xf32, #tpu.memory_space<vmem>>, %arg9: memref<1x16x128xbf16, #tpu.memory_space<vmem>>) attributes {dimension_semantics = [#tpu.dimension_semantics<parallel>, #tpu.dimension_semantics<parallel>], iteration_bounds = array<i64: 2, 1>, scalar_prefetch = 0 : i64, scratch_operands = 0 : i64, tpu.core_type = #tpu.core_type<tc>, window_params = [{transform_indices = @transform_0, window_bounds = array<i64: 1, 64, 64>}, {transform_indices = @transform_1, window_bounds = array<i64: 1, 16, 64>}, {pipeline_mode = #tpu.pipeline_mode<synchronous>, transform_indices = @transform_2, window_bounds = array<i64: 64, 128>}, {pipeline_mode = #tpu.pipeline_mode<synchronous>, transform_indices = @transform_3, window_bounds = array<i64: 64, 128>}, {pipeline_mode = #tpu.pipeline_mode<synchronous>, transform_indices = @transform_4, window_bounds = array<i64: 1, 128>}, {pipeline_mode = #tpu.pipeline_mode<synchronous>, transform_indices = @transform_5, window_bounds = array<i64: 1, 128>}, {transform_indices = @transform_6, window_bounds = array<i64: 1, 16, 128>}, {transform_indices = @transform_7, window_bounds = array<i64: 1, 16, 128>}]} {
    %c0 = arith.constant 0 : index
    %c0_0 = arith.constant 0 : index
    %c0_1 = arith.constant 0 : index
    %0 = vector.load %arg2[%c0, %c0_0, %c0_1] : memref<1x64x64xbf16, #tpu.memory_space<vmem>>, vector<1x64x64xbf16>
    %1 = vector.shape_cast %0 : vector<1x64x64xbf16> to vector<64x64xbf16>
    %c0_2 = arith.constant 0 : index
    %c0_3 = arith.constant 0 : index
    %2 = vector.load %arg4[%c0_2, %c0_3] : memref<64x128xbf16, #tpu.memory_space<vmem>>, vector<64x128xbf16>
    %cst = arith.constant dense<0.000000e+00> : vector<64x128xf32>
    %3 = tpu.matmul %1, %2, %cst {dimension_numbers = #tpu.dot_dimension_numbers<[1], [0], [0], [1], [0, 0, 1, 1], [], []>} : vector<64x64xbf16>, vector<64x128xbf16>, vector<64x128xf32> -> vector<64x128xf32>
    %c0_4 = arith.constant 0 : index
    %c0_5 = arith.constant 0 : index
    %c0_6 = arith.constant 0 : index
    %4 = vector.load %arg3[%c0_4, %c0_5, %c0_6] : memref<1x16x64xbf16, #tpu.memory_space<vmem>>, vector<1x16x64xbf16>
    %5 = vector.shape_cast %4 : vector<1x16x64xbf16> to vector<16x64xbf16>
    %c0_7 = arith.constant 0 : index
    %c0_8 = arith.constant 0 : index
    %6 = vector.load %arg5[%c0_7, %c0_8] : memref<64x128xbf16, #tpu.memory_space<vmem>>, vector<64x128xbf16>
    %cst_9 = arith.constant dense<0.000000e+00> : vector<16x128xf32>
    %7 = tpu.matmul %5, %6, %cst_9 {dimension_numbers = #tpu.dot_dimension_numbers<[1], [0], [0], [1], [0, 0, 1, 1], [], []>} : vector<16x64xbf16>, vector<64x128xbf16>, vector<16x128xf32> -> vector<16x128xf32>
    %8 = vector.shape_cast %3 : vector<64x128xf32> to vector<16x4x128xf32>
    %9 = vector.shape_cast %7 : vector<16x128xf32> to vector<16x1x128xf32>
    %10 = vector.broadcast %9 : vector<16x1x128xf32> to vector<16x4x128xf32>
    %11 = arith.addf %8, %10 : vector<16x4x128xf32>
    %c0_10 = arith.constant 0 : index
    %c0_11 = arith.constant 0 : index
    %12 = vector.load %arg6[%c0_10, %c0_11] : memref<1x128xf32, #tpu.memory_space<vmem>>, vector<1x128xf32>
    %13 = vector.shape_cast %12 : vector<1x128xf32> to vector<128xf32>
    %14 = vector.shape_cast %13 : vector<128xf32> to vector<1x1x128xf32>
    %15 = vector.broadcast %14 : vector<1x1x128xf32> to vector<16x4x128xf32>
    %16 = arith.mulf %11, %15 : vector<16x4x128xf32>
    %c0_12 = arith.constant 0 : index
    %c0_13 = arith.constant 0 : index
    %17 = vector.load %arg7[%c0_12, %c0_13] : memref<1x128xf32, #tpu.memory_space<vmem>>, vector<1x128xf32>
    %18 = vector.shape_cast %17 : vector<1x128xf32> to vector<128xf32>
    %19 = vector.shape_cast %18 : vector<128xf32> to vector<1x1x128xf32>
    %20 = vector.broadcast %19 : vector<1x1x128xf32> to vector<16x4x128xf32>
    %21 = arith.addf %16, %20 : vector<16x4x128xf32>
    %cst_14 = arith.constant 0.000000e+00 : f32
    %22 = vector.broadcast %cst_14 : f32 to vector<16x4x128xf32>
    %23 = arith.cmpf ogt, %21, %22 : vector<16x4x128xf32>
    %cst_15 = arith.constant 2.000000e-01 : f32
    %24 = vector.broadcast %cst_15 : f32 to vector<16x4x128xf32>
    %25 = arith.mulf %24, %21 : vector<16x4x128xf32>
    %26 = arith.select %23, %21, %25 : vector<16x4x128xi1>, vector<16x4x128xf32>
    %cst_16 = arith.constant dense<0xFF800000> : vector<16x128xf32>
    %27 = vector.multi_reduction <maximumf>, %26, %cst_16 [1] : vector<16x4x128xf32> to vector<16x128xf32>
    %c0_17 = arith.constant 0 : index
    %c0_18 = arith.constant 0 : index
    %c0_19 = arith.constant 0 : index
    %28 = vector.load %arg8[%c0_17, %c0_18, %c0_19] : memref<1x16x128xf32, #tpu.memory_space<vmem>>, vector<1x16x128xf32>
    %29 = vector.shape_cast %28 : vector<1x16x128xf32> to vector<16x128xf32>
    %30 = vector.shape_cast %27 : vector<16x128xf32> to vector<1x16x128xf32>
    tpu.vector_store %arg8[%c0_17, %c0_18, %c0_19], %30 {strides = array<i32>} : memref<1x16x128xf32, #tpu.memory_space<vmem>>, vector<1x16x128xf32>,
    %31 = arith.truncf %27 : vector<16x128xf32> to vector<16x128xbf16>
    %c0_20 = arith.constant 0 : index
    %c0_21 = arith.constant 0 : index
    %c0_22 = arith.constant 0 : index
    %32 = vector.load %arg9[%c0_20, %c0_21, %c0_22] : memref<1x16x128xbf16, #tpu.memory_space<vmem>>, vector<1x16x128xbf16>
    %33 = vector.shape_cast %32 : vector<1x16x128xbf16> to vector<16x128xbf16>
    %34 = vector.shape_cast %31 : vector<16x128xbf16> to vector<1x16x128xbf16>
    tpu.vector_store %arg9[%c0_20, %c0_21, %c0_22], %34 {strides = array<i32>} : memref<1x16x128xbf16, #tpu.memory_space<vmem>>, vector<1x16x128xbf16>,
    return
  }
  func.func @transform_0(%arg0: i32, %arg1: i32) -> (i32, i32, i32) {
    %c0_i32 = arith.constant 0 : i32
    %c0_i32_0 = arith.constant 0 : i32
    return %arg0, %arg1, %c0_i32 : i32, i32, i32
  }
  func.func @transform_1(%arg0: i32, %arg1: i32) -> (i32, i32, i32) {
    %c0_i32 = arith.constant 0 : i32
    %c0_i32_0 = arith.constant 0 : i32
    return %arg0, %arg1, %c0_i32 : i32, i32, i32
  }
  func.func @transform_2(%arg0: i32, %arg1: i32) -> (i32, i32) {
    %c0_i32 = arith.constant 0 : i32
    %c0_i32_0 = arith.constant 0 : i32
    %c0_i32_1 = arith.constant 0 : i32
    return %c0_i32, %c0_i32_0 : i32, i32
  }
  func.func @transform_3(%arg0: i32, %arg1: i32) -> (i32, i32) {
    %c0_i32 = arith.constant 0 : i32
    %c0_i32_0 = arith.constant 0 : i32
    %c0_i32_1 = arith.constant 0 : i32
    return %c0_i32, %c0_i32_0 : i32, i32
  }
  func.func @transform_4(%arg0: i32, %arg1: i32) -> (i32, i32) {
    %c0_i32 = arith.constant 0 : i32
    %c0_i32_0 = arith.constant 0 : i32
    %c0_i32_1 = arith.constant 0 : i32
    return %c0_i32, %c0_i32_0 : i32, i32
  }
  func.func @transform_5(%arg0: i32, %arg1: i32) -> (i32, i32) {
    %c0_i32 = arith.constant 0 : i32
    %c0_i32_0 = arith.constant 0 : i32
    %c0_i32_1 = arith.constant 0 : i32
    return %c0_i32, %c0_i32_0 : i32, i32
  }
  func.func @transform_6(%arg0: i32, %arg1: i32) -> (i32, i32, i32) {
    %c0_i32 = arith.constant 0 : i32
    %c0_i32_0 = arith.constant 0 : i32
    return %arg0, %arg1, %c0_i32 : i32, i32, i32
  }
  func.func @transform_7(%arg0: i32, %arg1: i32) -> (i32, i32, i32) {
    %c0_i32 = arith.constant 0 : i32
    %c0_i32_0 = arith.constant 0 : i32
    return %arg0, %arg1, %c0_i32 : i32, i32, i32
  }
}

module attributes {stable_mosaic.version = 11 : i64} {
  func.func @_knn_kernel(%arg0: i32, %arg1: i32, %arg2: memref<1x16x128xf32, #tpu.memory_space<vmem>>, %arg3: memref<1x16x128xf32, #tpu.memory_space<vmem>>, %arg4: memref<1x16x4xi32, #tpu.memory_space<vmem>>) attributes {dimension_semantics = [#tpu.dimension_semantics<parallel>, #tpu.dimension_semantics<parallel>], iteration_bounds = array<i64: 2, 1>, scalar_prefetch = 0 : i64, scratch_operands = 0 : i64, tpu.core_type = #tpu.core_type<tc>, window_params = [{transform_indices = @transform_0, window_bounds = array<i64: 1, 16, 128>}, {transform_indices = @transform_1, window_bounds = array<i64: 1, 16, 128>}, {transform_indices = @transform_2, window_bounds = array<i64: 1, 16, 4>}]} {
    %c0 = arith.constant 0 : index
    %c0_0 = arith.constant 0 : index
    %c0_1 = arith.constant 0 : index
    %0 = vector.load %arg2[%c0, %c0_0, %c0_1] : memref<1x16x128xf32, #tpu.memory_space<vmem>>, vector<1x16x128xf32>
    %1 = vector.shape_cast %0 : vector<1x16x128xf32> to vector<16x128xf32>
    %c0_2 = arith.constant 0 : index
    %c0_3 = arith.constant 0 : index
    %c0_4 = arith.constant 0 : index
    %2 = vector.load %arg3[%c0_2, %c0_3, %c0_4] : memref<1x16x128xf32, #tpu.memory_space<vmem>>, vector<1x16x128xf32>
    %3 = vector.shape_cast %2 : vector<1x16x128xf32> to vector<16x128xf32>
    %4 = tpu.transpose %3, [1, 0] : vector<16x128xf32> -> vector<128x16xf32>
    %cst = arith.constant dense<0.000000e+00> : vector<16x16xf32>
    %5 = tpu.matmul %1, %4, %cst {dimension_numbers = #tpu.dot_dimension_numbers<[1], [0], [0], [1], [0, 0, 1, 1], [], []>} : vector<16x128xf32>, vector<128x16xf32>, vector<16x16xf32> -> vector<16x16xf32>
    %6 = arith.mulf %1, %1 : vector<16x128xf32>
    %cst_5 = arith.constant dense<0.000000e+00> : vector<16xf32>
    %7 = vector.multi_reduction <add>, %6, %cst_5 [1] : vector<16x128xf32> to vector<16xf32>
    %8 = vector.shape_cast %7 : vector<16xf32> to vector<16x1xf32>
    %9 = arith.mulf %3, %3 : vector<16x128xf32>
    %cst_6 = arith.constant dense<0.000000e+00> : vector<16xf32>
    %10 = vector.multi_reduction <add>, %9, %cst_6 [1] : vector<16x128xf32> to vector<16xf32>
    %11 = vector.shape_cast %10 : vector<16xf32> to vector<16x1xf32>
    %cst_7 = arith.constant 2.000000e+00 : f32
    %12 = vector.broadcast %cst_7 : f32 to vector<16x16xf32>
    %13 = arith.mulf %12, %5 : vector<16x16xf32>
    %14 = vector.broadcast %8 : vector<16x1xf32> to vector<16x16xf32>
    %15 = arith.subf %13, %14 : vector<16x16xf32>
    %16 = tpu.transpose %11, [1, 0] : vector<16x1xf32> -> vector<1x16xf32>
    %17 = vector.broadcast %16 : vector<1x16xf32> to vector<16x16xf32>
    %18 = arith.subf %15, %17 : vector<16x16xf32>
    %19 = tpu.iota {dimensions = array<i32: 1>} : vector<16x16xi32>
    %20 = arith.sitofp %19 : vector<16x16xi32> to vector<16x16xf32>
    %21 = tpu.iota {dimensions = array<i32: 1>} : vector<16x4xi32>
    %c0_i32 = arith.constant 0 : i32
    %22 = vector.broadcast %c0_i32 : i32 to vector<16x4xi32>
    %cst_8 = arith.constant dense<0xFF800000> : vector<16xf32>
    %23 = vector.multi_reduction <maximumf>, %18, %cst_8 [1] : vector<16x16xf32> to vector<16xf32>
    %24 = vector.shape_cast %23 : vector<16xf32> to vector<16x1xf32>
    %25 = vector.broadcast %24 : vector<16x1xf32> to vector<16x16xf32>
    %26 = arith.cmpf oge, %18, %25 : vector<16x16xf32>
    %cst_9 = arith.constant 1.600000e+01 : f32
    %27 = vector.broadcast %cst_9 : f32 to vector<16x16xf32>
    %28 = arith.select %26, %20, %27 : vector<16x16xi1>, vector<16x16xf32>
    %cst_10 = arith.constant dense<0x7F800000> : vector<16xf32>
    %29 = vector.multi_reduction <minimumf>, %28, %cst_10 [1] : vector<16x16xf32> to vector<16xf32>
    %30 = vector.shape_cast %29 : vector<16xf32> to vector<16x1xf32>
    %c0_i32_11 = arith.constant 0 : i32
    %31 = vector.broadcast %c0_i32_11 : i32 to vector<16x4xi32>
    %32 = arith.cmpi eq, %21, %31 : vector<16x4xi32>
    %33 = arith.fptosi %30 : vector<16x1xf32> to vector<16x1xi32>
    %34 = vector.shape_cast %33 : vector<16x1xi32> to vector<16x1xi32>
    %35 = vector.broadcast %34 : vector<16x1xi32> to vector<16x4xi32>
    %36 = arith.select %32, %35, %22 : vector<16x4xi1>, vector<16x4xi32>
    %37 = vector.broadcast %30 : vector<16x1xf32> to vector<16x16xf32>
    %38 = arith.cmpf oeq, %20, %37 : vector<16x16xf32>
    %cst_12 = arith.constant 0xFF800000 : f32
    %39 = vector.broadcast %cst_12 : f32 to vector<16x16xf32>
    %40 = arith.select %38, %39, %18 : vector<16x16xi1>, vector<16x16xf32>
    %cst_13 = arith.constant dense<0xFF800000> : vector<16xf32>
    %41 = vector.multi_reduction <maximumf>, %40, %cst_13 [1] : vector<16x16xf32> to vector<16xf32>
    %42 = vector.shape_cast %41 : vector<16xf32> to vector<16x1xf32>
    %43 = vector.broadcast %42 : vector<16x1xf32> to vector<16x16xf32>
    %44 = arith.cmpf oge, %40, %43 : vector<16x16xf32>
    %cst_14 = arith.constant 1.600000e+01 : f32
    %45 = vector.broadcast %cst_14 : f32 to vector<16x16xf32>
    %46 = arith.select %44, %20, %45 : vector<16x16xi1>, vector<16x16xf32>
    %cst_15 = arith.constant dense<0x7F800000> : vector<16xf32>
    %47 = vector.multi_reduction <minimumf>, %46, %cst_15 [1] : vector<16x16xf32> to vector<16xf32>
    %48 = vector.shape_cast %47 : vector<16xf32> to vector<16x1xf32>
    %c1_i32 = arith.constant 1 : i32
    %49 = vector.broadcast %c1_i32 : i32 to vector<16x4xi32>
    %50 = arith.cmpi eq, %21, %49 : vector<16x4xi32>
    %51 = arith.fptosi %48 : vector<16x1xf32> to vector<16x1xi32>
    %52 = vector.shape_cast %51 : vector<16x1xi32> to vector<16x1xi32>
    %53 = vector.broadcast %52 : vector<16x1xi32> to vector<16x4xi32>
    %54 = arith.select %50, %53, %36 : vector<16x4xi1>, vector<16x4xi32>
    %55 = vector.broadcast %48 : vector<16x1xf32> to vector<16x16xf32>
    %56 = arith.cmpf oeq, %20, %55 : vector<16x16xf32>
    %cst_16 = arith.constant 0xFF800000 : f32
    %57 = vector.broadcast %cst_16 : f32 to vector<16x16xf32>
    %58 = arith.select %56, %57, %40 : vector<16x16xi1>, vector<16x16xf32>
    %cst_17 = arith.constant dense<0xFF800000> : vector<16xf32>
    %59 = vector.multi_reduction <maximumf>, %58, %cst_17 [1] : vector<16x16xf32> to vector<16xf32>
    %60 = vector.shape_cast %59 : vector<16xf32> to vector<16x1xf32>
    %61 = vector.broadcast %60 : vector<16x1xf32> to vector<16x16xf32>
    %62 = arith.cmpf oge, %58, %61 : vector<16x16xf32>
    %cst_18 = arith.constant 1.600000e+01 : f32
    %63 = vector.broadcast %cst_18 : f32 to vector<16x16xf32>
    %64 = arith.select %62, %20, %63 : vector<16x16xi1>, vector<16x16xf32>
    %cst_19 = arith.constant dense<0x7F800000> : vector<16xf32>
    %65 = vector.multi_reduction <minimumf>, %64, %cst_19 [1] : vector<16x16xf32> to vector<16xf32>
    %66 = vector.shape_cast %65 : vector<16xf32> to vector<16x1xf32>
    %c2_i32 = arith.constant 2 : i32
    %67 = vector.broadcast %c2_i32 : i32 to vector<16x4xi32>
    %68 = arith.cmpi eq, %21, %67 : vector<16x4xi32>
    %69 = arith.fptosi %66 : vector<16x1xf32> to vector<16x1xi32>
    %70 = vector.shape_cast %69 : vector<16x1xi32> to vector<16x1xi32>
    %71 = vector.broadcast %70 : vector<16x1xi32> to vector<16x4xi32>
    %72 = arith.select %68, %71, %54 : vector<16x4xi1>, vector<16x4xi32>
    %73 = vector.broadcast %66 : vector<16x1xf32> to vector<16x16xf32>
    %74 = arith.cmpf oeq, %20, %73 : vector<16x16xf32>
    %cst_20 = arith.constant 0xFF800000 : f32
    %75 = vector.broadcast %cst_20 : f32 to vector<16x16xf32>
    %76 = arith.select %74, %75, %58 : vector<16x16xi1>, vector<16x16xf32>
    %cst_21 = arith.constant dense<0xFF800000> : vector<16xf32>
    %77 = vector.multi_reduction <maximumf>, %76, %cst_21 [1] : vector<16x16xf32> to vector<16xf32>
    %78 = vector.shape_cast %77 : vector<16xf32> to vector<16x1xf32>
    %79 = vector.broadcast %78 : vector<16x1xf32> to vector<16x16xf32>
    %80 = arith.cmpf oge, %76, %79 : vector<16x16xf32>
    %cst_22 = arith.constant 1.600000e+01 : f32
    %81 = vector.broadcast %cst_22 : f32 to vector<16x16xf32>
    %82 = arith.select %80, %20, %81 : vector<16x16xi1>, vector<16x16xf32>
    %cst_23 = arith.constant dense<0x7F800000> : vector<16xf32>
    %83 = vector.multi_reduction <minimumf>, %82, %cst_23 [1] : vector<16x16xf32> to vector<16xf32>
    %84 = vector.shape_cast %83 : vector<16xf32> to vector<16x1xf32>
    %c3_i32 = arith.constant 3 : i32
    %85 = vector.broadcast %c3_i32 : i32 to vector<16x4xi32>
    %86 = arith.cmpi eq, %21, %85 : vector<16x4xi32>
    %87 = arith.fptosi %84 : vector<16x1xf32> to vector<16x1xi32>
    %88 = vector.shape_cast %87 : vector<16x1xi32> to vector<16x1xi32>
    %89 = vector.broadcast %88 : vector<16x1xi32> to vector<16x4xi32>
    %90 = arith.select %86, %89, %72 : vector<16x4xi1>, vector<16x4xi32>
    %c0_24 = arith.constant 0 : index
    %c0_25 = arith.constant 0 : index
    %c0_26 = arith.constant 0 : index
    %91 = vector.load %arg4[%c0_24, %c0_25, %c0_26] : memref<1x16x4xi32, #tpu.memory_space<vmem>>, vector<1x16x4xi32>
    %92 = vector.shape_cast %91 : vector<1x16x4xi32> to vector<16x4xi32>
    %93 = vector.shape_cast %90 : vector<16x4xi32> to vector<1x16x4xi32>
    tpu.vector_store %arg4[%c0_24, %c0_25, %c0_26], %93 {strides = array<i32>} : memref<1x16x4xi32, #tpu.memory_space<vmem>>, vector<1x16x4xi32>,
    return
  }
  func.func @transform_0(%arg0: i32, %arg1: i32) -> (i32, i32, i32) {
    %c0_i32 = arith.constant 0 : i32
    %c0_i32_0 = arith.constant 0 : i32
    return %arg0, %arg1, %c0_i32 : i32, i32, i32
  }
  func.func @transform_1(%arg0: i32, %arg1: i32) -> (i32, i32, i32) {
    %c0_i32 = arith.constant 0 : i32
    %c0_i32_0 = arith.constant 0 : i32
    %c0_i32_1 = arith.constant 0 : i32
    return %arg0, %c0_i32, %c0_i32_0 : i32, i32, i32
  }
  func.func @transform_2(%arg0: i32, %arg1: i32) -> (i32, i32, i32) {
    %c0_i32 = arith.constant 0 : i32
    %c0_i32_0 = arith.constant 0 : i32
    return %arg0, %arg1, %c0_i32 : i32, i32, i32
  }
}

module attributes {stable_mosaic.version = 11 : i64} {
  func.func @_edgeconv_kernel(%arg0: i32, %arg1: i32, %arg2: memref<1x64x128xbf16, #tpu.memory_space<vmem>>, %arg3: memref<1x16x128xbf16, #tpu.memory_space<vmem>>, %arg4: memref<128x256xbf16, #tpu.memory_space<vmem>>, %arg5: memref<128x256xbf16, #tpu.memory_space<vmem>>, %arg6: memref<1x256xf32, #tpu.memory_space<vmem>>, %arg7: memref<1x256xf32, #tpu.memory_space<vmem>>, %arg8: memref<1x16x256xf32, #tpu.memory_space<vmem>>, %arg9: memref<1x16x256xbf16, #tpu.memory_space<vmem>>) attributes {dimension_semantics = [#tpu.dimension_semantics<parallel>, #tpu.dimension_semantics<parallel>], iteration_bounds = array<i64: 2, 1>, scalar_prefetch = 0 : i64, scratch_operands = 0 : i64, tpu.core_type = #tpu.core_type<tc>, window_params = [{transform_indices = @transform_0, window_bounds = array<i64: 1, 64, 128>}, {transform_indices = @transform_1, window_bounds = array<i64: 1, 16, 128>}, {pipeline_mode = #tpu.pipeline_mode<synchronous>, transform_indices = @transform_2, window_bounds = array<i64: 128, 256>}, {pipeline_mode = #tpu.pipeline_mode<synchronous>, transform_indices = @transform_3, window_bounds = array<i64: 128, 256>}, {pipeline_mode = #tpu.pipeline_mode<synchronous>, transform_indices = @transform_4, window_bounds = array<i64: 1, 256>}, {pipeline_mode = #tpu.pipeline_mode<synchronous>, transform_indices = @transform_5, window_bounds = array<i64: 1, 256>}, {transform_indices = @transform_6, window_bounds = array<i64: 1, 16, 256>}, {transform_indices = @transform_7, window_bounds = array<i64: 1, 16, 256>}]} {
    %c0 = arith.constant 0 : index
    %c0_0 = arith.constant 0 : index
    %c0_1 = arith.constant 0 : index
    %0 = vector.load %arg2[%c0, %c0_0, %c0_1] : memref<1x64x128xbf16, #tpu.memory_space<vmem>>, vector<1x64x128xbf16>
    %1 = vector.shape_cast %0 : vector<1x64x128xbf16> to vector<64x128xbf16>
    %c0_2 = arith.constant 0 : index
    %c0_3 = arith.constant 0 : index
    %2 = vector.load %arg4[%c0_2, %c0_3] : memref<128x256xbf16, #tpu.memory_space<vmem>>, vector<128x256xbf16>
    %cst = arith.constant dense<0.000000e+00> : vector<64x256xf32>
    %3 = tpu.matmul %1, %2, %cst {dimension_numbers = #tpu.dot_dimension_numbers<[1], [0], [0], [1], [0, 0, 1, 1], [], []>} : vector<64x128xbf16>, vector<128x256xbf16>, vector<64x256xf32> -> vector<64x256xf32>
    %c0_4 = arith.constant 0 : index
    %c0_5 = arith.constant 0 : index
    %c0_6 = arith.constant 0 : index
    %4 = vector.load %arg3[%c0_4, %c0_5, %c0_6] : memref<1x16x128xbf16, #tpu.memory_space<vmem>>, vector<1x16x128xbf16>
    %5 = vector.shape_cast %4 : vector<1x16x128xbf16> to vector<16x128xbf16>
    %c0_7 = arith.constant 0 : index
    %c0_8 = arith.constant 0 : index
    %6 = vector.load %arg5[%c0_7, %c0_8] : memref<128x256xbf16, #tpu.memory_space<vmem>>, vector<128x256xbf16>
    %cst_9 = arith.constant dense<0.000000e+00> : vector<16x256xf32>
    %7 = tpu.matmul %5, %6, %cst_9 {dimension_numbers = #tpu.dot_dimension_numbers<[1], [0], [0], [1], [0, 0, 1, 1], [], []>} : vector<16x128xbf16>, vector<128x256xbf16>, vector<16x256xf32> -> vector<16x256xf32>
    %8 = vector.shape_cast %3 : vector<64x256xf32> to vector<16x4x256xf32>
    %9 = vector.shape_cast %7 : vector<16x256xf32> to vector<16x1x256xf32>
    %10 = vector.broadcast %9 : vector<16x1x256xf32> to vector<16x4x256xf32>
    %11 = arith.addf %8, %10 : vector<16x4x256xf32>
    %c0_10 = arith.constant 0 : index
    %c0_11 = arith.constant 0 : index
    %12 = vector.load %arg6[%c0_10, %c0_11] : memref<1x256xf32, #tpu.memory_space<vmem>>, vector<1x256xf32>
    %13 = vector.shape_cast %12 : vector<1x256xf32> to vector<256xf32>
    %14 = vector.shape_cast %13 : vector<256xf32> to vector<1x1x256xf32>
    %15 = vector.broadcast %14 : vector<1x1x256xf32> to vector<16x4x256xf32>
    %16 = arith.mulf %11, %15 : vector<16x4x256xf32>
    %c0_12 = arith.constant 0 : index
    %c0_13 = arith.constant 0 : index
    %17 = vector.load %arg7[%c0_12, %c0_13] : memref<1x256xf32, #tpu.memory_space<vmem>>, vector<1x256xf32>
    %18 = vector.shape_cast %17 : vector<1x256xf32> to vector<256xf32>
    %19 = vector.shape_cast %18 : vector<256xf32> to vector<1x1x256xf32>
    %20 = vector.broadcast %19 : vector<1x1x256xf32> to vector<16x4x256xf32>
    %21 = arith.addf %16, %20 : vector<16x4x256xf32>
    %cst_14 = arith.constant 0.000000e+00 : f32
    %22 = vector.broadcast %cst_14 : f32 to vector<16x4x256xf32>
    %23 = arith.cmpf ogt, %21, %22 : vector<16x4x256xf32>
    %cst_15 = arith.constant 2.000000e-01 : f32
    %24 = vector.broadcast %cst_15 : f32 to vector<16x4x256xf32>
    %25 = arith.mulf %24, %21 : vector<16x4x256xf32>
    %26 = arith.select %23, %21, %25 : vector<16x4x256xi1>, vector<16x4x256xf32>
    %cst_16 = arith.constant dense<0xFF800000> : vector<16x256xf32>
    %27 = vector.multi_reduction <maximumf>, %26, %cst_16 [1] : vector<16x4x256xf32> to vector<16x256xf32>
    %c0_17 = arith.constant 0 : index
    %c0_18 = arith.constant 0 : index
    %c0_19 = arith.constant 0 : index
    %28 = vector.load %arg8[%c0_17, %c0_18, %c0_19] : memref<1x16x256xf32, #tpu.memory_space<vmem>>, vector<1x16x256xf32>
    %29 = vector.shape_cast %28 : vector<1x16x256xf32> to vector<16x256xf32>
    %30 = vector.shape_cast %27 : vector<16x256xf32> to vector<1x16x256xf32>
    tpu.vector_store %arg8[%c0_17, %c0_18, %c0_19], %30 {strides = array<i32>} : memref<1x16x256xf32, #tpu.memory_space<vmem>>, vector<1x16x256xf32>,
    %31 = arith.truncf %27 : vector<16x256xf32> to vector<16x256xbf16>
    %c0_20 = arith.constant 0 : index
    %c0_21 = arith.constant 0 : index
    %c0_22 = arith.constant 0 : index
    %32 = vector.load %arg9[%c0_20, %c0_21, %c0_22] : memref<1x16x256xbf16, #tpu.memory_space<vmem>>, vector<1x16x256xbf16>
    %33 = vector.shape_cast %32 : vector<1x16x256xbf16> to vector<16x256xbf16>
    %34 = vector.shape_cast %31 : vector<16x256xbf16> to vector<1x16x256xbf16>
    tpu.vector_store %arg9[%c0_20, %c0_21, %c0_22], %34 {strides = array<i32>} : memref<1x16x256xbf16, #tpu.memory_space<vmem>>, vector<1x16x256xbf16>,
    return
  }
  func.func @transform_0(%arg0: i32, %arg1: i32) -> (i32, i32, i32) {
    %c0_i32 = arith.constant 0 : i32
    %c0_i32_0 = arith.constant 0 : i32
    return %arg0, %arg1, %c0_i32 : i32, i32, i32
  }
  func.func @transform_1(%arg0: i32, %arg1: i32) -> (i32, i32, i32) {
    %c0_i32 = arith.constant 0 : i32
    %c0_i32_0 = arith.constant 0 : i32
    return %arg0, %arg1, %c0_i32 : i32, i32, i32
  }
  func.func @transform_2(%arg0: i32, %arg1: i32) -> (i32, i32) {
    %c0_i32 = arith.constant 0 : i32
    %c0_i32_0 = arith.constant 0 : i32
    %c0_i32_1 = arith.constant 0 : i32
    return %c0_i32, %c0_i32_0 : i32, i32
  }
  func.func @transform_3(%arg0: i32, %arg1: i32) -> (i32, i32) {
    %c0_i32 = arith.constant 0 : i32
    %c0_i32_0 = arith.constant 0 : i32
    %c0_i32_1 = arith.constant 0 : i32
    return %c0_i32, %c0_i32_0 : i32, i32
  }
  func.func @transform_4(%arg0: i32, %arg1: i32) -> (i32, i32) {
    %c0_i32 = arith.constant 0 : i32
    %c0_i32_0 = arith.constant 0 : i32
    %c0_i32_1 = arith.constant 0 : i32
    return %c0_i32, %c0_i32_0 : i32, i32
  }
  func.func @transform_5(%arg0: i32, %arg1: i32) -> (i32, i32) {
    %c0_i32 = arith.constant 0 : i32
    %c0_i32_0 = arith.constant 0 : i32
    %c0_i32_1 = arith.constant 0 : i32
    return %c0_i32, %c0_i32_0 : i32, i32
  }
  func.func @transform_6(%arg0: i32, %arg1: i32) -> (i32, i32, i32) {
    %c0_i32 = arith.constant 0 : i32
    %c0_i32_0 = arith.constant 0 : i32
    return %arg0, %arg1, %c0_i32 : i32, i32, i32
  }
  func.func @transform_7(%arg0: i32, %arg1: i32) -> (i32, i32, i32) {
    %c0_i32 = arith.constant 0 : i32
    %c0_i32_0 = arith.constant 0 : i32
    return %arg0, %arg1, %c0_i32 : i32, i32, i32
  }
}

module attributes {stable_mosaic.version = 11 : i64} {
  func.func @_conv5_kernel(%arg0: i32, %arg1: i32, %arg2: memref<1x16x64xbf16, #tpu.memory_space<vmem>>, %arg3: memref<1x16x64xbf16, #tpu.memory_space<vmem>>, %arg4: memref<1x16x128xbf16, #tpu.memory_space<vmem>>, %arg5: memref<1x16x256xbf16, #tpu.memory_space<vmem>>, %arg6: memref<512x32xbf16, #tpu.memory_space<vmem>>, %arg7: memref<1x32xf32, #tpu.memory_space<vmem>>, %arg8: memref<1x32xf32, #tpu.memory_space<vmem>>, %arg9: memref<1x16x32xf32, #tpu.memory_space<vmem>>, %arg10: memref<1x1x32xf32, #tpu.memory_space<vmem>>, %arg11: memref<1x1x32xf32, #tpu.memory_space<vmem>>) attributes {dimension_semantics = [#tpu.dimension_semantics<parallel>, #tpu.dimension_semantics<arbitrary>], iteration_bounds = array<i64: 2, 1>, scalar_prefetch = 0 : i64, scratch_operands = 0 : i64, tpu.core_type = #tpu.core_type<tc>, window_params = [{transform_indices = @transform_0, window_bounds = array<i64: 1, 16, 64>}, {transform_indices = @transform_1, window_bounds = array<i64: 1, 16, 64>}, {transform_indices = @transform_2, window_bounds = array<i64: 1, 16, 128>}, {transform_indices = @transform_3, window_bounds = array<i64: 1, 16, 256>}, {pipeline_mode = #tpu.pipeline_mode<synchronous>, transform_indices = @transform_4, window_bounds = array<i64: 512, 32>}, {pipeline_mode = #tpu.pipeline_mode<synchronous>, transform_indices = @transform_5, window_bounds = array<i64: 1, 32>}, {pipeline_mode = #tpu.pipeline_mode<synchronous>, transform_indices = @transform_6, window_bounds = array<i64: 1, 32>}, {transform_indices = @transform_7, window_bounds = array<i64: 1, 16, 32>}, {transform_indices = @transform_8, window_bounds = array<i64: 1, 1, 32>}, {transform_indices = @transform_9, window_bounds = array<i64: 1, 1, 32>}]} {
    %c0 = arith.constant 0 : index
    %c0_0 = arith.constant 0 : index
    %c0_1 = arith.constant 0 : index
    %0 = vector.load %arg2[%c0, %c0_0, %c0_1] : memref<1x16x64xbf16, #tpu.memory_space<vmem>>, vector<1x16x64xbf16>
    %1 = vector.shape_cast %0 : vector<1x16x64xbf16> to vector<16x64xbf16>
    %c0_2 = arith.constant 0 : index
    %c0_3 = arith.constant 0 : index
    %2 = vector.load %arg6[%c0_2, %c0_3] : memref<512x32xbf16, #tpu.memory_space<vmem>>, vector<64x32xbf16>
    %cst = arith.constant dense<0.000000e+00> : vector<16x32xf32>
    %3 = tpu.matmul %1, %2, %cst {dimension_numbers = #tpu.dot_dimension_numbers<[1], [0], [0], [1], [0, 0, 1, 1], [], []>} : vector<16x64xbf16>, vector<64x32xbf16>, vector<16x32xf32> -> vector<16x32xf32>
    %c0_4 = arith.constant 0 : index
    %c0_5 = arith.constant 0 : index
    %c0_6 = arith.constant 0 : index
    %4 = vector.load %arg3[%c0_4, %c0_5, %c0_6] : memref<1x16x64xbf16, #tpu.memory_space<vmem>>, vector<1x16x64xbf16>
    %5 = vector.shape_cast %4 : vector<1x16x64xbf16> to vector<16x64xbf16>
    %c64 = arith.constant 64 : index
    %c0_7 = arith.constant 0 : index
    %6 = vector.load %arg6[%c64, %c0_7] : memref<512x32xbf16, #tpu.memory_space<vmem>>, vector<64x32xbf16>
    %cst_8 = arith.constant dense<0.000000e+00> : vector<16x32xf32>
    %7 = tpu.matmul %5, %6, %cst_8 {dimension_numbers = #tpu.dot_dimension_numbers<[1], [0], [0], [1], [0, 0, 1, 1], [], []>} : vector<16x64xbf16>, vector<64x32xbf16>, vector<16x32xf32> -> vector<16x32xf32>
    %8 = arith.addf %3, %7 : vector<16x32xf32>
    %c0_9 = arith.constant 0 : index
    %c0_10 = arith.constant 0 : index
    %c0_11 = arith.constant 0 : index
    %9 = vector.load %arg4[%c0_9, %c0_10, %c0_11] : memref<1x16x128xbf16, #tpu.memory_space<vmem>>, vector<1x16x128xbf16>
    %10 = vector.shape_cast %9 : vector<1x16x128xbf16> to vector<16x128xbf16>
    %c128 = arith.constant 128 : index
    %c0_12 = arith.constant 0 : index
    %11 = vector.load %arg6[%c128, %c0_12] : memref<512x32xbf16, #tpu.memory_space<vmem>>, vector<128x32xbf16>
    %cst_13 = arith.constant dense<0.000000e+00> : vector<16x32xf32>
    %12 = tpu.matmul %10, %11, %cst_13 {dimension_numbers = #tpu.dot_dimension_numbers<[1], [0], [0], [1], [0, 0, 1, 1], [], []>} : vector<16x128xbf16>, vector<128x32xbf16>, vector<16x32xf32> -> vector<16x32xf32>
    %13 = arith.addf %8, %12 : vector<16x32xf32>
    %c0_14 = arith.constant 0 : index
    %c0_15 = arith.constant 0 : index
    %c0_16 = arith.constant 0 : index
    %14 = vector.load %arg5[%c0_14, %c0_15, %c0_16] : memref<1x16x256xbf16, #tpu.memory_space<vmem>>, vector<1x16x256xbf16>
    %15 = vector.shape_cast %14 : vector<1x16x256xbf16> to vector<16x256xbf16>
    %c256 = arith.constant 256 : index
    %c0_17 = arith.constant 0 : index
    %16 = vector.load %arg6[%c256, %c0_17] : memref<512x32xbf16, #tpu.memory_space<vmem>>, vector<256x32xbf16>
    %cst_18 = arith.constant dense<0.000000e+00> : vector<16x32xf32>
    %17 = tpu.matmul %15, %16, %cst_18 {dimension_numbers = #tpu.dot_dimension_numbers<[1], [0], [0], [1], [0, 0, 1, 1], [], []>} : vector<16x256xbf16>, vector<256x32xbf16>, vector<16x32xf32> -> vector<16x32xf32>
    %18 = arith.addf %13, %17 : vector<16x32xf32>
    %c0_19 = arith.constant 0 : index
    %c0_20 = arith.constant 0 : index
    %19 = vector.load %arg7[%c0_19, %c0_20] : memref<1x32xf32, #tpu.memory_space<vmem>>, vector<1x32xf32>
    %20 = vector.shape_cast %19 : vector<1x32xf32> to vector<32xf32>
    %21 = vector.shape_cast %20 : vector<32xf32> to vector<1x32xf32>
    %22 = vector.broadcast %21 : vector<1x32xf32> to vector<16x32xf32>
    %23 = arith.mulf %18, %22 : vector<16x32xf32>
    %c0_21 = arith.constant 0 : index
    %c0_22 = arith.constant 0 : index
    %24 = vector.load %arg8[%c0_21, %c0_22] : memref<1x32xf32, #tpu.memory_space<vmem>>, vector<1x32xf32>
    %25 = vector.shape_cast %24 : vector<1x32xf32> to vector<32xf32>
    %26 = vector.shape_cast %25 : vector<32xf32> to vector<1x32xf32>
    %27 = vector.broadcast %26 : vector<1x32xf32> to vector<16x32xf32>
    %28 = arith.addf %23, %27 : vector<16x32xf32>
    %cst_23 = arith.constant 0.000000e+00 : f32
    %29 = vector.broadcast %cst_23 : f32 to vector<16x32xf32>
    %30 = arith.cmpf ogt, %28, %29 : vector<16x32xf32>
    %cst_24 = arith.constant 2.000000e-01 : f32
    %31 = vector.broadcast %cst_24 : f32 to vector<16x32xf32>
    %32 = arith.mulf %31, %28 : vector<16x32xf32>
    %33 = arith.select %30, %28, %32 : vector<16x32xi1>, vector<16x32xf32>
    %c0_25 = arith.constant 0 : index
    %c0_26 = arith.constant 0 : index
    %c0_27 = arith.constant 0 : index
    %34 = vector.load %arg9[%c0_25, %c0_26, %c0_27] : memref<1x16x32xf32, #tpu.memory_space<vmem>>, vector<1x16x32xf32>
    %35 = vector.shape_cast %34 : vector<1x16x32xf32> to vector<16x32xf32>
    %36 = vector.shape_cast %33 : vector<16x32xf32> to vector<1x16x32xf32>
    tpu.vector_store %arg9[%c0_25, %c0_26, %c0_27], %36 {strides = array<i32>} : memref<1x16x32xf32, #tpu.memory_space<vmem>>, vector<1x16x32xf32>,
    %cst_28 = arith.constant dense<0xFF800000> : vector<32xf32>
    %37 = vector.multi_reduction <maximumf>, %33, %cst_28 [0] : vector<16x32xf32> to vector<32xf32>
    %38 = vector.shape_cast %37 : vector<32xf32> to vector<1x32xf32>
    %cst_29 = arith.constant dense<0.000000e+00> : vector<32xf32>
    %39 = vector.multi_reduction <add>, %33, %cst_29 [0] : vector<16x32xf32> to vector<32xf32>
    %40 = vector.shape_cast %39 : vector<32xf32> to vector<1x32xf32>
    %c0_i32 = arith.constant 0 : i32
    %41 = arith.cmpi eq, %arg1, %c0_i32 : i32
    %42 = arith.extui %41 : i1 to i32
    %c0_i32_30 = arith.constant 0 : i32
    %43 = arith.cmpi ne, %42, %c0_i32_30 : i32
    scf.if %43 {
      %c0_35 = arith.constant 0 : index
      %c0_36 = arith.constant 0 : index
      %c0_37 = arith.constant 0 : index
      %50 = vector.load %arg10[%c0_35, %c0_36, %c0_37] : memref<1x1x32xf32, #tpu.memory_space<vmem>>, vector<1x1x32xf32>
      %51 = vector.shape_cast %50 : vector<1x1x32xf32> to vector<1x32xf32>
      %52 = vector.shape_cast %38 : vector<1x32xf32> to vector<1x1x32xf32>
      tpu.vector_store %arg10[%c0_35, %c0_36, %c0_37], %52 {strides = array<i32>} : memref<1x1x32xf32, #tpu.memory_space<vmem>>, vector<1x1x32xf32>,
      %c0_38 = arith.constant 0 : index
      %c0_39 = arith.constant 0 : index
      %c0_40 = arith.constant 0 : index
      %53 = vector.load %arg11[%c0_38, %c0_39, %c0_40] : memref<1x1x32xf32, #tpu.memory_space<vmem>>, vector<1x1x32xf32>
      %54 = vector.shape_cast %53 : vector<1x1x32xf32> to vector<1x32xf32>
      %55 = vector.shape_cast %40 : vector<1x32xf32> to vector<1x1x32xf32>
      tpu.vector_store %arg11[%c0_38, %c0_39, %c0_40], %55 {strides = array<i32>} : memref<1x1x32xf32, #tpu.memory_space<vmem>>, vector<1x1x32xf32>,
    } else {
    }
    %c0_i32_31 = arith.constant 0 : i32
    %44 = arith.cmpi sgt, %arg1, %c0_i32_31 : i32
    %45 = arith.extui %44 : i1 to i32
    %c0_i32_32 = arith.constant 0 : i32
    %46 = arith.cmpi ne, %45, %c0_i32_32 : i32
    scf.if %46 {
      %c0_35 = arith.constant 0 : index
      %c0_36 = arith.constant 0 : index
      %c0_37 = arith.constant 0 : index
      %50 = vector.load %arg10[%c0_35, %c0_36, %c0_37] : memref<1x1x32xf32, #tpu.memory_space<vmem>>, vector<1x1x32xf32>
      %51 = vector.shape_cast %50 : vector<1x1x32xf32> to vector<1x32xf32>
      %52 = arith.maximumf %51, %38 : vector<1x32xf32>
      %c0_38 = arith.constant 0 : index
      %c0_39 = arith.constant 0 : index
      %c0_40 = arith.constant 0 : index
      %53 = vector.load %arg10[%c0_38, %c0_39, %c0_40] : memref<1x1x32xf32, #tpu.memory_space<vmem>>, vector<1x1x32xf32>
      %54 = vector.shape_cast %53 : vector<1x1x32xf32> to vector<1x32xf32>
      %55 = vector.shape_cast %52 : vector<1x32xf32> to vector<1x1x32xf32>
      tpu.vector_store %arg10[%c0_38, %c0_39, %c0_40], %55 {strides = array<i32>} : memref<1x1x32xf32, #tpu.memory_space<vmem>>, vector<1x1x32xf32>,
      %c0_41 = arith.constant 0 : index
      %c0_42 = arith.constant 0 : index
      %c0_43 = arith.constant 0 : index
      %56 = vector.load %arg11[%c0_41, %c0_42, %c0_43] : memref<1x1x32xf32, #tpu.memory_space<vmem>>, vector<1x1x32xf32>
      %57 = vector.shape_cast %56 : vector<1x1x32xf32> to vector<1x32xf32>
      %58 = arith.addf %57, %40 : vector<1x32xf32>
      %c0_44 = arith.constant 0 : index
      %c0_45 = arith.constant 0 : index
      %c0_46 = arith.constant 0 : index
      %59 = vector.load %arg11[%c0_44, %c0_45, %c0_46] : memref<1x1x32xf32, #tpu.memory_space<vmem>>, vector<1x1x32xf32>
      %60 = vector.shape_cast %59 : vector<1x1x32xf32> to vector<1x32xf32>
      %61 = vector.shape_cast %58 : vector<1x32xf32> to vector<1x1x32xf32>
      tpu.vector_store %arg11[%c0_44, %c0_45, %c0_46], %61 {strides = array<i32>} : memref<1x1x32xf32, #tpu.memory_space<vmem>>, vector<1x1x32xf32>,
    } else {
    }
    %c0_i32_33 = arith.constant 0 : i32
    %47 = arith.cmpi eq, %arg1, %c0_i32_33 : i32
    %48 = arith.extui %47 : i1 to i32
    %c0_i32_34 = arith.constant 0 : i32
    %49 = arith.cmpi ne, %48, %c0_i32_34 : i32
    scf.if %49 {
      %c0_35 = arith.constant 0 : index
      %c0_36 = arith.constant 0 : index
      %c0_37 = arith.constant 0 : index
      %50 = vector.load %arg11[%c0_35, %c0_36, %c0_37] : memref<1x1x32xf32, #tpu.memory_space<vmem>>, vector<1x1x32xf32>
      %51 = vector.shape_cast %50 : vector<1x1x32xf32> to vector<1x32xf32>
      %cst_38 = arith.constant 6.250000e-02 : f32
      %52 = vector.broadcast %cst_38 : f32 to vector<1x32xf32>
      %53 = arith.mulf %51, %52 : vector<1x32xf32>
      %c0_39 = arith.constant 0 : index
      %c0_40 = arith.constant 0 : index
      %c0_41 = arith.constant 0 : index
      %54 = vector.load %arg11[%c0_39, %c0_40, %c0_41] : memref<1x1x32xf32, #tpu.memory_space<vmem>>, vector<1x1x32xf32>
      %55 = vector.shape_cast %54 : vector<1x1x32xf32> to vector<1x32xf32>
      %56 = vector.shape_cast %53 : vector<1x32xf32> to vector<1x1x32xf32>
      tpu.vector_store %arg11[%c0_39, %c0_40, %c0_41], %56 {strides = array<i32>} : memref<1x1x32xf32, #tpu.memory_space<vmem>>, vector<1x1x32xf32>,
    } else {
    }
    return
  }
  func.func @transform_0(%arg0: i32, %arg1: i32) -> (i32, i32, i32) {
    %c0_i32 = arith.constant 0 : i32
    %c0_i32_0 = arith.constant 0 : i32
    return %arg0, %arg1, %c0_i32 : i32, i32, i32
  }
  func.func @transform_1(%arg0: i32, %arg1: i32) -> (i32, i32, i32) {
    %c0_i32 = arith.constant 0 : i32
    %c0_i32_0 = arith.constant 0 : i32
    return %arg0, %arg1, %c0_i32 : i32, i32, i32
  }
  func.func @transform_2(%arg0: i32, %arg1: i32) -> (i32, i32, i32) {
    %c0_i32 = arith.constant 0 : i32
    %c0_i32_0 = arith.constant 0 : i32
    return %arg0, %arg1, %c0_i32 : i32, i32, i32
  }
  func.func @transform_3(%arg0: i32, %arg1: i32) -> (i32, i32, i32) {
    %c0_i32 = arith.constant 0 : i32
    %c0_i32_0 = arith.constant 0 : i32
    return %arg0, %arg1, %c0_i32 : i32, i32, i32
  }
  func.func @transform_4(%arg0: i32, %arg1: i32) -> (i32, i32) {
    %c0_i32 = arith.constant 0 : i32
    %c0_i32_0 = arith.constant 0 : i32
    %c0_i32_1 = arith.constant 0 : i32
    return %c0_i32, %c0_i32_0 : i32, i32
  }
  func.func @transform_5(%arg0: i32, %arg1: i32) -> (i32, i32) {
    %c0_i32 = arith.constant 0 : i32
    %c0_i32_0 = arith.constant 0 : i32
    %c0_i32_1 = arith.constant 0 : i32
    return %c0_i32, %c0_i32_0 : i32, i32
  }
  func.func @transform_6(%arg0: i32, %arg1: i32) -> (i32, i32) {
    %c0_i32 = arith.constant 0 : i32
    %c0_i32_0 = arith.constant 0 : i32
    %c0_i32_1 = arith.constant 0 : i32
    return %c0_i32, %c0_i32_0 : i32, i32
  }
  func.func @transform_7(%arg0: i32, %arg1: i32) -> (i32, i32, i32) {
    %c0_i32 = arith.constant 0 : i32
    %c0_i32_0 = arith.constant 0 : i32
    return %arg0, %arg1, %c0_i32 : i32, i32, i32
  }
  func.func @transform_8(%arg0: i32, %arg1: i32) -> (i32, i32, i32) {
    %c0_i32 = arith.constant 0 : i32
    %c0_i32_0 = arith.constant 0 : i32
    %c0_i32_1 = arith.constant 0 : i32
    return %arg0, %c0_i32, %c0_i32_0 : i32, i32, i32
  }
  func.func @transform_9(%arg0: i32, %arg1: i32) -> (i32, i32, i32) {
    %c0_i32 = arith.constant 0 : i32
    %c0_i32_0 = arith.constant 0 : i32
    %c0_i32_1 = arith.constant 0 : i32
    return %arg0, %c0_i32, %c0_i32_0 : i32, i32, i32
  }
}

</mosaic_0001>

<bundles_post_ra>
// kernel: dgcnn_forward.9
= control target key start
LH: loop header
LB: loop body
LE: loop exit
PB: predicated region body
PF: predicated region fallthrough
CT: control target
= control target key end

     0   :  { %s672_s9 = smov 0   ;;  %s674_s10 = smov 0   ;;  %s776_s0 = inlined_call_operand.vmem [shape: f32[2,16,3], index: 0, kind: input, shape index: {}, may-alias: {0,1}]   ;;  %s777_s1 = inlined_call_operand.vmem [shape: f32[2,16,3], index: 1, kind: input, shape index: {}, may-alias: {0,1}]   ;;  %s778_s2 = inlined_call_operand.vmem [shape: s32[2,16,4], index: 2, kind: output, shape index: {}]  }
   0x1   :  { %s676_s11 = smov 0  }
   0x2 LB: > { %s24_s12 = sadd.s32 1, %s651_s10  ;;  %p559_p0 = scmp.ge.s32.totalorder %s655_s11, 1  ;;  %s655_s11 = sphi %s676_s11, %s12_s11   ;;  %s651_s10 = sphi %s674_s10, %s780_s10   ;;  %s647_s9 = sphi %s672_s9, %s779_s9  }
   0x3   : > { %p26_p1 = scmp.ge.s32.totalorder %s24_s12, 2  ;;  %p143_p2 = scmp.lt.s32.totalorder %s655_s11, 3 }
   0x5   : > { %s782_s12 = smov (%p26_p1, %s24_s12), 0  ;;  %p144_p3 = pnand %p559_p0, %p143_p2 }
   0x6   : > { %p179_p4 = scmp.lt.s32.totalorder (!%p144_p3), %s647_s9, 1  ;;  %vm207_vm0 = vcmask (!%p144_p3), 23552   ;;  %v347_v17 = vlaneseq (!%p144_p3)  ;;  %vm356_vm2 = vcmask (!%p144_p3), 130048  }
   0x7   : > { %147 = sbr.rel (%p144_p3) target bundleno = 1464 (0x5b8), region = 28  ;;  %vm587_vm1 = vmpackc.low (!%p144_p3), %vm207_vm0, %vm207_vm0 }
   0x8   : > { %v348_v19 = vshrl.u32 (!%p144_p3), %v347_v17, 7  ;;  %v710_v32 = vand.u32 (!%p144_p3), 127, %v347_v17 }
   0xa   : > { %v349_v22 = vsub.s32 (!%p144_p3), 0, %v348_v19  ;;  %v713_v33 = vcvt.s32.f32 (!%p144_p3), %v710_v32  ;;  %vm373_vm9 = vcmp.eq.s32.totalorder (!%p144_p3), %v710_v32, 0  ;;  %vm398_vm11 = vcmp.eq.s32.totalorder (!%p144_p3), %v710_v32, 1 }
   0xe   : > { %s784_s9 = smov (!%p179_p4, %s647_s9), 1 }
   0xf   : > { %s690_s13 = sshll.u32 %s784_s9, 4 }
  0x10   : > { %s192_s16 = scalar_lea.vmem %s777_s1, %s690_s13  ;;  %s186_s19 = scalar_lea.vmem %s776_s0, %s690_s13 }
  0x11   : > { %v205_v0 = vld [vmem:[%s192_s16] sm:$0xff]  ;;  %v206_v1 = vld [vmem:[%s192_s16 + $0x8] sm:$0xff]  ;;  %s201_s22 = scalar_lea.vmem %s778_s2, %s690_s13 }
  0x12   : > { %v303_v2 = vmul.f32 %v205_v0, %v205_v0  ;;  %v304_v3 = vmul.f32 %v206_v1, %v206_v1  ;;  %v586_v4 = vpack.c.bf16 %v206_v1, %v205_v0  ;;  %v203_v5 = vld [vmem:[%s186_s19] sm:$0xff]  ;;  %v204_v6 = vld [vmem:[%s186_s19 + $0x8] sm:$0xff] }
  0x13   : > { %583 = vmatprep.mubr.msk.f32.mxu0 %vm207_vm0, %v203_v5  ;;  %v295_v7 = vmul.f32 %v203_v5, %v203_v5  ;;  %v296_v8 = vmul.f32 %v204_v6, %v204_v6 }
  0x14   : > { %v305_v9 = vsel %vm207_vm0, %v303_v2, 0.0  ;;  %588 = vmatprep.subr.msk.bf16.mxu0 %vm587_vm1, %v586_v4  ;;  %v308_v11 = vsel %vm207_vm0, %v304_v3, 0.0 }
  0x15   : > { %306 = vadd.xlane.f32.xlu0 %v305_v9  ;;  %591 = vmatpush3.bf16.xpose.msk.msra.mxu0 %vm587_vm1, %v586_v4  ;;  %v297_v10 = vsel %vm207_vm0, %v295_v7, 0.0  ;;  %v300_v12 = vsel %vm207_vm0, %v296_v8, 0.0 }
  0x16   : > { %298 = vadd.xlane.f32.xlu1 %v297_v10 }
  0x19   : > { %309 = vadd.xlane.f32.xlu0 %v308_v11 }
  0x1a   : > { %301 = vadd.xlane.f32.xlu1 %v300_v12 }
  0x1c   : > { %584 = vmatmul.mubr.msk.f32.vlgmr.msra.gmra.mrb[0].mxu0 %vm207_vm0, %v204_v6  ;;  %vm423_vm0 = vcmp.eq.s32.totalorder %v710_v32, 2 }
  0xa2   : > { %v307_v13 = vpop.xlane.xlu0 %306 }
  0xa3   : > { %315 = vxpose.xlu0.b32.start [1/2] (short) (narrow) %v307_v13, 8  ;;  %v299_v18 = vpop.xlane.xlu1 %298 }
  0xa6   : > { %v310_v14 = vpop.xlane.xlu0 %309 }
  0xa7   : > { %316 = vxpose.xlu0.b32.end [2/2] (short) (narrow) %v310_v14, 8  ;;  %v302_v23 = vpop.xlane.xlu1 %301 }
  0xef   : > { %v585_v15 = vpop.f32.mrb[0].mxu0 }
  0xf0   : > { %v286_v16 = vpop.f32.mrb[1].mxu0  ;;  %v312_v21 = vmul.f32 2.0, %v585_v15 }
  0xf1   : > { %v311_v20 = vmul.f32 2.0, %v286_v16 }
  0xf2   : > { %v314_v26 = vsub.f32 %v312_v21, %v302_v23 }
  0xf3   : > { %v313_v24 = vsub.f32 %v311_v20, %v299_v18 }
 0x123   : > { %v331_v25 = vpop.trf.xlu0 }
 0x124   : > { %v350_v27 = vrot.slane %v331_v25, %v349_v22 }
 0x126   : > { %v351_v28 = vsub.f32 %v313_v24, %v350_v27  ;;  %v352_v29 = vsub.f32 %v314_v26, %v350_v27 }
 0x128   : > { %v357_v30 = vsel %vm356_vm2, %v351_v28, -inf  ;;  %v360_v31 = vsel %vm356_vm2, %v352_v29, -inf }
 0x129   : > { %358 = vmax.xlane.f32.xlu1 %v357_v30 }
 0x12d   : > { %361 = vmax.xlane.f32.xlu1 %v360_v31 }
 0x1b6   : > { %v359_v34 = vpop.xlane.xlu1 %358 }
 0x1b7   : > { %vm363_vm3 = vcmp.ge.f32.partialorder %v351_v28, %v359_v34 }
 0x1b8   : > { %v365_v35 = vsel %vm363_vm3, %v713_v33, 16.0 }
 0x1b9   : > { %v367_v36 = vsel %vm356_vm2, %v365_v35, inf }
 0x1ba   : > { %368 = vmin.xlane.f32.xlu1 %v367_v36  ;;  %v362_v37 = vpop.xlane.xlu1 %361 }
 0x1bb   : > { %vm364_vm4 = vcmp.ge.f32.partialorder %v352_v29, %v362_v37 }
 0x1bc   : > { %v366_v38 = vsel %vm364_vm4, %v713_v33, 16.0 }
 0x1bd   : > { %v370_v39 = vsel %vm356_vm2, %v366_v38, inf }
 0x1be   : > { %371 = vmin.xlane.f32.xlu1 %v370_v39 }
 0x247   : > { %v369_v40 = vpop.xlane.xlu1 %368 }
 0x248   : > { %vm378_vm5 = vcmp.eq.f32.partialorder %v713_v33, %v369_v40  ;;  %v592_v52 = vtrunc.f32 %v369_v40 }
 0x249   : > { %v380_v41 = vsel %vm378_vm5, -inf, %v351_v28  ;;  %vm448_vm5 = vcmp.eq.s32.totalorder %v710_v32, 3 }
 0x24a   : > { %v382_v42 = vsel %vm356_vm2, %v380_v41, -inf  ;;  %v593_v53 = vcvt.f32.s32 %v592_v52 }
 0x24b   : > { %383 = vmax.xlane.f32.xlu1 %v382_v42  ;;  %v721_v43 = vpop.xlane.xlu1 %371 }
 0x24c   : > { %vm379_vm6 = vcmp.eq.f32.partialorder %v713_v33, %v721_v43  ;;  %v376_v59 = vsel %vm373_vm9, %v593_v53, 0  ;;  %v594_v21 = vtrunc.f32 %v721_v43 }
 0x24d   : > { %v381_v44 = vsel %vm379_vm6, -inf, %v352_v29  ;;  %vm453_vm6 = vcmask 31744  }
 0x24e   : > { %v385_v45 = vsel %vm356_vm2, %v381_v44, -inf  ;;  %v595_v26 = vcvt.f32.s32 %v594_v21 }
 0x24f   : > { %386 = vmax.xlane.f32.xlu1 %v385_v45 }
 0x250   : > { %v377_v34 = vsel %vm373_vm9, %v595_v26, 0 }
 0x2d8   : > { %v384_v46 = vpop.xlane.xlu1 %383 }
 0x2d9   : > { %vm388_vm7 = vcmp.ge.f32.partialorder %v380_v41, %v384_v46 }
 0x2da   : > { %v390_v47 = vsel %vm388_vm7, %v713_v33, 16.0 }
 0x2db   : > { %v392_v48 = vsel %vm356_vm2, %v390_v47, inf }
 0x2dc   : > { %393 = vmin.xlane.f32.xlu1 %v392_v48  ;;  %v387_v49 = vpop.xlane.xlu1 %386 }
 0x2dd   : > { %vm389_vm8 = vcmp.ge.f32.partialorder %v381_v44, %v387_v49 }
 0x2de   : > { %v391_v50 = vsel %vm389_vm8, %v713_v33, 16.0 }
 0x2df   : > { %v395_v51 = vsel %vm356_vm2, %v391_v50, inf }
 0x2e0   : > { %396 = vmin.xlane.f32.xlu1 %v395_v51 }
 0x369   : > { %v394_v54 = vpop.xlane.xlu1 %393 }
 0x36a   : > { %v596_v55 = vtrunc.f32 %v394_v54  ;;  %vm403_vm10 = vcmp.eq.f32.partialorder %v713_v33, %v394_v54 }
 0x36b   : > { %v405_v56 = vsel %vm403_vm10, -inf, %v380_v41 }
 0x36c   : > { %v597_v57 = vcvt.f32.s32 %v596_v55  ;;  %v407_v58 = vsel %vm356_vm2, %v405_v56, -inf }
 0x36d   : > { %408 = vmax.xlane.f32.xlu1 %v407_v58  ;;  %v397_v60 = vpop.xlane.xlu1 %396 }
 0x36e   : > { %v401_v61 = vsel %vm398_vm11, %v597_v57, %v376_v59  ;;  %vm404_vm12 = vcmp.eq.f32.partialorder %v713_v33, %v397_v60  ;;  %v598_v22 = vtrunc.f32 %v397_v60 }
 0x36f   : > { %v406_v62 = vsel %vm404_vm12, -inf, %v381_v44 }
 0x370   : > { %v410_v63 = vsel %vm356_vm2, %v406_v62, -inf  ;;  %v599_v27 = vcvt.f32.s32 %v598_v22 }
 0x371   : > { %411 = vmax.xlane.f32.xlu1 %v410_v63 }
 0x372   : > { %v402_v35 = vsel %vm398_vm11, %v599_v27, %v377_v34 }
 0x3fa   : > { %v409_v0 = vpop.xlane.xlu1 %408 }
 0x3fb   : > { %vm413_vm13 = vcmp.ge.f32.partialorder %v405_v56, %v409_v0 }
 0x3fc   : > { %v415_v1 = vsel %vm413_vm13, %v713_v33, 16.0 }
 0x3fd   : > { %v417_v2 = vsel %vm356_vm2, %v415_v1, inf }
 0x3fe   : > { %418 = vmin.xlane.f32.xlu1 %v417_v2  ;;  %v412_v3 = vpop.xlane.xlu1 %411 }
 0x3ff   : > { %vm414_vm14 = vcmp.ge.f32.partialorder %v406_v62, %v412_v3 }
 0x400   : > { %v416_v4 = vsel %vm414_vm14, %v713_v33, 16.0 }
 0x401   : > { %v420_v5 = vsel %vm356_vm2, %v416_v4, inf }
 0x402   : > { %421 = vmin.xlane.f32.xlu1 %v420_v5 }
 0x48b   : > { %v419_v6 = vpop.xlane.xlu1 %418 }
 0x48c   : > { %v600_v7 = vtrunc.f32 %v419_v6  ;;  %vm428_vm15 = vcmp.eq.f32.partialorder %v713_v33, %v419_v6 }
 0x48d   : > { %v430_v8 = vsel %vm428_vm15, -inf, %v405_v56 }
 0x48e   : > { %v601_v9 = vcvt.f32.s32 %v600_v7  ;;  %v432_v10 = vsel %vm356_vm2, %v430_v8, -inf }
 0x48f   : > { %433 = vmax.xlane.f32.xlu1 %v432_v10  ;;  %v422_v11 = vpop.xlane.xlu1 %421 }
 0x490   : > { %v426_v12 = vsel %vm423_vm0, %v601_v9, %v401_v61  ;;  %vm429_vm1 = vcmp.eq.f32.partialorder %v713_v33, %v422_v11  ;;  %v602_v23 = vtrunc.f32 %v422_v11 }
 0x491   : > { %v431_v13 = vsel %vm429_vm1, -inf, %v406_v62 }
 0x492   : > { %v435_v14 = vsel %vm356_vm2, %v431_v13, -inf  ;;  %v603_v29 = vcvt.f32.s32 %v602_v23 }
 0x493   : > { %436 = vmax.xlane.f32.xlu0 %v435_v14 }
 0x494   : > { %v427_v37 = vsel %vm423_vm0, %v603_v29, %v402_v35 }
 0x51c   : > { %v434_v15 = vpop.xlane.xlu1 %433 }
 0x51d   : > { %vm438_vm3 = vcmp.ge.f32.partialorder %v430_v8, %v434_v15 }
 0x51e   : > { %v440_v16 = vsel %vm438_vm3, %v713_v33, 16.0 }
 0x51f   : > { %v442_v17 = vsel %vm356_vm2, %v440_v16, inf }
 0x520   : > { %v437_v18 = vpop.xlane.xlu0 %436  ;;  %443 = vmin.xlane.f32.xlu1 %v442_v17 }
 0x521   : > { %vm439_vm4 = vcmp.ge.f32.partialorder %v431_v13, %v437_v18 }
 0x522   : > { %v441_v19 = vsel %vm439_vm4, %v713_v33, 16.0 }
 0x523   : > { %v445_v20 = vsel %vm356_vm2, %v441_v19, inf }
 0x524   : > { %446 = vmin.xlane.f32.xlu1 %v445_v20 }
 0x5ad   : > { %v444_v24 = vpop.xlane.xlu1 %443 }
 0x5ae   : > { %v604_v25 = vtrunc.f32 %v444_v24 }
 0x5b0   : > { %v605_v28 = vcvt.f32.s32 %v604_v25 }
 0x5b1   : > { %v447_v30 = vpop.xlane.xlu1 %446 }
 0x5b2   : > { %v451_v31 = vsel %vm448_vm5, %v605_v28, %v426_v12  ;;  %v606_v33 = vtrunc.f32 %v447_v30 }
 0x5b3   : > { %454 = vst.msk [vmem:[%s201_s22] sm:$0xff] %vm453_vm6, %v451_v31 }
 0x5b4   : > { %v607_v36 = vcvt.f32.s32 %v606_v33 }
 0x5b6   : > { %v452_v38 = vsel %vm448_vm5, %v607_v36, %v427_v37 }
 0x5b7   : > { %455 = vst.msk [vmem:[%s201_s22 + $0x8] sm:$0xff] %vm453_vm6, %v452_v38 }
 0x5b8 PF: > { %s12_s11 = sadd.s32 1, %s655_s11   ;;  %s779_s9 = smov %s651_s10 }
 0x5b9   : > { %p9_p5 = scmp.ge.s32.totalorder %s12_s11, 4   ;;  %s780_s10 = smov %s782_s12 }
 0x5bb   :  { %11 = sbr.rel (!%p9_p5) target bundleno = 2 (0x2), region = 61 }

// kernel: dgcnn_forward.11
= control target key start
LH: loop header
LB: loop body
LE: loop exit
PB: predicated region body
PF: predicated region fallthrough
CT: control target
= control target key end

     0   :  { %s672_s9 = smov 0   ;;  %s674_s10 = smov 0   ;;  %s776_s0 = inlined_call_operand.vmem [shape: f32[2,16,64], index: 0, kind: input, shape index: {}, may-alias: {0,1}]   ;;  %s777_s1 = inlined_call_operand.vmem [shape: f32[2,16,64], index: 1, kind: input, shape index: {}, may-alias: {0,1}]   ;;  %s778_s2 = inlined_call_operand.vmem [shape: s32[2,16,4], index: 2, kind: output, shape index: {}]  }
   0x1   :  { %s676_s11 = smov 0  }
   0x2 LB: > { %s24_s12 = sadd.s32 1, %s651_s10  ;;  %p559_p0 = scmp.ge.s32.totalorder %s655_s11, 1  ;;  %s655_s11 = sphi %s676_s11, %s12_s11   ;;  %s651_s10 = sphi %s674_s10, %s780_s10   ;;  %s647_s9 = sphi %s672_s9, %s779_s9  }
   0x3   : > { %p26_p1 = scmp.ge.s32.totalorder %s24_s12, 2  ;;  %p143_p2 = scmp.lt.s32.totalorder %s655_s11, 3 }
   0x5   : > { %s782_s12 = smov (%p26_p1, %s24_s12), 0  ;;  %p144_p3 = pnand %p559_p0, %p143_p2 }
   0x6   : > { %p179_p4 = scmp.lt.s32.totalorder (!%p144_p3), %s647_s9, 1  ;;  %vm207_vm0 = vcmask (!%p144_p3), 523264   ;;  %v347_v17 = vlaneseq (!%p144_p3)  ;;  %vm356_vm2 = vcmask (!%p144_p3), 130048  }
   0x7   : > { %147 = sbr.rel (%p144_p3) target bundleno = 1464 (0x5b8), region = 28  ;;  %vm587_vm1 = vmpackc.low (!%p144_p3), %vm207_vm0, %vm207_vm0 }
   0x8   : > { %v348_v19 = vshrl.u32 (!%p144_p3), %v347_v17, 7  ;;  %v710_v32 = vand.u32 (!%p144_p3), 127, %v347_v17 }
   0xa   : > { %v349_v22 = vsub.s32 (!%p144_p3), 0, %v348_v19  ;;  %v713_v33 = vcvt.s32.f32 (!%p144_p3), %v710_v32  ;;  %vm373_vm9 = vcmp.eq.s32.totalorder (!%p144_p3), %v710_v32, 0  ;;  %vm398_vm11 = vcmp.eq.s32.totalorder (!%p144_p3), %v710_v32, 1 }
   0xe   : > { %s784_s9 = smov (!%p179_p4, %s647_s9), 1 }
   0xf   : > { %s690_s13 = sshll.u32 %s784_s9, 4 }
  0x10   : > { %s192_s16 = scalar_lea.vmem %s777_s1, %s690_s13  ;;  %s186_s19 = scalar_lea.vmem %s776_s0, %s690_s13 }
  0x11   : > { %v205_v0 = vld [vmem:[%s192_s16] sm:$0xff]  ;;  %v206_v1 = vld [vmem:[%s192_s16 + $0x8] sm:$0xff]  ;;  %s201_s22 = scalar_lea.vmem %s778_s2, %s690_s13 }
  0x12   : > { %v303_v2 = vmul.f32 %v205_v0, %v205_v0  ;;  %v304_v3 = vmul.f32 %v206_v1, %v206_v1  ;;  %v586_v4 = vpack.c.bf16 %v206_v1, %v205_v0  ;;  %v203_v5 = vld [vmem:[%s186_s19] sm:$0xff]  ;;  %v204_v6 = vld [vmem:[%s186_s19 + $0x8] sm:$0xff] }
  0x13   : > { %583 = vmatprep.mubr.msk.f32.mxu0 %vm207_vm0, %v203_v5  ;;  %v295_v7 = vmul.f32 %v203_v5, %v203_v5  ;;  %v296_v8 = vmul.f32 %v204_v6, %v204_v6 }
  0x14   : > { %v305_v9 = vsel %vm207_vm0, %v303_v2, 0.0  ;;  %588 = vmatprep.subr.msk.bf16.mxu0 %vm587_vm1, %v586_v4  ;;  %v308_v11 = vsel %vm207_vm0, %v304_v3, 0.0 }
  0x15   : > { %306 = vadd.xlane.f32.xlu0 %v305_v9  ;;  %591 = vmatpush3.bf16.xpose.msk.msra.mxu0 %vm587_vm1, %v586_v4  ;;  %v297_v10 = vsel %vm207_vm0, %v295_v7, 0.0  ;;  %v300_v12 = vsel %vm207_vm0, %v296_v8, 0.0 }
  0x16   : > { %298 = vadd.xlane.f32.xlu1 %v297_v10 }
  0x19   : > { %309 = vadd.xlane.f32.xlu0 %v308_v11 }
  0x1a   : > { %301 = vadd.xlane.f32.xlu1 %v300_v12 }
  0x1c   : > { %584 = vmatmul.mubr.msk.f32.vlgmr.msra.gmra.mrb[0].mxu0 %vm207_vm0, %v204_v6  ;;  %vm423_vm0 = vcmp.eq.s32.totalorder %v710_v32, 2 }
  0xa2   : > { %v307_v13 = vpop.xlane.xlu0 %306 }
  0xa3   : > { %315 = vxpose.xlu0.b32.start [1/2] (short) (narrow) %v307_v13, 8  ;;  %v299_v18 = vpop.xlane.xlu1 %298 }
  0xa6   : > { %v310_v14 = vpop.xlane.xlu0 %309 }
  0xa7   : > { %316 = vxpose.xlu0.b32.end [2/2] (short) (narrow) %v310_v14, 8  ;;  %v302_v23 = vpop.xlane.xlu1 %301 }
  0xef   : > { %v585_v15 = vpop.f32.mrb[0].mxu0 }
  0xf0   : > { %v286_v16 = vpop.f32.mrb[1].mxu0  ;;  %v312_v21 = vmul.f32 2.0, %v585_v15 }
  0xf1   : > { %v311_v20 = vmul.f32 2.0, %v286_v16 }
  0xf2   : > { %v314_v26 = vsub.f32 %v312_v21, %v302_v23 }
  0xf3   : > { %v313_v24 = vsub.f32 %v311_v20, %v299_v18 }
 0x123   : > { %v331_v25 = vpop.trf.xlu0 }
 0x124   : > { %v350_v27 = vrot.slane %v331_v25, %v349_v22 }
 0x126   : > { %v351_v28 = vsub.f32 %v313_v24, %v350_v27  ;;  %v352_v29 = vsub.f32 %v314_v26, %v350_v27 }
 0x128   : > { %v357_v30 = vsel %vm356_vm2, %v351_v28, -inf  ;;  %v360_v31 = vsel %vm356_vm2, %v352_v29, -inf }
 0x129   : > { %358 = vmax.xlane.f32.xlu1 %v357_v30 }
 0x12d   : > { %361 = vmax.xlane.f32.xlu1 %v360_v31 }
 0x1b6   : > { %v359_v34 = vpop.xlane.xlu1 %358 }
 0x1b7   : > { %vm363_vm3 = vcmp.ge.f32.partialorder %v351_v28, %v359_v34 }
 0x1b8   : > { %v365_v35 = vsel %vm363_vm3, %v713_v33, 16.0 }
 0x1b9   : > { %v367_v36 = vsel %vm356_vm2, %v365_v35, inf }
 0x1ba   : > { %368 = vmin.xlane.f32.xlu1 %v367_v36  ;;  %v362_v37 = vpop.xlane.xlu1 %361 }
 0x1bb   : > { %vm364_vm4 = vcmp.ge.f32.partialorder %v352_v29, %v362_v37 }
 0x1bc   : > { %v366_v38 = vsel %vm364_vm4, %v713_v33, 16.0 }
 0x1bd   : > { %v370_v39 = vsel %vm356_vm2, %v366_v38, inf }
 0x1be   : > { %371 = vmin.xlane.f32.xlu1 %v370_v39 }
 0x247   : > { %v369_v40 = vpop.xlane.xlu1 %368 }
 0x248   : > { %vm378_vm5 = vcmp.eq.f32.partialorder %v713_v33, %v369_v40  ;;  %v592_v52 = vtrunc.f32 %v369_v40 }
 0x249   : > { %v380_v41 = vsel %vm378_vm5, -inf, %v351_v28  ;;  %vm448_vm5 = vcmp.eq.s32.totalorder %v710_v32, 3 }
 0x24a   : > { %v382_v42 = vsel %vm356_vm2, %v380_v41, -inf  ;;  %v593_v53 = vcvt.f32.s32 %v592_v52 }
 0x24b   : > { %383 = vmax.xlane.f32.xlu1 %v382_v42  ;;  %v721_v43 = vpop.xlane.xlu1 %371 }
 0x24c   : > { %vm379_vm6 = vcmp.eq.f32.partialorder %v713_v33, %v721_v43  ;;  %v376_v59 = vsel %vm373_vm9, %v593_v53, 0  ;;  %v594_v21 = vtrunc.f32 %v721_v43 }
 0x24d   : > { %v381_v44 = vsel %vm379_vm6, -inf, %v352_v29  ;;  %vm453_vm6 = vcmask 31744  }
 0x24e   : > { %v385_v45 = vsel %vm356_vm2, %v381_v44, -inf  ;;  %v595_v26 = vcvt.f32.s32 %v594_v21 }
 0x24f   : > { %386 = vmax.xlane.f32.xlu1 %v385_v45 }
 0x250   : > { %v377_v34 = vsel %vm373_vm9, %v595_v26, 0 }
 0x2d8   : > { %v384_v46 = vpop.xlane.xlu1 %383 }
 0x2d9   : > { %vm388_vm7 = vcmp.ge.f32.partialorder %v380_v41, %v384_v46 }
 0x2da   : > { %v390_v47 = vsel %vm388_vm7, %v713_v33, 16.0 }
 0x2db   : > { %v392_v48 = vsel %vm356_vm2, %v390_v47, inf }
 0x2dc   : > { %393 = vmin.xlane.f32.xlu1 %v392_v48  ;;  %v387_v49 = vpop.xlane.xlu1 %386 }
 0x2dd   : > { %vm389_vm8 = vcmp.ge.f32.partialorder %v381_v44, %v387_v49 }
 0x2de   : > { %v391_v50 = vsel %vm389_vm8, %v713_v33, 16.0 }
 0x2df   : > { %v395_v51 = vsel %vm356_vm2, %v391_v50, inf }
 0x2e0   : > { %396 = vmin.xlane.f32.xlu1 %v395_v51 }
 0x369   : > { %v394_v54 = vpop.xlane.xlu1 %393 }
 0x36a   : > { %v596_v55 = vtrunc.f32 %v394_v54  ;;  %vm403_vm10 = vcmp.eq.f32.partialorder %v713_v33, %v394_v54 }
 0x36b   : > { %v405_v56 = vsel %vm403_vm10, -inf, %v380_v41 }
 0x36c   : > { %v597_v57 = vcvt.f32.s32 %v596_v55  ;;  %v407_v58 = vsel %vm356_vm2, %v405_v56, -inf }
 0x36d   : > { %408 = vmax.xlane.f32.xlu1 %v407_v58  ;;  %v397_v60 = vpop.xlane.xlu1 %396 }
 0x36e   : > { %v401_v61 = vsel %vm398_vm11, %v597_v57, %v376_v59  ;;  %vm404_vm12 = vcmp.eq.f32.partialorder %v713_v33, %v397_v60  ;;  %v598_v22 = vtrunc.f32 %v397_v60 }
 0x36f   : > { %v406_v62 = vsel %vm404_vm12, -inf, %v381_v44 }
 0x370   : > { %v410_v63 = vsel %vm356_vm2, %v406_v62, -inf  ;;  %v599_v27 = vcvt.f32.s32 %v598_v22 }
 0x371   : > { %411 = vmax.xlane.f32.xlu1 %v410_v63 }
 0x372   : > { %v402_v35 = vsel %vm398_vm11, %v599_v27, %v377_v34 }
 0x3fa   : > { %v409_v0 = vpop.xlane.xlu1 %408 }
 0x3fb   : > { %vm413_vm13 = vcmp.ge.f32.partialorder %v405_v56, %v409_v0 }
 0x3fc   : > { %v415_v1 = vsel %vm413_vm13, %v713_v33, 16.0 }
 0x3fd   : > { %v417_v2 = vsel %vm356_vm2, %v415_v1, inf }
 0x3fe   : > { %418 = vmin.xlane.f32.xlu1 %v417_v2  ;;  %v412_v3 = vpop.xlane.xlu1 %411 }
 0x3ff   : > { %vm414_vm14 = vcmp.ge.f32.partialorder %v406_v62, %v412_v3 }
 0x400   : > { %v416_v4 = vsel %vm414_vm14, %v713_v33, 16.0 }
 0x401   : > { %v420_v5 = vsel %vm356_vm2, %v416_v4, inf }
 0x402   : > { %421 = vmin.xlane.f32.xlu1 %v420_v5 }
 0x48b   : > { %v419_v6 = vpop.xlane.xlu1 %418 }
 0x48c   : > { %v600_v7 = vtrunc.f32 %v419_v6  ;;  %vm428_vm15 = vcmp.eq.f32.partialorder %v713_v33, %v419_v6 }
 0x48d   : > { %v430_v8 = vsel %vm428_vm15, -inf, %v405_v56 }
 0x48e   : > { %v601_v9 = vcvt.f32.s32 %v600_v7  ;;  %v432_v10 = vsel %vm356_vm2, %v430_v8, -inf }
 0x48f   : > { %433 = vmax.xlane.f32.xlu1 %v432_v10  ;;  %v422_v11 = vpop.xlane.xlu1 %421 }
 0x490   : > { %v426_v12 = vsel %vm423_vm0, %v601_v9, %v401_v61  ;;  %vm429_vm1 = vcmp.eq.f32.partialorder %v713_v33, %v422_v11  ;;  %v602_v23 = vtrunc.f32 %v422_v11 }
 0x491   : > { %v431_v13 = vsel %vm429_vm1, -inf, %v406_v62 }
 0x492   : > { %v435_v14 = vsel %vm356_vm2, %v431_v13, -inf  ;;  %v603_v29 = vcvt.f32.s32 %v602_v23 }
 0x493   : > { %436 = vmax.xlane.f32.xlu0 %v435_v14 }
 0x494   : > { %v427_v37 = vsel %vm423_vm0, %v603_v29, %v402_v35 }
 0x51c   : > { %v434_v15 = vpop.xlane.xlu1 %433 }
 0x51d   : > { %vm438_vm3 = vcmp.ge.f32.partialorder %v430_v8, %v434_v15 }
 0x51e   : > { %v440_v16 = vsel %vm438_vm3, %v713_v33, 16.0 }
 0x51f   : > { %v442_v17 = vsel %vm356_vm2, %v440_v16, inf }
 0x520   : > { %v437_v18 = vpop.xlane.xlu0 %436  ;;  %443 = vmin.xlane.f32.xlu1 %v442_v17 }
 0x521   : > { %vm439_vm4 = vcmp.ge.f32.partialorder %v431_v13, %v437_v18 }
 0x522   : > { %v441_v19 = vsel %vm439_vm4, %v713_v33, 16.0 }
 0x523   : > { %v445_v20 = vsel %vm356_vm2, %v441_v19, inf }
 0x524   : > { %446 = vmin.xlane.f32.xlu1 %v445_v20 }
 0x5ad   : > { %v444_v24 = vpop.xlane.xlu1 %443 }
 0x5ae   : > { %v604_v25 = vtrunc.f32 %v444_v24 }
 0x5b0   : > { %v605_v28 = vcvt.f32.s32 %v604_v25 }
 0x5b1   : > { %v447_v30 = vpop.xlane.xlu1 %446 }
 0x5b2   : > { %v451_v31 = vsel %vm448_vm5, %v605_v28, %v426_v12  ;;  %v606_v33 = vtrunc.f32 %v447_v30 }
 0x5b3   : > { %454 = vst.msk [vmem:[%s201_s22] sm:$0xff] %vm453_vm6, %v451_v31 }
 0x5b4   : > { %v607_v36 = vcvt.f32.s32 %v606_v33 }
 0x5b6   : > { %v452_v38 = vsel %vm448_vm5, %v607_v36, %v427_v37 }
 0x5b7   : > { %455 = vst.msk [vmem:[%s201_s22 + $0x8] sm:$0xff] %vm453_vm6, %v452_v38 }
 0x5b8 PF: > { %s12_s11 = sadd.s32 1, %s655_s11   ;;  %s779_s9 = smov %s651_s10 }
 0x5b9   : > { %p9_p5 = scmp.ge.s32.totalorder %s12_s11, 4   ;;  %s780_s10 = smov %s782_s12 }
 0x5bb   :  { %11 = sbr.rel (!%p9_p5) target bundleno = 2 (0x2), region = 61 }

// kernel: dgcnn_forward.10
= control target key start
LH: loop header
LB: loop body
LE: loop exit
PB: predicated region body
PF: predicated region fallthrough
CT: control target
= control target key end

     0   :  { %s1459_s24 = smov 0   ;;  %s1461_s25 = smov 0   ;;  %s1688_s0 = inlined_call_operand.vmem [shape: bf16[2,64,3], index: 0, kind: input, shape index: {}]   ;;  %s1689_s1 = inlined_call_operand.vmem [shape: bf16[2,16,3], index: 1, kind: input, shape index: {}]   ;;  %s1690_s2 = inlined_call_operand.vmem [shape: bf16[3,64], index: 2, kind: input, shape index: {}]   ;;  %s1691_s3 = inlined_call_operand.vmem [shape: bf16[3,64], index: 3, kind: input, shape index: {}]   ;;  %s1692_s4 = inlined_call_operand.vmem [shape: f32[1,64], index: 4, kind: input, shape index: {}]   ;;  %s1693_s5 = inlined_call_operand.vmem [shape: f32[1,64], index: 5, kind: input, shape index: {}]   ;;  %s1694_s6 = inlined_call_operand.vmem [shape: f32[2,16,64], index: 6, kind: output, shape index: {0}]   ;;  %s1695_s7 = inlined_call_operand.vmem [shape: bf16[2,16,64], index: 7, kind: output, shape index: {1}]  }
   0x1   :  { %s1463_s26 = smov 0  }
   0x2 LB: > { %s30_s27 = sadd.s32 1, %s1409_s25  ;;  %p1276_p0 = scmp.ge.s32.totalorder %s1413_s26, 1  ;;  %s1413_s26 = sphi %s1463_s26, %s18_s26   ;;  %s1409_s25 = sphi %s1461_s25, %s1697_s25   ;;  %s1405_s24 = sphi %s1459_s24, %s1696_s24  }
   0x3   : > { %p32_p1 = scmp.ge.s32.totalorder %s30_s27, 2  ;;  %p280_p2 = scmp.lt.s32.totalorder %s1413_s26, 3 }
   0x5   : > { %s1699_s27 = smov (%p32_p1, %s30_s27), 0  ;;  %p281_p3 = pnand %p1276_p0, %p280_p2 }
   0x6   : > { %v387_v0 = vld [vmem:[%s1690_s2] sm:$0x3] (!%p281_p3)  ;;  %vm421_vm0 = vcmask (!%p281_p3), 1040384   ;;  %vm422_vm1 = vcmask (!%p281_p3), 1041408   ;;  %v1415_v1 = vmov (!%p281_p3), 0.0   ;;  %v1416_v2 = vmov (!%p281_p3), 65535  }
   0x7   : > { %284 = sbr.rel (%p281_p3) target bundleno = 329 (0x149), region = 44  ;;  %1352 = vmatprep.subr.bf16.mxu1 (!%p281_p3), %v1415_v1  ;;  %v423_v3 = vsel (!%p281_p3), %vm421_vm0, 4294967295, %v1416_v2  ;;  %v495_v4 = vld [vmem:[%s1691_s3] sm:$0x3] (!%p281_p3)  ;;  %p339_p4 = scmp.lt.s32.totalorder (!%p281_p3), %s1405_s24, 1  ;;  %vm1417_vm2 = vmmov (!%p281_p3), 0   ;;  %v578_v15 = vlaneseq (!%p281_p3) }
   0x8   : > { %v424_v5 = vsel (!%p281_p3), %vm422_vm1, %v423_v3, 0  ;;  %1354 = vmatprep.mubr.msk.bf16.mxu1 (!%p281_p3), %vm1417_vm2, %v1415_v1  ;;  %vm408_vm3 = vcmask (!%p281_p3), 23552   ;;  %v1418_v13 = vmov (!%p281_p3), 1966171168   ;;  %v1510_v38 = vld [vmem:[%s1692_s4] ss:$0 sm:$0xff] (!%p281_p3) }
   0x9   : > { %v426_v6 = vand.u32 (!%p281_p3), %v424_v5, %v387_v0  ;;  %v505_v7 = vand.u32 (!%p281_p3), %v495_v4, %v424_v5  ;;  %v576_v14 = vunpack.c.l.s4 (!%p281_p3), %v1418_v13  ;;  %v579_v17 = vshrl.u32 (!%p281_p3), %v578_v15, 7  ;;  %v1520_v47 = vld [vmem:[%s1693_s5] ss:$0 sm:$0xff] (!%p281_p3) }
   0xa   : > { %vm862_vm4 = vcmask (!%p281_p3), 519168   ;;  %vm991_vm11 = vcmask (!%p281_p3), 1041409   ;;  %vm993_vm14 = vcmask (!%p281_p3), 1042434   ;;  %vm995_vm15 = vcmask (!%p281_p3), 1043459  }
   0xb   : > { %1342 = vmatprep.subr.bf16.mxu0 (!%p281_p3), %v426_v6  ;;  %1353 = vmatpush3.bf16.msra.mxu1 (!%p281_p3), %v505_v7  ;;  %v577_v16 = vunpack.c.0.s8 (!%p281_p3), %v576_v14  ;;  %v1498_v24 = vsub.s32 (!%p281_p3), 0, %v579_v17  ;;  %vm997_vm0 = vcmask (!%p281_p3), 1044484   ;;  %vm999_vm1 = vcmask (!%p281_p3), 1045509  }
   0xc   : > { %1343 = vmatpush3.bf16.msra.mxu0 (!%p281_p3), %v426_v6  ;;  %vm1001_vm2 = vcmask (!%p281_p3), 1046534  }
   0xd   : > { %v1495_v18 = vsub.s32 (!%p281_p3), %v577_v16, %v579_v17 }
   0xe   : > { %s1701_s24 = smov (!%p339_p4, %s1405_s24), 1 }
   0xf   : > { %s1315_s9 = sshll.u32 %s1701_s24, 5  ;;  %s1316_s13 = sshll.u32 %s1701_s24, 3 }
  0x10   : > { %s346_s12 = scalar_lea.vmem %s1688_s0, %s1315_s9  ;;  %s356_s16 = scalar_lea.vmem %s1689_s1, %s1316_s13 }
  0x11   : > { %v1386_v8 = vld [vmem:[%s346_s12] sm:$0xff]   ;;  %v1388_v9 = vld [vmem:[%s346_s12 + $0x8] sm:$0xff]   ;;  %v1389_v11 = vld [vmem:[%s346_s12 + $0x10] sm:$0xff]   ;;  %s1317_s21 = sshll.u32 %s1701_s24, 4  ;;  %s1632_s8 = scalar_lea.vmem %s1695_s7, %s1316_s13 }
  0x12   : > { %1344 = vmatprep.mubr.msk.bf16.mxu0 %vm408_vm3, %v1386_v8  ;;  %v1387_v10 = vld [vmem:[%s356_s16] sm:$0xff]   ;;  %v1390_v12 = vld [vmem:[%s346_s12 + $0x18] sm:$0xff]   ;;  %s1610_s28 = scalar_lea.vmem %s1694_s6, %s1317_s21 }
  0x13   : > { %1345 = vmatmul.mubr.msk.bf16.vlgmr.msra.gmra.mrb[0].mxu0 %vm408_vm3, %v1388_v9  ;;  %1355 = vmatmul.mubr.msk.bf16.vlgmr.msra.gmra.mrb[0].mxu1 %vm408_vm3, %v1387_v10 }
  0x14   : > { %1348 = vmatprep.mubr.msk.bf16.mxu0 %vm408_vm3, %v1389_v11 }
  0x1b   : > { %1349 = vmatmul.mubr.msk.bf16.gmra.mrb[4].mxu0 %vm408_vm3, %v1390_v12  ;;  %vm1003_vm3 = vcmask 1047559  }
  0xe6   : > { %v1346_v19 = vpop.f32.mrb[0].mxu0  ;;  %v541_v20 = vpop.f32.mrb[0].mxu1 }
  0xe7   : > { %v462_v21 = vpop.f32.mrb[1].mxu0  ;;  %v574_v22 = vcombine.high %v541_v20, %v541_v20  ;;  %v581_v23 = vrot.slane %v541_v20, %v1495_v18  ;;  %v1356_v25 = vpop.f32.mrb[1].mxu1  ;;  %v558_v37 = vcombine.high %v1346_v19, %v1346_v19 }
  0xe8   : > { %v1347_v26 = vpop.f32.mrb[2].mxu0  ;;  %v1500_v27 = vpop.f32.mrb[2].mxu1  ;;  %v556_v39 = vcombine.high %v462_v21, %v462_v21 }
  0xe9   : > { %v465_v28 = vpop.f32.mrb[3].mxu0  ;;  %v588_v29 = vrot.slane %v574_v22, %v1495_v18  ;;  %v589_v30 = vcombine.high %v581_v23, %v581_v23  ;;  %v597_v31 = vrot.slane %v581_v23, %v1495_v18  ;;  %v1357_v32 = vpop.f32.mrb[3].mxu1  ;;  %v559_v40 = vcombine.high %v1347_v26, %v1347_v26 }
  0xea   : > { %v623_v48 = vcombine.high %v1500_v27, %v1500_v27  ;;  %v557_v50 = vcombine.high %v465_v28, %v465_v28 }
  0xeb   : > { %v590_v33 = vcombine.high %v588_v29, %v588_v29  ;;  %v611_v34 = vrot.slane %v589_v30, %v1495_v18  ;;  %v604_v35 = vrot.slane %v588_v29, %v1495_v18  ;;  %v675_v36 = vrot.slane %v597_v31, %v1498_v24 }
  0xec   : > { %v619_v41 = vcombine.high %v597_v31, %v597_v31 }
  0xed   : > { %v618_v42 = vrot.slane %v590_v33, %v1495_v18  ;;  %v691_v43 = vrot.slane %v604_v35, %v1498_v24  ;;  %v679_v44 = vrot.slane %v611_v34, %v1498_v24  ;;  %v752_v45 = vadd.f32 %v675_v36, %v462_v21 }
  0xee   : > { %v1515_v46 = vpop.f32.mrb[4].mxu0  ;;  %v620_v49 = vcombine.high %v604_v35, %v604_v35  ;;  %v621_v51 = vcombine.high %v611_v34, %v611_v34  ;;  %v683_v60 = vrot.slane %v619_v41, %v1498_v24 }
  0xef   : > { %v1524_v52 = vpop.f32.mrb[5].mxu0  ;;  %v695_v53 = vrot.slane %v618_v42, %v1498_v24  ;;  %v756_v54 = vadd.f32 %v1346_v19, %v691_v43  ;;  %v753_v55 = vadd.f32 %v679_v44, %v556_v39  ;;  %v775_v56 = vmul.f32 %v1510_v38, %v752_v45 }
  0xf0   : > { %v1528_v57 = vpop.f32.mrb[6].mxu0  ;;  %v622_v58 = vcombine.high %v618_v42, %v618_v42  ;;  %v699_v59 = vrot.slane %v620_v49, %v1498_v24  ;;  %v687_v61 = vrot.slane %v621_v51, %v1498_v24  ;;  %v754_v5 = vadd.f32 %v683_v60, %v465_v28 }
  0xf1   : > { %v1533_v62 = vpop.f32.mrb[7].mxu0  ;;  %v757_v63 = vadd.f32 %v695_v53, %v558_v37  ;;  %v779_v0 = vmul.f32 %v1510_v38, %v756_v54  ;;  %v776_v1 = vmul.f32 %v1510_v38, %v753_v55  ;;  %v798_v2 = vadd.f32 %v1520_v47, %v775_v56 }
  0xf2   : > { %v703_v3 = vrot.slane %v622_v58, %v1498_v24  ;;  %v758_v4 = vadd.f32 %v1347_v26, %v699_v59  ;;  %v755_v6 = vadd.f32 %v687_v61, %v557_v50  ;;  %v777_v13 = vmul.f32 %v1510_v38, %v754_v5 }
  0xf3   : > { %v780_v7 = vmul.f32 %v1510_v38, %v757_v63  ;;  %v802_v8 = vadd.f32 %v1520_v47, %v779_v0  ;;  %v799_v9 = vadd.f32 %v1520_v47, %v776_v1  ;;  %vm814_vm5 = vcmp.gt.f32.partialorder %v798_v2, 0.0 }
  0xf4   : > { %v830_v10 = vmul.f32 0.2, %v798_v2  ;;  %v759_v11 = vadd.f32 %v703_v3, %v559_v40  ;;  %v781_v12 = vmul.f32 %v1510_v38, %v758_v4  ;;  %v630_v43 = vrot.slane %v1500_v27, %v1495_v18 }
  0xf5   : > { %v803_v14 = vadd.f32 %v1520_v47, %v780_v7  ;;  %vm818_vm6 = vcmp.gt.f32.partialorder %v802_v8, 0.0  ;;  %v834_v15 = vmul.f32 0.2, %v802_v8  ;;  %vm815_vm7 = vcmp.gt.f32.partialorder %v799_v9, 0.0 }
  0xf6   : > { %v831_v16 = vmul.f32 0.2, %v799_v9  ;;  %v846_v17 = vsel %vm814_vm5, %v798_v2, %v830_v10  ;;  %v782_v19 = vmul.f32 %v1510_v38, %v759_v11  ;;  %v804_v20 = vadd.f32 %v1520_v47, %v781_v12 }
  0xf7   : > { %vm819_vm8 = vcmp.gt.f32.partialorder %v803_v14, 0.0  ;;  %v835_v21 = vmul.f32 0.2, %v803_v14  ;;  %v850_v22 = vsel %vm818_vm6, %v802_v8, %v834_v15  ;;  %v863_v23 = vsel %vm862_vm4, %v846_v17, -inf }
  0xf8   : > { %v891_v25 = vsel %vm862_vm4, %v850_v22, -inf  ;;  %v847_v26 = vsel %vm815_vm7, %v799_v9, %v831_v16  ;;  %v864_v28 = vrot.slane %v863_v23, 4  ;;  %v805_v29 = vadd.f32 %v1520_v47, %v782_v19 }
  0xf9   : > { %v851_v30 = vsel %vm819_vm8, %v803_v14, %v835_v21  ;;  %v892_v31 = vrot.slane %v891_v25, 4  ;;  %v870_v32 = vsel %vm862_vm4, %v847_v26, -inf  ;;  %vm820_vm9 = vcmp.gt.f32.partialorder %v804_v20, 0.0 }
  0xfa   : > { %v898_v33 = vsel %vm862_vm4, %v851_v30, -inf  ;;  %v865_v34 = vmax.f32 %v863_v23, %v864_v28  ;;  %v871_v35 = vrot.slane %v870_v32, 4  ;;  %vm821_vm10 = vcmp.gt.f32.partialorder %v805_v29, 0.0 }
  0xfb   : > { %v893_v36 = vmax.f32 %v891_v25, %v892_v31  ;;  %v899_v37 = vrot.slane %v898_v33, 4  ;;  %v836_v39 = vmul.f32 0.2, %v804_v20  ;;  %v837_v40 = vmul.f32 0.2, %v805_v29 }
  0xfc   : > { %v866_v41 = vrot.slane %v865_v34, 2  ;;  %v872_v42 = vmax.f32 %v870_v32, %v871_v35  ;;  %v778_v44 = vmul.f32 %v1510_v38, %v755_v6  ;;  %v800_v51 = vadd.f32 %v1520_v47, %v777_v13 }
  0xfd   : > { %v900_v45 = vmax.f32 %v898_v33, %v899_v37  ;;  %v852_v49 = vsel %vm820_vm9, %v804_v20, %v836_v39  ;;  %v853_v50 = vsel %vm821_vm10, %v805_v29, %v837_v40  ;;  %v894_v58 = vrot.slane %v893_v36, 2 }
  0xfe   : > { %v867_v53 = vmax.f32 %v865_v34, %v866_v41  ;;  %v873_v54 = vrot.slane %v872_v42, 2  ;;  %v905_v55 = vsel %vm862_vm4, %v852_v49, -inf  ;;  %v912_v56 = vsel %vm862_vm4, %v853_v50, -inf }
  0xff   : > { %v901_v59 = vrot.slane %v900_v45, 2  ;;  %v906_v60 = vrot.slane %v905_v55, 4  ;;  %v913_v61 = vrot.slane %v912_v56, 4  ;;  %v801_v1 = vadd.f32 %v1520_v47, %v778_v44 }
 0x100   : > { %v868_v63 = vrot.slane %v867_v53, 1  ;;  %v874_v0 = vmax.f32 %v872_v42, %v873_v54  ;;  %v637_v2 = vrot.slane %v623_v48, %v1495_v18  ;;  %v638_v3 = vcombine.high %v630_v43, %v630_v43 }
 0x101   : > { %v907_v4 = vmax.f32 %v905_v55, %v906_v60  ;;  %v914_v5 = vmax.f32 %v912_v56, %v913_v61  ;;  %vm816_vm12 = vcmp.gt.f32.partialorder %v800_v51, 0.0  ;;  %v832_v8 = vmul.f32 0.2, %v800_v51 }
 0x102   : > { %v869_v6 = vmax.f32 %v867_v53, %v868_v63  ;;  %v875_v7 = vrot.slane %v874_v0, 1  ;;  %v895_v9 = vmax.f32 %v893_v36, %v894_v58  ;;  %v902_v10 = vmax.f32 %v900_v45, %v901_v59 }
 0x103   : > { %v908_v11 = vrot.slane %v907_v4, 2  ;;  %vm817_vm13 = vcmp.gt.f32.partialorder %v801_v1, 0.0  ;;  %v833_v14 = vmul.f32 0.2, %v801_v1  ;;  %v915_v16 = vrot.slane %v914_v5, 2 }
 0x104   : > { %v876_v12 = vmax.f32 %v874_v0, %v875_v7  ;;  %v1319_v13 = vpack.c.bf16 %v869_v6, %v869_v6  ;;  %v848_v17 = vsel %vm816_vm12, %v800_v51, %v832_v8  ;;  %v639_v19 = vcombine.high %v637_v2, %v637_v2 }
 0x105   : > { %v909_v15 = vmax.f32 %v907_v4, %v908_v11  ;;  %v849_v20 = vsel %vm817_vm13, %v801_v1, %v833_v14  ;;  %v896_v21 = vrot.slane %v895_v9, 1  ;;  %v903_v22 = vrot.slane %v902_v10, 1 }
 0x106   : > { %v1564_v27 = vsel %vm991_vm11, %v876_v12, %v869_v6  ;;  %v1320_v48 = vpack.c.bf16 %v876_v12, %v876_v12  ;;  %v1567_v23 = vrot.slane %v630_v43, %v1495_v18  ;;  %v1570_v25 = vrot.slane %v638_v3, %v1495_v18 }
 0x107   : > { %v1081_v26 = vunpack.c.l.b16 %v1319_v13  ;;  %v877_v29 = vsel %vm862_vm4, %v848_v17, -inf  ;;  %v884_v30 = vsel %vm862_vm4, %v849_v20, -inf  ;;  %v910_v31 = vrot.slane %v909_v15, 1 }
 0x108   : > { %v1082_v28 = vunpack.c.l.b16 %v1320_v48  ;;  %v916_v32 = vmax.f32 %v914_v5, %v915_v16  ;;  %v878_v33 = vrot.slane %v877_v29, 4  ;;  %v562_v34 = vcombine.high %v1515_v46, %v1515_v46 }
 0x109   : > { %v885_v36 = vrot.slane %v884_v30, 4  ;;  %v653_v37 = vrot.slane %v637_v2, %v1495_v18  ;;  %v667_v39 = vrot.slane %v639_v19, %v1495_v18  ;;  %v897_v40 = vmax.f32 %v895_v9, %v896_v21 }
 0x10a   : > { %v1577_v35 = vsel %vm991_vm11, %v1082_v28, %v1081_v26  ;;  %v904_v41 = vmax.f32 %v902_v10, %v903_v22  ;;  %v879_v42 = vmax.f32 %v877_v29, %v878_v33  ;;  %v560_v43 = vcombine.high %v1524_v52, %v1524_v52 }
 0x10b   : > { %v886_v44 = vmax.f32 %v884_v30, %v885_v36  ;;  %v723_v45 = vrot.slane %v653_v37, %v1498_v24  ;;  %v727_v49 = vrot.slane %v667_v39, %v1498_v24  ;;  %v707_v50 = vrot.slane %v1567_v23, %v1498_v24 }
 0x10c   : > { %v911_v51 = vmax.f32 %v909_v15, %v910_v31  ;;  %v917_v53 = vrot.slane %v916_v32, 1  ;;  %v880_v54 = vrot.slane %v879_v42, 2  ;;  %v711_v18 = vrot.slane %v1570_v25, %v1498_v24 }
 0x10d   : > { %v887_v55 = vrot.slane %v886_v44, 2  ;;  %v764_v56 = vadd.f32 %v1515_v46, %v723_v45  ;;  %v765_v58 = vadd.f32 %v727_v49, %v562_v34  ;;  %v760_v59 = vadd.f32 %v707_v50, %v1524_v52 }
 0x10e   : > { %v1323_v60 = vpack.c.bf16 %v897_v40, %v897_v40  ;;  %v881_v61 = vmax.f32 %v879_v42, %v880_v54  ;;  %v761_v63 = vadd.f32 %v711_v18, %v560_v43  ;;  %v669_v0 = vcombine.high %v653_v37, %v653_v37 }
 0x10f   : > { %v1324_v1 = vpack.c.bf16 %v904_v41, %v904_v41  ;;  %v888_v2 = vmax.f32 %v886_v44, %v887_v55  ;;  %v783_v3 = vmul.f32 %v1510_v38, %v760_v59  ;;  %v918_v4 = vmax.f32 %v916_v32, %v917_v53 }
 0x110   : > { %v882_v5 = vrot.slane %v881_v61, 1  ;;  %v784_v6 = vmul.f32 %v1510_v38, %v761_v63  ;;  %v731_v7 = vrot.slane %v669_v0, %v1498_v24  ;;  %v1325_v46 = vpack.c.bf16 %v911_v51, %v911_v51 }
 0x111   : > { %v889_v8 = vrot.slane %v888_v2, 1  ;;  %vm1014_vm5 = vcmask 523264   ;;  %v1085_v52 = vunpack.c.l.b16 %v1323_v60  ;;  %v671_v10 = vcombine.high %v667_v39, %v667_v39 }
 0x112   : > { %v883_v9 = vmax.f32 %v881_v61, %v882_v5  ;;  %v766_v11 = vadd.f32 %v1528_v57, %v731_v7  ;;  %v1086_v12 = vunpack.c.l.b16 %v1324_v1  ;;  %v787_v14 = vmul.f32 %v1510_v38, %v764_v56 }
 0x113   : > { %v890_v13 = vmax.f32 %v888_v2, %v889_v8  ;;  %v806_v15 = vadd.f32 %v1520_v47, %v783_v3  ;;  %v1326_v16 = vpack.c.bf16 %v918_v4, %v918_v4  ;;  %v807_v19 = vadd.f32 %v1520_v47, %v784_v6 }
 0x114   : > { %v994_v17 = vsel %vm993_vm14, %v883_v9, %v1564_v27  ;;  %v1321_v48 = vpack.c.bf16 %v883_v9, %v883_v9  ;;  %v1087_v20 = vunpack.c.l.b16 %v1325_v46  ;;  %v788_v26 = vmul.f32 %v1510_v38, %v765_v58 }
 0x115   : > { %v996_v21 = vsel %vm995_vm15, %v890_v13, %v994_v17  ;;  %v1322_v22 = vpack.c.bf16 %v890_v13, %v890_v13  ;;  %v563_v30 = vcombine.high %v1528_v57, %v1528_v57  ;;  %v735_v31 = vrot.slane %v671_v10, %v1498_v24 }
 0x116   : > { %v998_v28 = vsel %vm997_vm0, %v897_v40, %v996_v21  ;;  %v1083_v29 = vunpack.c.l.b16 %v1321_v48  ;;  %v810_v33 = vadd.f32 %v1520_v47, %v787_v14  ;;  %vm822_vm6 = vcmp.gt.f32.partialorder %v806_v15, 0.0 }
 0x117   : > { %v1000_v27 = vsel %vm999_vm1, %v904_v41, %v998_v28  ;;  %v1084_v32 = vunpack.c.l.b16 %v1322_v22  ;;  %vm823_vm7 = vcmp.gt.f32.partialorder %v807_v19, 0.0  ;;  %v838_v57 = vmul.f32 0.2, %v806_v15 }
 0x118   : > { %v1002_v34 = vsel %vm1001_vm2, %v911_v51, %v1000_v27  ;;  %v1098_v36 = vsel %vm993_vm14, %v1083_v29, %v1577_v35  ;;  %v811_v40 = vadd.f32 %v1520_v47, %v788_v26  ;;  %v839_v42 = vmul.f32 0.2, %v807_v19 }
 0x119   : > { %v1004_v37 = vsel %vm1003_vm3, %v918_v4, %v1002_v34  ;;  %v1099_v39 = vsel %vm995_vm15, %v1084_v32, %v1098_v36  ;;  %v1088_v41 = vunpack.c.l.b16 %v1326_v16  ;;  %v854_v44 = vsel %vm822_vm6, %v806_v15, %v838_v57 }
 0x11a   : > { %1015 = vst.msk [vmem:[%s1610_s28] sm:$0xff] %vm1014_vm5, %v1004_v37  ;;  %v1100_v43 = vsel %vm997_vm0, %v1085_v52, %v1099_v39  ;;  %v767_v45 = vadd.f32 %v735_v31, %v563_v30  ;;  %vm826_vm8 = vcmp.gt.f32.partialorder %v810_v33, 0.0  ;;  %v855_v35 = vsel %vm823_vm7, %v807_v19, %v839_v42 }
 0x11b   : > { %v1101_v49 = vsel %vm999_vm1, %v1086_v12, %v1100_v43  ;;  %v919_v50 = vsel %vm862_vm4, %v854_v44, -inf  ;;  %v842_v53 = vmul.f32 0.2, %v810_v33  ;;  %v926_v18 = vsel %vm862_vm4, %v855_v35, -inf }
 0x11c   : > { %v1102_v51 = vsel %vm1001_vm2, %v1087_v20, %v1101_v49  ;;  %v920_v54 = vrot.slane %v919_v50, 4  ;;  %v843_v56 = vmul.f32 0.2, %v811_v40  ;;  %v927_v58 = vrot.slane %v926_v18, 4 }
 0x11d   : > { %v1103_v55 = vsel %vm1003_vm3, %v1088_v41, %v1102_v51  ;;  %v789_v59 = vmul.f32 %v1510_v38, %v766_v11  ;;  %vm827_vm9 = vcmp.gt.f32.partialorder %v811_v40, 0.0  ;;  %v790_v63 = vmul.f32 %v1510_v38, %v767_v45 }
 0x11e   : > { %v1111_v60 = vpack.c.b16 %v1103_v55, %v1103_v55  ;;  %v921_v61 = vmax.f32 %v919_v50, %v920_v54  ;;  %v928_v0 = vmax.f32 %v926_v18, %v927_v58  ;;  %v858_v2 = vsel %vm826_vm8, %v810_v33, %v842_v53 }
 0x11f   : > { %v812_v1 = vadd.f32 %v1520_v47, %v789_v59  ;;  %v813_v4 = vadd.f32 %v1520_v47, %v790_v63  ;;  %v859_v5 = vsel %vm827_vm9, %v811_v40, %v843_v56  ;;  %v668_v52 = vcombine.high %v1567_v23, %v1567_v23 }
 0x120   : > { %1115 = vst.msk [vmem:[%s1632_s8] sm:$0xf] %vm862_vm4, %v1111_v60  ;;  %v922_v3 = vrot.slane %v921_v61, 2  ;;  %v929_v6 = vrot.slane %v928_v0, 2  ;;  %v947_v9 = vsel %vm862_vm4, %v858_v2, -inf  ;;  %v670_v12 = vcombine.high %v1570_v25, %v1570_v25 }
 0x121   : > { %vm828_vm10 = vcmp.gt.f32.partialorder %v812_v1, 0.0  ;;  %v844_v7 = vmul.f32 0.2, %v812_v1  ;;  %vm829_vm12 = vcmp.gt.f32.partialorder %v813_v4, 0.0  ;;  %v845_v8 = vmul.f32 0.2, %v813_v4 }
 0x122   : > { %v923_v46 = vmax.f32 %v921_v61, %v922_v3  ;;  %v930_v10 = vmax.f32 %v928_v0, %v929_v6  ;;  %v954_v13 = vsel %vm862_vm4, %v859_v5, -inf  ;;  %v561_v48 = vcombine.high %v1533_v62, %v1533_v62 }
 0x123   : > { %v860_v11 = vsel %vm828_vm10, %v812_v1, %v844_v7  ;;  %v861_v15 = vsel %vm829_vm12, %v813_v4, %v845_v8  ;;  %v948_v19 = vrot.slane %v947_v9, 4  ;;  %v715_v21 = vrot.slane %v668_v52, %v1498_v24 }
 0x124   : > { %v924_v14 = vrot.slane %v923_v46, 1  ;;  %v931_v16 = vrot.slane %v930_v10, 1  ;;  %v961_v17 = vsel %vm862_vm4, %v860_v11, -inf  ;;  %v968_v23 = vsel %vm862_vm4, %v861_v15, -inf }
 0x125   : > { %v955_v22 = vrot.slane %v954_v13, 4  ;;  %v719_v25 = vrot.slane %v670_v12, %v1498_v24  ;;  %v962_v29 = vrot.slane %v961_v17, 4  ;;  %v762_v30 = vadd.f32 %v715_v21, %v1533_v62 }
 0x126   : > { %v925_v20 = vmax.f32 %v923_v46, %v924_v14  ;;  %v932_v26 = vmax.f32 %v930_v10, %v931_v16  ;;  %v969_v32 = vrot.slane %v968_v23, 4  ;;  %v949_v34 = vmax.f32 %v947_v9, %v948_v19 }
 0x127   : > { %v763_v33 = vadd.f32 %v719_v25, %v561_v48  ;;  %v785_v36 = vmul.f32 %v1510_v38, %v762_v30  ;;  %v956_v57 = vmax.f32 %v954_v13, %v955_v22  ;;  %v963_v42 = vmax.f32 %v961_v17, %v962_v29 }
 0x128   : > { %v1327_v28 = vpack.c.bf16 %v925_v20, %v925_v20  ;;  %v1005_v31 = vsel %vm991_vm11, %v932_v26, %v925_v20  ;;  %v1328_v27 = vpack.c.bf16 %v932_v26, %v932_v26  ;;  %v970_v43 = vmax.f32 %v968_v23, %v969_v32 }
 0x129   : > { %v786_v40 = vmul.f32 %v1510_v38, %v763_v33  ;;  %v808_v24 = vadd.f32 %v1520_v47, %v785_v36  ;;  %v950_v44 = vrot.slane %v949_v34, 2  ;;  %v957_v49 = vrot.slane %v956_v57, 2 }
 0x12a   : > { %v1089_v37 = vunpack.c.l.b16 %v1327_v28  ;;  %v1090_v39 = vunpack.c.l.b16 %v1328_v27  ;;  %v964_v50 = vrot.slane %v963_v42, 2  ;;  %v971_v53 = vrot.slane %v970_v43, 2 }
 0x12b   : > { %v809_v62 = vadd.f32 %v1520_v47, %v786_v40  ;;  %vm824_vm13 = vcmp.gt.f32.partialorder %v808_v24, 0.0  ;;  %v840_v45 = vmul.f32 0.2, %v808_v24  ;;  %v951_v18 = vmax.f32 %v949_v34, %v950_v44 }
 0x12c   : > { %v1104_v41 = vsel %vm991_vm11, %v1090_v39, %v1089_v37  ;;  %v958_v58 = vmax.f32 %v956_v57, %v957_v49  ;;  %v965_v60 = vmax.f32 %v963_v42, %v964_v50  ;;  %v972_v61 = vmax.f32 %v970_v43, %v971_v53 }
 0x12d   : > { %vm825_vm6 = vcmp.gt.f32.partialorder %v809_v62, 0.0  ;;  %v841_v35 = vmul.f32 0.2, %v809_v62  ;;  %v856_v51 = vsel %vm824_vm13, %v808_v24, %v840_v45  ;;  %v952_v0 = vrot.slane %v951_v18, 1 }
 0x12e   : > { %v933_v38 = vsel %vm862_vm4, %v856_v51, -inf  ;;  %v959_v2 = vrot.slane %v958_v58, 1  ;;  %v966_v4 = vrot.slane %v965_v60, 1  ;;  %v973_v6 = vrot.slane %v972_v61, 1 }
 0x12f   : > { %v857_v54 = vsel %vm825_vm6, %v809_v62, %v841_v35  ;;  %v934_v55 = vrot.slane %v933_v38, 4  ;;  %v953_v46 = vmax.f32 %v951_v18, %v952_v0 }
 0x130   : > { %v940_v56 = vsel %vm862_vm4, %v857_v54, -inf  ;;  %v960_v52 = vmax.f32 %v958_v58, %v959_v2  ;;  %v967_v10 = vmax.f32 %v965_v60, %v966_v4  ;;  %v974_v12 = vmax.f32 %v972_v61, %v973_v6 }
 0x131   : > { %v941_v59 = vrot.slane %v940_v56, 4  ;;  %v935_v47 = vmax.f32 %v933_v38, %v934_v55  ;;  %v1331_v14 = vpack.c.bf16 %v953_v46, %v953_v46 }
 0x132   : > { %v1332_v17 = vpack.c.bf16 %v960_v52, %v960_v52  ;;  %v1333_v20 = vpack.c.bf16 %v967_v10, %v967_v10  ;;  %v1334_v22 = vpack.c.bf16 %v974_v12, %v974_v12 }
 0x133   : > { %v942_v63 = vmax.f32 %v940_v56, %v941_v59  ;;  %v936_v1 = vrot.slane %v935_v47, 2  ;;  %v1093_v28 = vunpack.c.l.b16 %v1331_v14 }
 0x134   : > { %v1095_v33 = vunpack.c.l.b16 %v1333_v20  ;;  %v1096_v36 = vunpack.c.l.b16 %v1334_v22 }
 0x135   : > { %v943_v3 = vrot.slane %v942_v63, 2  ;;  %v937_v5 = vmax.f32 %v935_v47, %v936_v1 }
 0x137   : > { %v944_v7 = vmax.f32 %v942_v63, %v943_v3  ;;  %v938_v8 = vrot.slane %v937_v5, 1 }
 0x139   : > { %v945_v9 = vrot.slane %v944_v7, 1  ;;  %v939_v11 = vmax.f32 %v937_v5, %v938_v8 }
 0x13b   : > { %v946_v13 = vmax.f32 %v944_v7, %v945_v9  ;;  %v1006_v15 = vsel %vm993_vm14, %v939_v11, %v1005_v31  ;;  %v1329_v16 = vpack.c.bf16 %v939_v11, %v939_v11  ;;  %v1094_v31 = vunpack.c.l.b16 %v1332_v17 }
 0x13d   : > { %v1007_v48 = vsel %vm995_vm15, %v946_v13, %v1006_v15  ;;  %v1330_v19 = vpack.c.bf16 %v946_v13, %v946_v13  ;;  %v1091_v21 = vunpack.c.l.b16 %v1329_v16 }
 0x13e   : > { %v1008_v23 = vsel %vm997_vm0, %v953_v46, %v1007_v48 }
 0x13f   : > { %v1009_v26 = vsel %vm999_vm1, %v960_v52, %v1008_v23  ;;  %v1092_v25 = vunpack.c.l.b16 %v1330_v19  ;;  %v1105_v30 = vsel %vm993_vm14, %v1091_v21, %v1104_v41 }
 0x140   : > { %v1010_v29 = vsel %vm1001_vm2, %v967_v10, %v1009_v26 }
 0x141   : > { %v1011_v27 = vsel %vm1003_vm3, %v974_v12, %v1010_v29  ;;  %v1106_v32 = vsel %vm995_vm15, %v1092_v25, %v1105_v30 }
 0x142   : > { %1016 = vst.msk [vmem:[%s1610_s28 + $0x8] sm:$0xff] %vm1014_vm5, %v1011_v27  ;;  %v1107_v34 = vsel %vm997_vm0, %v1093_v28, %v1106_v32 }
 0x143   : > { %v1108_v57 = vsel %vm999_vm1, %v1094_v31, %v1107_v34 }
 0x144   : > { %v1109_v37 = vsel %vm1001_vm2, %v1095_v33, %v1108_v57 }
 0x145   : > { %v1110_v39 = vsel %vm1003_vm3, %v1096_v36, %v1109_v37 }
 0x146   : > { %v1112_v40 = vpack.c.b16 %v1110_v39, %v1110_v39 }
 0x148   : > { %1116 = vst.msk [vmem:[%s1632_s8 + $0x4] sm:$0xf] %vm862_vm4, %v1112_v40 }
 0x149 PF: > { %s18_s26 = sadd.s32 1, %s1413_s26   ;;  %s1696_s24 = smov %s1409_s25 }
 0x14a   : > { %p15_p5 = scmp.ge.s32.totalorder %s18_s26, 4   ;;  %s1697_s25 = smov %s1699_s27 }
 0x14c   :  { %17 = sbr.rel (!%p15_p5) target bundleno = 2 (0x2), region = 89 }

// kernel: dgcnn_forward.12
= control target key start
LH: loop header
LB: loop body
LE: loop exit
PB: predicated region body
PF: predicated region fallthrough
CT: control target
= control target key end

     0   :  { %s1542_s24 = smov 0   ;;  %s1544_s25 = smov 0   ;;  %s1794_s0 = inlined_call_operand.vmem [shape: bf16[2,64,64], index: 0, kind: input, shape index: {}]   ;;  %s1795_s1 = inlined_call_operand.vmem [shape: bf16[2,16,64], index: 1, kind: input, shape index: {}]   ;;  %s1796_s2 = inlined_call_operand.vmem [shape: bf16[64,64], index: 2, kind: input, shape index: {}]   ;;  %s1797_s3 = inlined_call_operand.vmem [shape: bf16[64,64], index: 3, kind: input, shape index: {}]   ;;  %s1798_s4 = inlined_call_operand.vmem [shape: f32[1,64], index: 4, kind: input, shape index: {}]   ;;  %s1799_s5 = inlined_call_operand.vmem [shape: f32[1,64], index: 5, kind: input, shape index: {}]   ;;  %s1800_s6 = inlined_call_operand.vmem [shape: f32[2,16,64], index: 6, kind: output, shape index: {0}]   ;;  %s1801_s7 = inlined_call_operand.vmem [shape: bf16[2,16,64], index: 7, kind: output, shape index: {1}]  }
   0x1   :  { %s1546_s26 = smov 0  }
   0x2 LB: > { %s30_s27 = sadd.s32 1, %s1493_s25  ;;  %p1327_p0 = scmp.ge.s32.totalorder %s1497_s26, 1  ;;  %s1497_s26 = sphi %s1546_s26, %s18_s26   ;;  %s1493_s25 = sphi %s1544_s25, %s1803_s25   ;;  %s1489_s24 = sphi %s1542_s24, %s1802_s24  }
   0x3   : > { %p32_p1 = scmp.ge.s32.totalorder %s30_s27, 2  ;;  %p280_p2 = scmp.lt.s32.totalorder %s1497_s26, 3 }
   0x5   : > { %s1805_s27 = smov (%p32_p1, %s30_s27), 0  ;;  %p281_p3 = pnand %p1327_p0, %p280_p2 }
   0x6   : > { %v1462_v0 = vld [vmem:[%s1796_s2] sm:$0xff] (!%p281_p3)   ;;  %v1499_v1 = vmov (!%p281_p3), 0.0   ;;  %v1464_v3 = vld [vmem:[%s1796_s2 + $0x8] sm:$0xff] (!%p281_p3)   ;;  %vm1500_vm0 = vmmov (!%p281_p3), 0   ;;  %p339_p4 = scmp.lt.s32.totalorder (!%p281_p3), %s1489_s24, 1  ;;  %v1466_v5 = vld [vmem:[%s1796_s2 + $0x10] sm:$0xff] (!%p281_p3)   ;;  %v630_v16 = vlaneseq (!%p281_p3) }
   0x7   : > { %284 = sbr.rel (%p281_p3) target bundleno = 333 (0x14d), region = 44  ;;  %1423 = vmatprep.subr.bf16.mxu1 (!%p281_p3), %v1499_v1  ;;  %v1463_v2 = vld [vmem:[%s1797_s3] sm:$0xff] (!%p281_p3)   ;;  %1407 = vmatprep.subr.bf16.mxu0 (!%p281_p3), %v1462_v0  ;;  %v1465_v4 = vld [vmem:[%s1797_s3 + $0x8] sm:$0xff] (!%p281_p3)   ;;  %v1467_v6 = vld [vmem:[%s1797_s3 + $0x10] sm:$0xff] (!%p281_p3)   ;;  %vm439_vm1 = vcmask (!%p281_p3), 523264   ;;  %vm914_vm2 = vcmask (!%p281_p3), 519168  }
   0x8   : > { %1431 = vmatprep.mubr.msk.bf16.mxu1 (!%p281_p3), %vm1500_vm0, %v1499_v1  ;;  %1424 = vmatpush3.bf16.msra.mxu1 (!%p281_p3), %v1463_v2  ;;  %v1468_v7 = vld [vmem:[%s1796_s2 + $0x18] sm:$0xff] (!%p281_p3)   ;;  %v1501_v14 = vmov (!%p281_p3), 1966171168   ;;  %v631_v18 = vshrl.u32 (!%p281_p3), %v630_v16, 7  ;;  %v1616_v39 = vld [vmem:[%s1798_s4] ss:$0 sm:$0xff] (!%p281_p3) }
   0x9   : > { %1408 = vmatpush3.bf16.msra.mxu0 (!%p281_p3), %v1462_v0  ;;  %1425 = vmatprep.subr.bf16.mxu1 (!%p281_p3), %v1499_v1  ;;  %v1469_v9 = vld [vmem:[%s1797_s3 + $0x18] sm:$0xff] (!%p281_p3)   ;;  %v628_v15 = vunpack.c.l.s4 (!%p281_p3), %v1501_v14  ;;  %v1626_v47 = vld [vmem:[%s1799_s5] ss:$0 sm:$0xff] (!%p281_p3)  ;;  %vm1043_vm9 = vcmask (!%p281_p3), 1041409   ;;  %vm1045_vm12 = vcmask (!%p281_p3), 1042434   ;;  %vm1047_vm13 = vcmask (!%p281_p3), 1043459  }
   0xa   : > { %1409 = vmatprep.subr.bf16.mxu0 (!%p281_p3), %v1464_v3  ;;  %v1604_v24 = vsub.s32 (!%p281_p3), 0, %v631_v18  ;;  %vm1049_vm14 = vcmask (!%p281_p3), 1044484   ;;  %vm1051_vm15 = vcmask (!%p281_p3), 1045509   ;;  %vm1053_vm0 = vcmask (!%p281_p3), 1046534  }
   0xb   : > { %v629_v17 = vunpack.c.0.s8 (!%p281_p3), %v628_v15 }
   0xc   : > { %1426 = vmatpush3.bf16.msra.mxu1 (!%p281_p3), %v1465_v4 }
   0xd   : > { %1410 = vmatpush3.bf16.msra.mxu0 (!%p281_p3), %v1464_v3  ;;  %1427 = vmatprep.subr.bf16.mxu1 (!%p281_p3), %v1499_v1  ;;  %v1601_v19 = vsub.s32 (!%p281_p3), %v629_v17, %v631_v18 }
   0xe   : > { %s1807_s24 = smov (!%p339_p4, %s1489_s24), 1  ;;  %1411 = vmatprep.subr.bf16.mxu0 %v1466_v5 }
   0xf   : > { %s1374_s17 = sshll.u32 %s1807_s24, 5  ;;  %s1375_s23 = sshll.u32 %s1807_s24, 3 }
  0x10   : > { %s346_s22 = scalar_lea.vmem %s1794_s0, %s1374_s17  ;;  %s356_s30 = scalar_lea.vmem %s1795_s1, %s1375_s23  ;;  %1428 = vmatpush3.bf16.msra.mxu1 %v1467_v6 }
  0x11   : > { %v1470_v8 = vld [vmem:[%s346_s22] sm:$0xff]   ;;  %1412 = vmatpush3.bf16.msra.mxu0 %v1466_v5  ;;  %1429 = vmatprep.subr.bf16.mxu1 %v1499_v1  ;;  %v1472_v11 = vld [vmem:[%s346_s22 + $0x8] sm:$0xff]   ;;  %v1473_v12 = vld [vmem:[%s346_s22 + $0x10] sm:$0xff]   ;;  %s1376_s14 = sshll.u32 %s1807_s24, 4  ;;  %s1738_s20 = scalar_lea.vmem %s1801_s7, %s1375_s23 }
  0x12   : > { %1415 = vmatprep.mubr.msk.bf16.mxu0 %vm439_vm1, %v1470_v8  ;;  %1413 = vmatprep.subr.bf16.mxu0 %v1468_v7  ;;  %v1471_v10 = vld [vmem:[%s356_s30] sm:$0xff]   ;;  %v1474_v13 = vld [vmem:[%s346_s22 + $0x18] sm:$0xff]   ;;  %s1716_s17 = scalar_lea.vmem %s1800_s6, %s1376_s14 }
  0x14   : > { %1430 = vmatpush3.bf16.msra.mxu1 %v1469_v9 }
  0x15   : > { %1414 = vmatpush3.bf16.msra.mxu0 %v1468_v7 }
  0x17   : > { %1432 = vmatmul.mubr.msk.bf16.vlgmr.msra.gmra.mrb[0].mxu1 %vm439_vm1, %v1471_v10 }
  0x18   : > { %1416 = vmatmul.mubr.msk.bf16.vlgmr.msra.gmra.mrb[0].mxu0 %vm439_vm1, %v1472_v11 }
  0x19   : > { %1419 = vmatprep.mubr.msk.bf16.mxu0 %vm439_vm1, %v1473_v12 }
  0x20   : > { %1420 = vmatmul.mubr.msk.bf16.gmra.mrb[4].mxu0 %vm439_vm1, %v1474_v13 }
  0xea   : > { %v593_v20 = vpop.f32.mrb[0].mxu1 }
  0xeb   : > { %v1417_v21 = vpop.f32.mrb[0].mxu0  ;;  %v626_v22 = vcombine.high %v593_v20, %v593_v20  ;;  %v633_v23 = vrot.slane %v593_v20, %v1601_v19  ;;  %v1433_v25 = vpop.f32.mrb[1].mxu1 }
  0xec   : > { %v486_v26 = vpop.f32.mrb[1].mxu0  ;;  %v1606_v27 = vpop.f32.mrb[2].mxu1  ;;  %v610_v38 = vcombine.high %v1417_v21, %v1417_v21 }
  0xed   : > { %v1418_v28 = vpop.f32.mrb[2].mxu0  ;;  %v640_v29 = vrot.slane %v626_v22, %v1601_v19  ;;  %v641_v30 = vcombine.high %v633_v23, %v633_v23  ;;  %v649_v31 = vrot.slane %v633_v23, %v1601_v19  ;;  %v1434_v32 = vpop.f32.mrb[3].mxu1  ;;  %v608_v40 = vcombine.high %v486_v26, %v486_v26 }
  0xee   : > { %v489_v33 = vpop.f32.mrb[3].mxu0  ;;  %v675_v41 = vcombine.high %v1606_v27, %v1606_v27  ;;  %v611_v48 = vcombine.high %v1418_v28, %v1418_v28 }
  0xef   : > { %v642_v34 = vcombine.high %v640_v29, %v640_v29  ;;  %v663_v35 = vrot.slane %v641_v30, %v1601_v19  ;;  %v656_v36 = vrot.slane %v640_v29, %v1601_v19  ;;  %v727_v37 = vrot.slane %v649_v31, %v1604_v24 }
  0xf0   : > { %v671_v42 = vcombine.high %v649_v31, %v649_v31  ;;  %v609_v50 = vcombine.high %v489_v33, %v489_v33 }
  0xf1   : > { %v670_v43 = vrot.slane %v642_v34, %v1601_v19  ;;  %v743_v44 = vrot.slane %v656_v36, %v1604_v24  ;;  %v731_v45 = vrot.slane %v663_v35, %v1604_v24  ;;  %v804_v46 = vadd.f32 %v727_v37, %v486_v26 }
  0xf2   : > { %v672_v49 = vcombine.high %v656_v36, %v656_v36  ;;  %v673_v51 = vcombine.high %v663_v35, %v663_v35  ;;  %v735_v60 = vrot.slane %v671_v42, %v1604_v24 }
  0xf3   : > { %v1628_v52 = vpop.f32.mrb[4].mxu0  ;;  %v747_v53 = vrot.slane %v670_v43, %v1604_v24  ;;  %v808_v54 = vadd.f32 %v1417_v21, %v743_v44  ;;  %v805_v55 = vadd.f32 %v731_v45, %v608_v40  ;;  %v827_v56 = vmul.f32 %v1616_v39, %v804_v46 }
  0xf4   : > { %v1632_v57 = vpop.f32.mrb[5].mxu0  ;;  %v674_v58 = vcombine.high %v670_v43, %v670_v43  ;;  %v751_v59 = vrot.slane %v672_v49, %v1604_v24  ;;  %v739_v61 = vrot.slane %v673_v51, %v1604_v24  ;;  %v806_v6 = vadd.f32 %v735_v60, %v489_v33 }
  0xf5   : > { %v1637_v62 = vpop.f32.mrb[6].mxu0  ;;  %v809_v63 = vadd.f32 %v747_v53, %v610_v38  ;;  %v831_v0 = vmul.f32 %v1616_v39, %v808_v54  ;;  %v828_v1 = vmul.f32 %v1616_v39, %v805_v55  ;;  %v850_v2 = vadd.f32 %v1626_v47, %v827_v56 }
  0xf6   : > { %v1642_v3 = vpop.f32.mrb[7].mxu0  ;;  %v755_v4 = vrot.slane %v674_v58, %v1604_v24  ;;  %v810_v5 = vadd.f32 %v1418_v28, %v751_v59  ;;  %v807_v7 = vadd.f32 %v739_v61, %v609_v50  ;;  %v829_v14 = vmul.f32 %v1616_v39, %v806_v6 }
  0xf7   : > { %v832_v8 = vmul.f32 %v1616_v39, %v809_v63  ;;  %v854_v9 = vadd.f32 %v1626_v47, %v831_v0  ;;  %v851_v10 = vadd.f32 %v1626_v47, %v828_v1  ;;  %vm866_vm3 = vcmp.gt.f32.partialorder %v850_v2, 0.0 }
  0xf8   : > { %v882_v11 = vmul.f32 0.2, %v850_v2  ;;  %v811_v12 = vadd.f32 %v755_v4, %v611_v48  ;;  %v833_v13 = vmul.f32 %v1616_v39, %v810_v5  ;;  %v682_v45 = vrot.slane %v1606_v27, %v1601_v19 }
  0xf9   : > { %v855_v15 = vadd.f32 %v1626_v47, %v832_v8  ;;  %vm870_vm4 = vcmp.gt.f32.partialorder %v854_v9, 0.0  ;;  %v886_v16 = vmul.f32 0.2, %v854_v9  ;;  %vm867_vm5 = vcmp.gt.f32.partialorder %v851_v10, 0.0 }
  0xfa   : > { %v883_v17 = vmul.f32 0.2, %v851_v10  ;;  %v898_v18 = vsel %vm866_vm3, %v850_v2, %v882_v11  ;;  %v834_v20 = vmul.f32 %v1616_v39, %v811_v12  ;;  %v856_v21 = vadd.f32 %v1626_v47, %v833_v13 }
  0xfb   : > { %vm871_vm6 = vcmp.gt.f32.partialorder %v855_v15, 0.0  ;;  %v887_v22 = vmul.f32 0.2, %v855_v15  ;;  %v902_v23 = vsel %vm870_vm4, %v854_v9, %v886_v16  ;;  %v915_v25 = vsel %vm914_vm2, %v898_v18, -inf }
  0xfc   : > { %v943_v26 = vsel %vm914_vm2, %v902_v23, -inf  ;;  %v899_v28 = vsel %vm867_vm5, %v851_v10, %v883_v17  ;;  %v916_v29 = vrot.slane %v915_v25, 4  ;;  %v857_v30 = vadd.f32 %v1626_v47, %v834_v20 }
  0xfd   : > { %v903_v31 = vsel %vm871_vm6, %v855_v15, %v887_v22  ;;  %v944_v32 = vrot.slane %v943_v26, 4  ;;  %v922_v33 = vsel %vm914_vm2, %v899_v28, -inf  ;;  %vm872_vm7 = vcmp.gt.f32.partialorder %v856_v21, 0.0 }
  0xfe   : > { %v950_v34 = vsel %vm914_vm2, %v903_v31, -inf  ;;  %v917_v35 = vmax.f32 %v915_v25, %v916_v29  ;;  %v923_v36 = vrot.slane %v922_v33, 4  ;;  %vm873_vm8 = vcmp.gt.f32.partialorder %v857_v30, 0.0 }
  0xff   : > { %v945_v37 = vmax.f32 %v943_v26, %v944_v32  ;;  %v951_v38 = vrot.slane %v950_v34, 4  ;;  %v888_v40 = vmul.f32 0.2, %v856_v21  ;;  %v889_v42 = vmul.f32 0.2, %v857_v30 }
 0x100   : > { %v918_v43 = vrot.slane %v917_v35, 2  ;;  %v924_v44 = vmax.f32 %v922_v33, %v923_v36  ;;  %v830_v46 = vmul.f32 %v1616_v39, %v807_v7  ;;  %v852_v51 = vadd.f32 %v1626_v47, %v829_v14 }
 0x101   : > { %v952_v48 = vmax.f32 %v950_v34, %v951_v38  ;;  %v904_v49 = vsel %vm872_vm7, %v856_v21, %v888_v40  ;;  %v905_v50 = vsel %vm873_vm8, %v857_v30, %v889_v42  ;;  %v946_v58 = vrot.slane %v945_v37, 2 }
 0x102   : > { %v919_v53 = vmax.f32 %v917_v35, %v918_v43  ;;  %v925_v54 = vrot.slane %v924_v44, 2  ;;  %v957_v55 = vsel %vm914_vm2, %v904_v49, -inf  ;;  %v964_v56 = vsel %vm914_vm2, %v905_v50, -inf }
 0x103   : > { %v953_v59 = vrot.slane %v952_v48, 2  ;;  %v958_v60 = vrot.slane %v957_v55, 4  ;;  %v965_v61 = vrot.slane %v964_v56, 4  ;;  %v853_v1 = vadd.f32 %v1626_v47, %v830_v46 }
 0x104   : > { %v920_v63 = vrot.slane %v919_v53, 1  ;;  %v926_v0 = vmax.f32 %v924_v44, %v925_v54  ;;  %v689_v2 = vrot.slane %v675_v41, %v1601_v19  ;;  %v690_v4 = vcombine.high %v682_v45, %v682_v45 }
 0x105   : > { %v959_v5 = vmax.f32 %v957_v55, %v958_v60  ;;  %v966_v6 = vmax.f32 %v964_v56, %v965_v61  ;;  %vm868_vm10 = vcmp.gt.f32.partialorder %v852_v51, 0.0  ;;  %v884_v9 = vmul.f32 0.2, %v852_v51 }
 0x106   : > { %v921_v7 = vmax.f32 %v919_v53, %v920_v63  ;;  %v927_v8 = vrot.slane %v926_v0, 1  ;;  %v947_v10 = vmax.f32 %v945_v37, %v946_v58  ;;  %v954_v11 = vmax.f32 %v952_v48, %v953_v59 }
 0x107   : > { %v960_v12 = vrot.slane %v959_v5, 2  ;;  %vm869_vm11 = vcmp.gt.f32.partialorder %v853_v1, 0.0  ;;  %v885_v15 = vmul.f32 0.2, %v853_v1  ;;  %v967_v17 = vrot.slane %v966_v6, 2 }
 0x108   : > { %v928_v13 = vmax.f32 %v926_v0, %v927_v8  ;;  %v1378_v14 = vpack.c.bf16 %v921_v7, %v921_v7  ;;  %v900_v18 = vsel %vm868_vm10, %v852_v51, %v884_v9  ;;  %v691_v20 = vcombine.high %v689_v2, %v689_v2 }
 0x109   : > { %v961_v16 = vmax.f32 %v959_v5, %v960_v12  ;;  %v901_v21 = vsel %vm869_vm11, %v853_v1, %v885_v15  ;;  %v948_v22 = vrot.slane %v947_v10, 1  ;;  %v955_v23 = vrot.slane %v954_v11, 1 }
 0x10a   : > { %v1670_v27 = vsel %vm1043_vm9, %v928_v13, %v921_v7  ;;  %v1379_v41 = vpack.c.bf16 %v928_v13, %v928_v13  ;;  %v1673_v25 = vrot.slane %v682_v45, %v1601_v19  ;;  %v1676_v26 = vrot.slane %v690_v4, %v1601_v19 }
 0x10b   : > { %v1132_v28 = vunpack.c.l.b16 %v1378_v14  ;;  %v929_v30 = vsel %vm914_vm2, %v900_v18, -inf  ;;  %v936_v31 = vsel %vm914_vm2, %v901_v21, -inf  ;;  %v962_v32 = vrot.slane %v961_v16, 1 }
 0x10c   : > { %v1133_v29 = vunpack.c.l.b16 %v1379_v41  ;;  %v968_v33 = vmax.f32 %v966_v6, %v967_v17  ;;  %v930_v34 = vrot.slane %v929_v30, 4  ;;  %v614_v35 = vcombine.high %v1628_v52, %v1628_v52 }
 0x10d   : > { %v937_v37 = vrot.slane %v936_v31, 4  ;;  %v705_v38 = vrot.slane %v689_v2, %v1601_v19  ;;  %v719_v40 = vrot.slane %v691_v20, %v1601_v19  ;;  %v949_v42 = vmax.f32 %v947_v10, %v948_v22 }
 0x10e   : > { %v1683_v36 = vsel %vm1043_vm9, %v1133_v29, %v1132_v28  ;;  %v956_v43 = vmax.f32 %v954_v11, %v955_v23  ;;  %v931_v44 = vmax.f32 %v929_v30, %v930_v34  ;;  %v612_v45 = vcombine.high %v1632_v57, %v1632_v57 }
 0x10f   : > { %v938_v46 = vmax.f32 %v936_v31, %v937_v37  ;;  %v775_v48 = vrot.slane %v705_v38, %v1604_v24  ;;  %v779_v49 = vrot.slane %v719_v40, %v1604_v24  ;;  %v759_v50 = vrot.slane %v1673_v25, %v1604_v24 }
 0x110   : > { %v963_v51 = vmax.f32 %v961_v16, %v962_v32  ;;  %v969_v53 = vrot.slane %v968_v33, 1  ;;  %v932_v54 = vrot.slane %v931_v44, 2  ;;  %v763_v19 = vrot.slane %v1676_v26, %v1604_v24 }
 0x111   : > { %v939_v55 = vrot.slane %v938_v46, 2  ;;  %v816_v56 = vadd.f32 %v1628_v52, %v775_v48  ;;  %v817_v58 = vadd.f32 %v779_v49, %v614_v35  ;;  %v812_v59 = vadd.f32 %v759_v50, %v1632_v57 }
 0x112   : > { %v1382_v60 = vpack.c.bf16 %v949_v42, %v949_v42  ;;  %v933_v61 = vmax.f32 %v931_v44, %v932_v54  ;;  %v813_v63 = vadd.f32 %v763_v19, %v612_v45  ;;  %v721_v0 = vcombine.high %v705_v38, %v705_v38 }
 0x113   : > { %v1383_v1 = vpack.c.bf16 %v956_v43, %v956_v43  ;;  %v940_v2 = vmax.f32 %v938_v46, %v939_v55  ;;  %v835_v4 = vmul.f32 %v1616_v39, %v812_v59  ;;  %v970_v5 = vmax.f32 %v968_v33, %v969_v53 }
 0x114   : > { %v934_v6 = vrot.slane %v933_v61, 1  ;;  %v836_v7 = vmul.f32 %v1616_v39, %v813_v63  ;;  %v783_v8 = vrot.slane %v721_v0, %v1604_v24  ;;  %v1384_v52 = vpack.c.bf16 %v963_v51, %v963_v51 }
 0x115   : > { %v941_v9 = vrot.slane %v940_v2, 1  ;;  %vm1055_vm3 = vcmask 1047559   ;;  %v1136_v57 = vunpack.c.l.b16 %v1382_v60  ;;  %v723_v11 = vcombine.high %v719_v40, %v719_v40 }
 0x116   : > { %v935_v10 = vmax.f32 %v933_v61, %v934_v6  ;;  %v818_v12 = vadd.f32 %v1637_v62, %v783_v8  ;;  %v1137_v13 = vunpack.c.l.b16 %v1383_v1  ;;  %v839_v15 = vmul.f32 %v1616_v39, %v816_v56 }
 0x117   : > { %v942_v14 = vmax.f32 %v940_v2, %v941_v9  ;;  %v858_v16 = vadd.f32 %v1626_v47, %v835_v4  ;;  %v1385_v17 = vpack.c.bf16 %v970_v5, %v970_v5  ;;  %v859_v20 = vadd.f32 %v1626_v47, %v836_v7 }
 0x118   : > { %v1046_v18 = vsel %vm1045_vm12, %v935_v10, %v1670_v27  ;;  %v1380_v41 = vpack.c.bf16 %v935_v10, %v935_v10  ;;  %v1138_v21 = vunpack.c.l.b16 %v1384_v52  ;;  %v840_v28 = vmul.f32 %v1616_v39, %v817_v58 }
 0x119   : > { %v1048_v22 = vsel %vm1047_vm13, %v942_v14, %v1046_v18  ;;  %v1381_v23 = vpack.c.bf16 %v942_v14, %v942_v14  ;;  %v615_v31 = vcombine.high %v1637_v62, %v1637_v62  ;;  %v787_v32 = vrot.slane %v723_v11, %v1604_v24 }
 0x11a   : > { %v1050_v29 = vsel %vm1049_vm14, %v949_v42, %v1048_v22  ;;  %v1134_v30 = vunpack.c.l.b16 %v1380_v41  ;;  %v862_v34 = vadd.f32 %v1626_v47, %v839_v15  ;;  %vm874_vm4 = vcmp.gt.f32.partialorder %v858_v16, 0.0 }
 0x11b   : > { %v1052_v27 = vsel %vm1051_vm15, %v956_v43, %v1050_v29  ;;  %v1135_v33 = vunpack.c.l.b16 %v1381_v23  ;;  %vm875_vm5 = vcmp.gt.f32.partialorder %v859_v20, 0.0  ;;  %v890_v62 = vmul.f32 0.2, %v858_v16 }
 0x11c   : > { %v1054_v35 = vsel %vm1053_vm0, %v963_v51, %v1052_v27  ;;  %v1149_v37 = vsel %vm1045_vm12, %v1134_v30, %v1683_v36  ;;  %v863_v42 = vadd.f32 %v1626_v47, %v840_v28  ;;  %v891_v44 = vmul.f32 0.2, %v859_v20 }
 0x11d   : > { %v1056_v38 = vsel %vm1055_vm3, %v970_v5, %v1054_v35  ;;  %v1150_v40 = vsel %vm1047_vm13, %v1135_v33, %v1149_v37  ;;  %v1139_v43 = vunpack.c.l.b16 %v1385_v17  ;;  %v906_v46 = vsel %vm874_vm4, %v858_v16, %v890_v62 }
 0x11e   : > { %1066 = vst.msk [vmem:[%s1716_s17] sm:$0xff] %vm439_vm1, %v1056_v38  ;;  %v1151_v45 = vsel %vm1049_vm14, %v1136_v57, %v1150_v40  ;;  %v819_v48 = vadd.f32 %v787_v32, %v615_v31  ;;  %vm878_vm6 = vcmp.gt.f32.partialorder %v862_v34, 0.0  ;;  %v907_v36 = vsel %vm875_vm5, %v859_v20, %v891_v44 }
 0x11f   : > { %v1152_v49 = vsel %vm1051_vm15, %v1137_v13, %v1151_v45  ;;  %v971_v50 = vsel %vm914_vm2, %v906_v46, -inf  ;;  %v894_v53 = vmul.f32 0.2, %v862_v34  ;;  %v978_v19 = vsel %vm914_vm2, %v907_v36, -inf }
 0x120   : > { %v1153_v51 = vsel %vm1053_vm0, %v1138_v21, %v1152_v49  ;;  %v972_v54 = vrot.slane %v971_v50, 4  ;;  %v895_v56 = vmul.f32 0.2, %v863_v42  ;;  %v979_v58 = vrot.slane %v978_v19, 4 }
 0x121   : > { %v1154_v55 = vsel %vm1055_vm3, %v1139_v43, %v1153_v51  ;;  %v841_v59 = vmul.f32 %v1616_v39, %v818_v12  ;;  %vm879_vm7 = vcmp.gt.f32.partialorder %v863_v42, 0.0  ;;  %v842_v63 = vmul.f32 %v1616_v39, %v819_v48 }
 0x122   : > { %v1162_v60 = vpack.c.b16 %v1154_v55, %v1154_v55  ;;  %v973_v61 = vmax.f32 %v971_v50, %v972_v54  ;;  %v980_v0 = vmax.f32 %v978_v19, %v979_v58  ;;  %v910_v2 = vsel %vm878_vm6, %v862_v34, %v894_v53 }
 0x123   : > { %v864_v1 = vadd.f32 %v1626_v47, %v841_v59  ;;  %v865_v5 = vadd.f32 %v1626_v47, %v842_v63  ;;  %v911_v6 = vsel %vm879_vm7, %v863_v42, %v895_v56  ;;  %v720_v57 = vcombine.high %v1673_v25, %v1673_v25 }
 0x124   : > { %1166 = vst.msk [vmem:[%s1738_s20] sm:$0xf] %vm914_vm2, %v1162_v60  ;;  %v974_v4 = vrot.slane %v973_v61, 2  ;;  %v981_v7 = vrot.slane %v980_v0, 2  ;;  %v999_v10 = vsel %vm914_vm2, %v910_v2, -inf  ;;  %v722_v13 = vcombine.high %v1676_v26, %v1676_v26 }
 0x125   : > { %vm880_vm8 = vcmp.gt.f32.partialorder %v864_v1, 0.0  ;;  %v896_v8 = vmul.f32 0.2, %v864_v1  ;;  %vm881_vm10 = vcmp.gt.f32.partialorder %v865_v5, 0.0  ;;  %v897_v9 = vmul.f32 0.2, %v865_v5 }
 0x126   : > { %v975_v52 = vmax.f32 %v973_v61, %v974_v4  ;;  %v982_v11 = vmax.f32 %v980_v0, %v981_v7  ;;  %v1006_v14 = vsel %vm914_vm2, %v911_v6, -inf  ;;  %v613_v41 = vcombine.high %v1642_v3, %v1642_v3 }
 0x127   : > { %v912_v12 = vsel %vm880_vm8, %v864_v1, %v896_v8  ;;  %v913_v16 = vsel %vm881_vm10, %v865_v5, %v897_v9  ;;  %v1000_v20 = vrot.slane %v999_v10, 4  ;;  %v767_v22 = vrot.slane %v720_v57, %v1604_v24 }
 0x128   : > { %v976_v15 = vrot.slane %v975_v52, 1  ;;  %v983_v17 = vrot.slane %v982_v11, 1  ;;  %v1013_v18 = vsel %vm914_vm2, %v912_v12, -inf  ;;  %v1020_v25 = vsel %vm914_vm2, %v913_v16, -inf }
 0x129   : > { %v1007_v23 = vrot.slane %v1006_v14, 4  ;;  %v771_v26 = vrot.slane %v722_v13, %v1604_v24  ;;  %v1014_v30 = vrot.slane %v1013_v18, 4  ;;  %v814_v31 = vadd.f32 %v767_v22, %v1642_v3 }
 0x12a   : > { %v977_v21 = vmax.f32 %v975_v52, %v976_v15  ;;  %v984_v28 = vmax.f32 %v982_v11, %v983_v17  ;;  %v1021_v33 = vrot.slane %v1020_v25, 4  ;;  %v1001_v35 = vmax.f32 %v999_v10, %v1000_v20 }
 0x12b   : > { %v815_v34 = vadd.f32 %v771_v26, %v613_v41  ;;  %v837_v37 = vmul.f32 %v1616_v39, %v814_v31  ;;  %v1008_v62 = vmax.f32 %v1006_v14, %v1007_v23  ;;  %v1015_v44 = vmax.f32 %v1013_v18, %v1014_v30 }
 0x12c   : > { %v1386_v29 = vpack.c.bf16 %v977_v21, %v977_v21  ;;  %v1057_v32 = vsel %vm1043_vm9, %v984_v28, %v977_v21  ;;  %v1387_v27 = vpack.c.bf16 %v984_v28, %v984_v28  ;;  %v1022_v45 = vmax.f32 %v1020_v25, %v1021_v33 }
 0x12d   : > { %v838_v42 = vmul.f32 %v1616_v39, %v815_v34  ;;  %v860_v24 = vadd.f32 %v1626_v47, %v837_v37  ;;  %v1002_v46 = vrot.slane %v1001_v35, 2  ;;  %v1009_v49 = vrot.slane %v1008_v62, 2 }
 0x12e   : > { %v1140_v38 = vunpack.c.l.b16 %v1386_v29  ;;  %v1141_v40 = vunpack.c.l.b16 %v1387_v27  ;;  %v1016_v50 = vrot.slane %v1015_v44, 2  ;;  %v1023_v53 = vrot.slane %v1022_v45, 2 }
 0x12f   : > { %v861_v3 = vadd.f32 %v1626_v47, %v838_v42  ;;  %vm876_vm11 = vcmp.gt.f32.partialorder %v860_v24, 0.0  ;;  %v892_v48 = vmul.f32 0.2, %v860_v24  ;;  %v1003_v19 = vmax.f32 %v1001_v35, %v1002_v46 }
 0x130   : > { %v1155_v43 = vsel %vm1043_vm9, %v1141_v40, %v1140_v38  ;;  %v1010_v58 = vmax.f32 %v1008_v62, %v1009_v49  ;;  %v1017_v60 = vmax.f32 %v1015_v44, %v1016_v50  ;;  %v1024_v61 = vmax.f32 %v1022_v45, %v1023_v53 }
 0x131   : > { %vm877_vm4 = vcmp.gt.f32.partialorder %v861_v3, 0.0  ;;  %v893_v36 = vmul.f32 0.2, %v861_v3  ;;  %v908_v51 = vsel %vm876_vm11, %v860_v24, %v892_v48  ;;  %v1004_v0 = vrot.slane %v1003_v19, 1 }
 0x132   : > { %v985_v39 = vsel %vm914_vm2, %v908_v51, -inf  ;;  %v1011_v2 = vrot.slane %v1010_v58, 1  ;;  %v1018_v5 = vrot.slane %v1017_v60, 1  ;;  %v1025_v7 = vrot.slane %v1024_v61, 1 }
 0x133   : > { %v909_v54 = vsel %vm877_vm4, %v861_v3, %v893_v36  ;;  %v986_v55 = vrot.slane %v985_v39, 4  ;;  %v1005_v52 = vmax.f32 %v1003_v19, %v1004_v0 }
 0x134   : > { %v992_v56 = vsel %vm914_vm2, %v909_v54, -inf  ;;  %v1012_v57 = vmax.f32 %v1010_v58, %v1011_v2  ;;  %v1019_v11 = vmax.f32 %v1017_v60, %v1018_v5  ;;  %v1026_v13 = vmax.f32 %v1024_v61, %v1025_v7 }
 0x135   : > { %v993_v59 = vrot.slane %v992_v56, 4  ;;  %v987_v47 = vmax.f32 %v985_v39, %v986_v55  ;;  %v1390_v15 = vpack.c.bf16 %v1005_v52, %v1005_v52 }
 0x136   : > { %v1391_v18 = vpack.c.bf16 %v1012_v57, %v1012_v57  ;;  %v1392_v21 = vpack.c.bf16 %v1019_v11, %v1019_v11  ;;  %v1393_v23 = vpack.c.bf16 %v1026_v13, %v1026_v13 }
 0x137   : > { %v994_v63 = vmax.f32 %v992_v56, %v993_v59  ;;  %v988_v1 = vrot.slane %v987_v47, 2  ;;  %v1144_v29 = vunpack.c.l.b16 %v1390_v15 }
 0x138   : > { %v1146_v34 = vunpack.c.l.b16 %v1392_v21  ;;  %v1147_v37 = vunpack.c.l.b16 %v1393_v23 }
 0x139   : > { %v995_v4 = vrot.slane %v994_v63, 2  ;;  %v989_v6 = vmax.f32 %v987_v47, %v988_v1 }
 0x13b   : > { %v996_v8 = vmax.f32 %v994_v63, %v995_v4  ;;  %v990_v9 = vrot.slane %v989_v6, 1 }
 0x13d   : > { %v997_v10 = vrot.slane %v996_v8, 1  ;;  %v991_v12 = vmax.f32 %v989_v6, %v990_v9 }
 0x13f   : > { %v998_v14 = vmax.f32 %v996_v8, %v997_v10  ;;  %v1058_v16 = vsel %vm1045_vm12, %v991_v12, %v1057_v32  ;;  %v1388_v17 = vpack.c.bf16 %v991_v12, %v991_v12  ;;  %v1145_v32 = vunpack.c.l.b16 %v1391_v18 }
 0x141   : > { %v1059_v41 = vsel %vm1047_vm13, %v998_v14, %v1058_v16  ;;  %v1389_v20 = vpack.c.bf16 %v998_v14, %v998_v14  ;;  %v1142_v22 = vunpack.c.l.b16 %v1388_v17 }
 0x142   : > { %v1060_v25 = vsel %vm1049_vm14, %v1005_v52, %v1059_v41 }
 0x143   : > { %v1061_v28 = vsel %vm1051_vm15, %v1012_v57, %v1060_v25  ;;  %v1143_v26 = vunpack.c.l.b16 %v1389_v20  ;;  %v1156_v31 = vsel %vm1045_vm12, %v1142_v22, %v1155_v43 }
 0x144   : > { %v1062_v30 = vsel %vm1053_vm0, %v1019_v11, %v1061_v28 }
 0x145   : > { %v1063_v27 = vsel %vm1055_vm3, %v1026_v13, %v1062_v30  ;;  %v1157_v33 = vsel %vm1047_vm13, %v1143_v26, %v1156_v31 }
 0x146   : > { %1067 = vst.msk [vmem:[%s1716_s17 + $0x8] sm:$0xff] %vm439_vm1, %v1063_v27  ;;  %v1158_v35 = vsel %vm1049_vm14, %v1144_v29, %v1157_v33 }
 0x147   : > { %v1159_v62 = vsel %vm1051_vm15, %v1145_v32, %v1158_v35 }
 0x148   : > { %v1160_v38 = vsel %vm1053_vm0, %v1146_v34, %v1159_v62 }
 0x149   : > { %v1161_v40 = vsel %vm1055_vm3, %v1147_v37, %v1160_v38 }
 0x14a   : > { %v1163_v42 = vpack.c.b16 %v1161_v40, %v1161_v40 }
 0x14c   : > { %1167 = vst.msk [vmem:[%s1738_s20 + $0x4] sm:$0xf] %vm914_vm2, %v1163_v42 }
 0x14d PF: > { %s18_s26 = sadd.s32 1, %s1497_s26   ;;  %s1802_s24 = smov %s1493_s25 }
 0x14e   : > { %p15_p5 = scmp.ge.s32.totalorder %s18_s26, 4   ;;  %s1803_s25 = smov %s1805_s27 }
 0x150   :  { %17 = sbr.rel (!%p15_p5) target bundleno = 2 (0x2), region = 89 }

// kernel: dgcnn_forward.14
= control target key start
LH: loop header
LB: loop body
LE: loop exit
PB: predicated region body
PF: predicated region fallthrough
CT: control target
= control target key end

     0   :  { %s1542_s24 = smov 0   ;;  %s1544_s25 = smov 0   ;;  %s1790_s0 = inlined_call_operand.vmem [shape: bf16[2,64,64], index: 0, kind: input, shape index: {}]   ;;  %s1791_s1 = inlined_call_operand.vmem [shape: bf16[2,16,64], index: 1, kind: input, shape index: {}]   ;;  %s1792_s2 = inlined_call_operand.vmem [shape: bf16[64,128], index: 2, kind: input, shape index: {}]   ;;  %s1793_s3 = inlined_call_operand.vmem [shape: bf16[64,128], index: 3, kind: input, shape index: {}]   ;;  %s1794_s4 = inlined_call_operand.vmem [shape: f32[1,128], index: 4, kind: input, shape index: {}]   ;;  %s1795_s5 = inlined_call_operand.vmem [shape: f32[1,128], index: 5, kind: input, shape index: {}]   ;;  %s1796_s6 = inlined_call_operand.vmem [shape: f32[2,16,128], index: 6, kind: output, shape index: {0}]   ;;  %s1797_s7 = inlined_call_operand.vmem [shape: bf16[2,16,128], index: 7, kind: output, shape index: {1}]  }
   0x1   :  { %s1546_s26 = smov 0  }
   0x2 LB: > { %s30_s27 = sadd.s32 1, %s1493_s25  ;;  %p1327_p0 = scmp.ge.s32.totalorder %s1497_s26, 1  ;;  %s1497_s26 = sphi %s1546_s26, %s18_s26   ;;  %s1493_s25 = sphi %s1544_s25, %s1799_s25   ;;  %s1489_s24 = sphi %s1542_s24, %s1798_s24  }
   0x3   : > { %p32_p1 = scmp.ge.s32.totalorder %s30_s27, 2  ;;  %p280_p2 = scmp.lt.s32.totalorder %s1497_s26, 3 }
   0x5   : > { %s1801_s27 = smov (%p32_p1, %s30_s27), 0  ;;  %p281_p3 = pnand %p1327_p0, %p280_p2 }
   0x6   : > { %v1462_v0 = vld [vmem:[%s1792_s2] sm:$0xff] (!%p281_p3)   ;;  %v1499_v1 = vmov (!%p281_p3), 0.0   ;;  %v1464_v3 = vld [vmem:[%s1792_s2 + $0x8] sm:$0xff] (!%p281_p3)   ;;  %vm1500_vm0 = vmmov (!%p281_p3), 0   ;;  %p339_p4 = scmp.lt.s32.totalorder (!%p281_p3), %s1489_s24, 1  ;;  %v1466_v5 = vld [vmem:[%s1792_s2 + $0x10] sm:$0xff] (!%p281_p3)   ;;  %v630_v16 = vlaneseq (!%p281_p3) }
   0x7   : > { %284 = sbr.rel (%p281_p3) target bundleno = 333 (0x14d), region = 44  ;;  %1423 = vmatprep.subr.bf16.mxu1 (!%p281_p3), %v1499_v1  ;;  %v1463_v2 = vld [vmem:[%s1793_s3] sm:$0xff] (!%p281_p3)   ;;  %1407 = vmatprep.subr.bf16.mxu0 (!%p281_p3), %v1462_v0  ;;  %v1465_v4 = vld [vmem:[%s1793_s3 + $0x8] sm:$0xff] (!%p281_p3)   ;;  %v1467_v6 = vld [vmem:[%s1793_s3 + $0x10] sm:$0xff] (!%p281_p3)   ;;  %vm439_vm1 = vcmask (!%p281_p3), 523264   ;;  %vm914_vm2 = vcmask (!%p281_p3), 1043456  }
   0x8   : > { %1431 = vmatprep.mubr.msk.bf16.mxu1 (!%p281_p3), %vm1500_vm0, %v1499_v1  ;;  %1424 = vmatpush3.bf16.msra.mxu1 (!%p281_p3), %v1463_v2  ;;  %v1468_v7 = vld [vmem:[%s1792_s2 + $0x18] sm:$0xff] (!%p281_p3)   ;;  %v1501_v14 = vmov (!%p281_p3), 1966171168   ;;  %v631_v18 = vshrl.u32 (!%p281_p3), %v630_v16, 7  ;;  %v1616_v39 = vld [vmem:[%s1794_s4] ss:$0 sm:$0xff] (!%p281_p3) }
   0x9   : > { %1408 = vmatpush3.bf16.msra.mxu0 (!%p281_p3), %v1462_v0  ;;  %1425 = vmatprep.subr.bf16.mxu1 (!%p281_p3), %v1499_v1  ;;  %v1469_v9 = vld [vmem:[%s1793_s3 + $0x18] sm:$0xff] (!%p281_p3)   ;;  %v628_v15 = vunpack.c.l.s4 (!%p281_p3), %v1501_v14  ;;  %v1626_v47 = vld [vmem:[%s1795_s5] ss:$0 sm:$0xff] (!%p281_p3)  ;;  %vm1043_vm9 = vcmask (!%p281_p3), 1041409   ;;  %vm1045_vm12 = vcmask (!%p281_p3), 1042434   ;;  %vm1047_vm13 = vcmask (!%p281_p3), 1043459  }
   0xa   : > { %1409 = vmatprep.subr.bf16.mxu0 (!%p281_p3), %v1464_v3  ;;  %v1604_v24 = vsub.s32 (!%p281_p3), 0, %v631_v18  ;;  %vm1049_vm14 = vcmask (!%p281_p3), 1044484   ;;  %vm1051_vm15 = vcmask (!%p281_p3), 1045509   ;;  %vm1053_vm0 = vcmask (!%p281_p3), 1046534  }
   0xb   : > { %v629_v17 = vunpack.c.0.s8 (!%p281_p3), %v628_v15 }
   0xc   : > { %1426 = vmatpush3.bf16.msra.mxu1 (!%p281_p3), %v1465_v4 }
   0xd   : > { %1410 = vmatpush3.bf16.msra.mxu0 (!%p281_p3), %v1464_v3  ;;  %1427 = vmatprep.subr.bf16.mxu1 (!%p281_p3), %v1499_v1  ;;  %v1601_v19 = vsub.s32 (!%p281_p3), %v629_v17, %v631_v18 }
   0xe   : > { %s1803_s24 = smov (!%p339_p4, %s1489_s24), 1  ;;  %1411 = vmatprep.subr.bf16.mxu0 %v1466_v5 }
   0xf   : > { %s1374_s17 = sshll.u32 %s1803_s24, 5  ;;  %s1375_s23 = sshll.u32 %s1803_s24, 3 }
  0x10   : > { %s346_s22 = scalar_lea.vmem %s1790_s0, %s1374_s17  ;;  %s356_s30 = scalar_lea.vmem %s1791_s1, %s1375_s23  ;;  %1428 = vmatpush3.bf16.msra.mxu1 %v1467_v6 }
  0x11   : > { %v1470_v8 = vld [vmem:[%s346_s22] sm:$0xff]   ;;  %1412 = vmatpush3.bf16.msra.mxu0 %v1466_v5  ;;  %1429 = vmatprep.subr.bf16.mxu1 %v1499_v1  ;;  %v1472_v11 = vld [vmem:[%s346_s22 + $0x8] sm:$0xff]   ;;  %v1473_v12 = vld [vmem:[%s346_s22 + $0x10] sm:$0xff]   ;;  %s1376_s14 = sshll.u32 %s1803_s24, 4  ;;  %s1737_s20 = scalar_lea.vmem %s1797_s7, %s1375_s23 }
  0x12   : > { %1415 = vmatprep.mubr.msk.bf16.mxu0 %vm439_vm1, %v1470_v8  ;;  %1413 = vmatprep.subr.bf16.mxu0 %v1468_v7  ;;  %v1471_v10 = vld [vmem:[%s356_s30] sm:$0xff]   ;;  %v1474_v13 = vld [vmem:[%s346_s22 + $0x18] sm:$0xff]   ;;  %s1716_s17 = scalar_lea.vmem %s1796_s6, %s1376_s14 }
  0x14   : > { %1430 = vmatpush3.bf16.msra.mxu1 %v1469_v9 }
  0x15   : > { %1414 = vmatpush3.bf16.msra.mxu0 %v1468_v7 }
  0x17   : > { %1432 = vmatmul.mubr.msk.bf16.vlgmr.msra.gmra.mrb[0].mxu1 %vm439_vm1, %v1471_v10 }
  0x18   : > { %1416 = vmatmul.mubr.msk.bf16.vlgmr.msra.gmra.mrb[0].mxu0 %vm439_vm1, %v1472_v11 }
  0x19   : > { %1419 = vmatprep.mubr.msk.bf16.mxu0 %vm439_vm1, %v1473_v12 }
  0x20   : > { %1420 = vmatmul.mubr.msk.bf16.gmra.mrb[4].mxu0 %vm439_vm1, %v1474_v13  ;;  %vm1055_vm1 = vcmask 1047559  }
  0xea   : > { %v593_v20 = vpop.f32.mrb[0].mxu1 }
  0xeb   : > { %v1417_v21 = vpop.f32.mrb[0].mxu0  ;;  %v626_v22 = vcombine.high %v593_v20, %v593_v20  ;;  %v633_v23 = vrot.slane %v593_v20, %v1601_v19  ;;  %v1433_v25 = vpop.f32.mrb[1].mxu1 }
  0xec   : > { %v486_v26 = vpop.f32.mrb[1].mxu0  ;;  %v1606_v27 = vpop.f32.mrb[2].mxu1  ;;  %v610_v38 = vcombine.high %v1417_v21, %v1417_v21 }
  0xed   : > { %v1418_v28 = vpop.f32.mrb[2].mxu0  ;;  %v640_v29 = vrot.slane %v626_v22, %v1601_v19  ;;  %v641_v30 = vcombine.high %v633_v23, %v633_v23  ;;  %v649_v31 = vrot.slane %v633_v23, %v1601_v19  ;;  %v1434_v32 = vpop.f32.mrb[3].mxu1  ;;  %v608_v40 = vcombine.high %v486_v26, %v486_v26 }
  0xee   : > { %v489_v33 = vpop.f32.mrb[3].mxu0  ;;  %v675_v41 = vcombine.high %v1606_v27, %v1606_v27  ;;  %v611_v48 = vcombine.high %v1418_v28, %v1418_v28 }
  0xef   : > { %v642_v34 = vcombine.high %v640_v29, %v640_v29  ;;  %v663_v35 = vrot.slane %v641_v30, %v1601_v19  ;;  %v656_v36 = vrot.slane %v640_v29, %v1601_v19  ;;  %v727_v37 = vrot.slane %v649_v31, %v1604_v24 }
  0xf0   : > { %v671_v42 = vcombine.high %v649_v31, %v649_v31  ;;  %v609_v50 = vcombine.high %v489_v33, %v489_v33 }
  0xf1   : > { %v670_v43 = vrot.slane %v642_v34, %v1601_v19  ;;  %v743_v44 = vrot.slane %v656_v36, %v1604_v24  ;;  %v731_v45 = vrot.slane %v663_v35, %v1604_v24  ;;  %v804_v46 = vadd.f32 %v727_v37, %v486_v26 }
  0xf2   : > { %v672_v49 = vcombine.high %v656_v36, %v656_v36  ;;  %v673_v51 = vcombine.high %v663_v35, %v663_v35  ;;  %v735_v60 = vrot.slane %v671_v42, %v1604_v24 }
  0xf3   : > { %v1628_v52 = vpop.f32.mrb[4].mxu0  ;;  %v747_v53 = vrot.slane %v670_v43, %v1604_v24  ;;  %v808_v54 = vadd.f32 %v1417_v21, %v743_v44  ;;  %v805_v55 = vadd.f32 %v731_v45, %v608_v40  ;;  %v827_v56 = vmul.f32 %v1616_v39, %v804_v46 }
  0xf4   : > { %v1632_v57 = vpop.f32.mrb[5].mxu0  ;;  %v674_v58 = vcombine.high %v670_v43, %v670_v43  ;;  %v751_v59 = vrot.slane %v672_v49, %v1604_v24  ;;  %v739_v61 = vrot.slane %v673_v51, %v1604_v24  ;;  %v806_v6 = vadd.f32 %v735_v60, %v489_v33 }
  0xf5   : > { %v1637_v62 = vpop.f32.mrb[6].mxu0  ;;  %v809_v63 = vadd.f32 %v747_v53, %v610_v38  ;;  %v831_v0 = vmul.f32 %v1616_v39, %v808_v54  ;;  %v828_v1 = vmul.f32 %v1616_v39, %v805_v55  ;;  %v850_v2 = vadd.f32 %v1626_v47, %v827_v56 }
  0xf6   : > { %v1642_v3 = vpop.f32.mrb[7].mxu0  ;;  %v755_v4 = vrot.slane %v674_v58, %v1604_v24  ;;  %v810_v5 = vadd.f32 %v1418_v28, %v751_v59  ;;  %v807_v7 = vadd.f32 %v739_v61, %v609_v50  ;;  %v829_v14 = vmul.f32 %v1616_v39, %v806_v6 }
  0xf7   : > { %v832_v8 = vmul.f32 %v1616_v39, %v809_v63  ;;  %v854_v9 = vadd.f32 %v1626_v47, %v831_v0  ;;  %v851_v10 = vadd.f32 %v1626_v47, %v828_v1  ;;  %vm866_vm3 = vcmp.gt.f32.partialorder %v850_v2, 0.0 }
  0xf8   : > { %v882_v11 = vmul.f32 0.2, %v850_v2  ;;  %v811_v12 = vadd.f32 %v755_v4, %v611_v48  ;;  %v833_v13 = vmul.f32 %v1616_v39, %v810_v5  ;;  %v682_v45 = vrot.slane %v1606_v27, %v1601_v19 }
  0xf9   : > { %v855_v15 = vadd.f32 %v1626_v47, %v832_v8  ;;  %vm870_vm4 = vcmp.gt.f32.partialorder %v854_v9, 0.0  ;;  %v886_v16 = vmul.f32 0.2, %v854_v9  ;;  %vm867_vm5 = vcmp.gt.f32.partialorder %v851_v10, 0.0 }
  0xfa   : > { %v883_v17 = vmul.f32 0.2, %v851_v10  ;;  %v898_v18 = vsel %vm866_vm3, %v850_v2, %v882_v11  ;;  %v834_v20 = vmul.f32 %v1616_v39, %v811_v12  ;;  %v856_v21 = vadd.f32 %v1626_v47, %v833_v13 }
  0xfb   : > { %vm871_vm6 = vcmp.gt.f32.partialorder %v855_v15, 0.0  ;;  %v887_v22 = vmul.f32 0.2, %v855_v15  ;;  %v902_v23 = vsel %vm870_vm4, %v854_v9, %v886_v16  ;;  %v915_v25 = vsel %vm914_vm2, %v898_v18, -inf }
  0xfc   : > { %v943_v26 = vsel %vm914_vm2, %v902_v23, -inf  ;;  %v899_v28 = vsel %vm867_vm5, %v851_v10, %v883_v17  ;;  %v916_v29 = vrot.slane %v915_v25, 4  ;;  %v857_v30 = vadd.f32 %v1626_v47, %v834_v20 }
  0xfd   : > { %v903_v31 = vsel %vm871_vm6, %v855_v15, %v887_v22  ;;  %v944_v32 = vrot.slane %v943_v26, 4  ;;  %v922_v33 = vsel %vm914_vm2, %v899_v28, -inf  ;;  %vm872_vm7 = vcmp.gt.f32.partialorder %v856_v21, 0.0 }
  0xfe   : > { %v950_v34 = vsel %vm914_vm2, %v903_v31, -inf  ;;  %v917_v35 = vmax.f32 %v915_v25, %v916_v29  ;;  %v923_v36 = vrot.slane %v922_v33, 4  ;;  %vm873_vm8 = vcmp.gt.f32.partialorder %v857_v30, 0.0 }
  0xff   : > { %v945_v37 = vmax.f32 %v943_v26, %v944_v32  ;;  %v951_v38 = vrot.slane %v950_v34, 4  ;;  %v888_v40 = vmul.f32 0.2, %v856_v21  ;;  %v889_v42 = vmul.f32 0.2, %v857_v30 }
 0x100   : > { %v918_v43 = vrot.slane %v917_v35, 2  ;;  %v924_v44 = vmax.f32 %v922_v33, %v923_v36  ;;  %v830_v46 = vmul.f32 %v1616_v39, %v807_v7  ;;  %v852_v51 = vadd.f32 %v1626_v47, %v829_v14 }
 0x101   : > { %v952_v48 = vmax.f32 %v950_v34, %v951_v38  ;;  %v904_v49 = vsel %vm872_vm7, %v856_v21, %v888_v40  ;;  %v905_v50 = vsel %vm873_vm8, %v857_v30, %v889_v42  ;;  %v946_v58 = vrot.slane %v945_v37, 2 }
 0x102   : > { %v919_v53 = vmax.f32 %v917_v35, %v918_v43  ;;  %v925_v54 = vrot.slane %v924_v44, 2  ;;  %v957_v55 = vsel %vm914_vm2, %v904_v49, -inf  ;;  %v964_v56 = vsel %vm914_vm2, %v905_v50, -inf }
 0x103   : > { %v953_v59 = vrot.slane %v952_v48, 2  ;;  %v958_v60 = vrot.slane %v957_v55, 4  ;;  %v965_v61 = vrot.slane %v964_v56, 4  ;;  %v853_v1 = vadd.f32 %v1626_v47, %v830_v46 }
 0x104   : > { %v920_v63 = vrot.slane %v919_v53, 1  ;;  %v926_v0 = vmax.f32 %v924_v44, %v925_v54  ;;  %v689_v2 = vrot.slane %v675_v41, %v1601_v19  ;;  %v690_v4 = vcombine.high %v682_v45, %v682_v45 }
 0x105   : > { %v959_v5 = vmax.f32 %v957_v55, %v958_v60  ;;  %v966_v6 = vmax.f32 %v964_v56, %v965_v61  ;;  %vm868_vm10 = vcmp.gt.f32.partialorder %v852_v51, 0.0  ;;  %v884_v9 = vmul.f32 0.2, %v852_v51 }
 0x106   : > { %v921_v7 = vmax.f32 %v919_v53, %v920_v63  ;;  %v927_v8 = vrot.slane %v926_v0, 1  ;;  %v947_v10 = vmax.f32 %v945_v37, %v946_v58  ;;  %v954_v11 = vmax.f32 %v952_v48, %v953_v59 }
 0x107   : > { %v960_v12 = vrot.slane %v959_v5, 2  ;;  %vm869_vm11 = vcmp.gt.f32.partialorder %v853_v1, 0.0  ;;  %v885_v15 = vmul.f32 0.2, %v853_v1  ;;  %v967_v17 = vrot.slane %v966_v6, 2 }
 0x108   : > { %v928_v13 = vmax.f32 %v926_v0, %v927_v8  ;;  %v1378_v14 = vpack.c.bf16 %v921_v7, %v921_v7  ;;  %v900_v18 = vsel %vm868_vm10, %v852_v51, %v884_v9  ;;  %v691_v20 = vcombine.high %v689_v2, %v689_v2 }
 0x109   : > { %v961_v16 = vmax.f32 %v959_v5, %v960_v12  ;;  %v901_v21 = vsel %vm869_vm11, %v853_v1, %v885_v15  ;;  %v948_v22 = vrot.slane %v947_v10, 1  ;;  %v955_v23 = vrot.slane %v954_v11, 1 }
 0x10a   : > { %v1670_v27 = vsel %vm1043_vm9, %v928_v13, %v921_v7  ;;  %v1379_v41 = vpack.c.bf16 %v928_v13, %v928_v13  ;;  %v1673_v25 = vrot.slane %v682_v45, %v1601_v19  ;;  %v1676_v26 = vrot.slane %v690_v4, %v1601_v19 }
 0x10b   : > { %v1132_v28 = vunpack.c.l.b16 %v1378_v14  ;;  %v929_v30 = vsel %vm914_vm2, %v900_v18, -inf  ;;  %v936_v31 = vsel %vm914_vm2, %v901_v21, -inf  ;;  %v962_v32 = vrot.slane %v961_v16, 1 }
 0x10c   : > { %v1133_v29 = vunpack.c.l.b16 %v1379_v41  ;;  %v968_v33 = vmax.f32 %v966_v6, %v967_v17  ;;  %v930_v34 = vrot.slane %v929_v30, 4  ;;  %v614_v35 = vcombine.high %v1628_v52, %v1628_v52 }
 0x10d   : > { %v937_v37 = vrot.slane %v936_v31, 4  ;;  %v705_v38 = vrot.slane %v689_v2, %v1601_v19  ;;  %v719_v40 = vrot.slane %v691_v20, %v1601_v19  ;;  %v949_v42 = vmax.f32 %v947_v10, %v948_v22 }
 0x10e   : > { %v1683_v36 = vsel %vm1043_vm9, %v1133_v29, %v1132_v28  ;;  %v956_v43 = vmax.f32 %v954_v11, %v955_v23  ;;  %v931_v44 = vmax.f32 %v929_v30, %v930_v34  ;;  %v612_v45 = vcombine.high %v1632_v57, %v1632_v57 }
 0x10f   : > { %v938_v46 = vmax.f32 %v936_v31, %v937_v37  ;;  %v775_v48 = vrot.slane %v705_v38, %v1604_v24  ;;  %v779_v49 = vrot.slane %v719_v40, %v1604_v24  ;;  %v759_v50 = vrot.slane %v1673_v25, %v1604_v24 }
 0x110   : > { %v963_v51 = vmax.f32 %v961_v16, %v962_v32  ;;  %v969_v53 = vrot.slane %v968_v33, 1  ;;  %v932_v54 = vrot.slane %v931_v44, 2  ;;  %v763_v19 = vrot.slane %v1676_v26, %v1604_v24 }
 0x111   : > { %v939_v55 = vrot.slane %v938_v46, 2  ;;  %v816_v56 = vadd.f32 %v1628_v52, %v775_v48  ;;  %v817_v58 = vadd.f32 %v779_v49, %v614_v35  ;;  %v812_v59 = vadd.f32 %v759_v50, %v1632_v57 }
 0x112   : > { %v1382_v60 = vpack.c.bf16 %v949_v42, %v949_v42  ;;  %v933_v61 = vmax.f32 %v931_v44, %v932_v54  ;;  %v813_v63 = vadd.f32 %v763_v19, %v612_v45  ;;  %v721_v0 = vcombine.high %v705_v38, %v705_v38 }
 0x113   : > { %v1383_v1 = vpack.c.bf16 %v956_v43, %v956_v43  ;;  %v940_v2 = vmax.f32 %v938_v46, %v939_v55  ;;  %v835_v4 = vmul.f32 %v1616_v39, %v812_v59  ;;  %v970_v5 = vmax.f32 %v968_v33, %v969_v53 }
 0x114   : > { %v934_v6 = vrot.slane %v933_v61, 1  ;;  %v836_v7 = vmul.f32 %v1616_v39, %v813_v63  ;;  %v783_v8 = vrot.slane %v721_v0, %v1604_v24  ;;  %v1384_v52 = vpack.c.bf16 %v963_v51, %v963_v51 }
 0x115   : > { %v941_v9 = vrot.slane %v940_v2, 1  ;;  %v1136_v57 = vunpack.c.l.b16 %v1382_v60  ;;  %v723_v11 = vcombine.high %v719_v40, %v719_v40  ;;  %v1137_v13 = vunpack.c.l.b16 %v1383_v1 }
 0x116   : > { %v935_v10 = vmax.f32 %v933_v61, %v934_v6  ;;  %v818_v12 = vadd.f32 %v1637_v62, %v783_v8  ;;  %v839_v15 = vmul.f32 %v1616_v39, %v816_v56  ;;  %v858_v16 = vadd.f32 %v1626_v47, %v835_v4 }
 0x117   : > { %v942_v14 = vmax.f32 %v940_v2, %v941_v9  ;;  %v1385_v17 = vpack.c.bf16 %v970_v5, %v970_v5  ;;  %v859_v20 = vadd.f32 %v1626_v47, %v836_v7  ;;  %v1138_v21 = vunpack.c.l.b16 %v1384_v52 }
 0x118   : > { %v1046_v18 = vsel %vm1045_vm12, %v935_v10, %v1670_v27  ;;  %v1380_v41 = vpack.c.bf16 %v935_v10, %v935_v10  ;;  %v840_v28 = vmul.f32 %v1616_v39, %v817_v58  ;;  %v615_v31 = vcombine.high %v1637_v62, %v1637_v62 }
 0x119   : > { %v1048_v22 = vsel %vm1047_vm13, %v942_v14, %v1046_v18  ;;  %v1381_v23 = vpack.c.bf16 %v942_v14, %v942_v14  ;;  %v787_v32 = vrot.slane %v723_v11, %v1604_v24  ;;  %v862_v34 = vadd.f32 %v1626_v47, %v839_v15 }
 0x11a   : > { %v1050_v29 = vsel %vm1049_vm14, %v949_v42, %v1048_v22  ;;  %v1134_v30 = vunpack.c.l.b16 %v1380_v41  ;;  %vm874_vm3 = vcmp.gt.f32.partialorder %v858_v16, 0.0  ;;  %vm875_vm4 = vcmp.gt.f32.partialorder %v859_v20, 0.0 }
 0x11b   : > { %v1052_v27 = vsel %vm1051_vm15, %v956_v43, %v1050_v29  ;;  %v1135_v33 = vunpack.c.l.b16 %v1381_v23  ;;  %v890_v62 = vmul.f32 0.2, %v858_v16  ;;  %v863_v42 = vadd.f32 %v1626_v47, %v840_v28 }
 0x11c   : > { %v1054_v35 = vsel %vm1053_vm0, %v963_v51, %v1052_v27  ;;  %v1149_v37 = vsel %vm1045_vm12, %v1134_v30, %v1683_v36  ;;  %v891_v44 = vmul.f32 0.2, %v859_v20  ;;  %v1139_v43 = vunpack.c.l.b16 %v1385_v17 }
 0x11d   : > { %v1056_v38 = vsel %vm1055_vm1, %v970_v5, %v1054_v35  ;;  %v1150_v40 = vsel %vm1047_vm13, %v1135_v33, %v1149_v37  ;;  %v906_v46 = vsel %vm874_vm3, %v858_v16, %v890_v62  ;;  %v819_v48 = vadd.f32 %v787_v32, %v615_v31 }
 0x11e   : > { %1066 = vst [vmem:[%s1716_s17] sm:$0xff] %v1056_v38  ;;  %v1151_v45 = vsel %vm1049_vm14, %v1136_v57, %v1150_v40  ;;  %vm878_vm5 = vcmp.gt.f32.partialorder %v862_v34, 0.0  ;;  %v907_v36 = vsel %vm875_vm4, %v859_v20, %v891_v44  ;;  %v971_v50 = vsel %vm914_vm2, %v906_v46, -inf }
 0x11f   : > { %v1152_v49 = vsel %vm1051_vm15, %v1137_v13, %v1151_v45  ;;  %v894_v53 = vmul.f32 0.2, %v862_v34  ;;  %v972_v54 = vrot.slane %v971_v50, 4  ;;  %v978_v19 = vsel %vm914_vm2, %v907_v36, -inf }
 0x120   : > { %v1153_v51 = vsel %vm1053_vm0, %v1138_v21, %v1152_v49  ;;  %v895_v56 = vmul.f32 0.2, %v863_v42  ;;  %v979_v58 = vrot.slane %v978_v19, 4  ;;  %v841_v59 = vmul.f32 %v1616_v39, %v818_v12 }
 0x121   : > { %v1154_v55 = vsel %vm1055_vm1, %v1139_v43, %v1153_v51  ;;  %vm879_vm6 = vcmp.gt.f32.partialorder %v863_v42, 0.0  ;;  %v973_v61 = vmax.f32 %v971_v50, %v972_v54  ;;  %v842_v63 = vmul.f32 %v1616_v39, %v819_v48 }
 0x122   : > { %v1162_v60 = vpack.c.b16 %v1154_v55, %v1154_v55  ;;  %v980_v0 = vmax.f32 %v978_v19, %v979_v58  ;;  %v864_v1 = vadd.f32 %v1626_v47, %v841_v59  ;;  %v910_v2 = vsel %vm878_vm5, %v862_v34, %v894_v53 }
 0x123   : > { %v974_v4 = vrot.slane %v973_v61, 2  ;;  %v865_v5 = vadd.f32 %v1626_v47, %v842_v63  ;;  %v911_v6 = vsel %vm879_vm6, %v863_v42, %v895_v56  ;;  %v720_v57 = vcombine.high %v1673_v25, %v1673_v25 }
 0x124   : > { %1166 = vst [vmem:[%s1737_s20] sm:$0xf] %v1162_v60  ;;  %v981_v7 = vrot.slane %v980_v0, 2  ;;  %vm880_vm7 = vcmp.gt.f32.partialorder %v864_v1, 0.0  ;;  %v896_v8 = vmul.f32 0.2, %v864_v1  ;;  %v999_v10 = vsel %vm914_vm2, %v910_v2, -inf }
 0x125   : > { %v975_v52 = vmax.f32 %v973_v61, %v974_v4  ;;  %vm881_vm8 = vcmp.gt.f32.partialorder %v865_v5, 0.0  ;;  %v897_v9 = vmul.f32 0.2, %v865_v5  ;;  %v722_v13 = vcombine.high %v1676_v26, %v1676_v26 }
 0x126   : > { %v982_v11 = vmax.f32 %v980_v0, %v981_v7  ;;  %v912_v12 = vsel %vm880_vm7, %v864_v1, %v896_v8  ;;  %v1006_v14 = vsel %vm914_vm2, %v911_v6, -inf  ;;  %v613_v41 = vcombine.high %v1642_v3, %v1642_v3 }
 0x127   : > { %v976_v15 = vrot.slane %v975_v52, 1  ;;  %v913_v16 = vsel %vm881_vm8, %v865_v5, %v897_v9  ;;  %v1013_v18 = vsel %vm914_vm2, %v912_v12, -inf  ;;  %v1000_v20 = vrot.slane %v999_v10, 4 }
 0x128   : > { %v983_v17 = vrot.slane %v982_v11, 1  ;;  %v1020_v25 = vsel %vm914_vm2, %v913_v16, -inf  ;;  %v767_v22 = vrot.slane %v720_v57, %v1604_v24  ;;  %v1007_v23 = vrot.slane %v1006_v14, 4 }
 0x129   : > { %v977_v21 = vmax.f32 %v975_v52, %v976_v15  ;;  %v771_v26 = vrot.slane %v722_v13, %v1604_v24  ;;  %v1014_v30 = vrot.slane %v1013_v18, 4  ;;  %v1021_v33 = vrot.slane %v1020_v25, 4 }
 0x12a   : > { %v984_v28 = vmax.f32 %v982_v11, %v983_v17  ;;  %v814_v31 = vadd.f32 %v767_v22, %v1642_v3  ;;  %v1001_v35 = vmax.f32 %v999_v10, %v1000_v20  ;;  %v1008_v62 = vmax.f32 %v1006_v14, %v1007_v23 }
 0x12b   : > { %v1386_v29 = vpack.c.bf16 %v977_v21, %v977_v21  ;;  %v815_v34 = vadd.f32 %v771_v26, %v613_v41  ;;  %v1015_v44 = vmax.f32 %v1013_v18, %v1014_v30  ;;  %v1022_v45 = vmax.f32 %v1020_v25, %v1021_v33 }
 0x12c   : > { %v1057_v32 = vsel %vm1043_vm9, %v984_v28, %v977_v21  ;;  %v1387_v27 = vpack.c.bf16 %v984_v28, %v984_v28  ;;  %v837_v37 = vmul.f32 %v1616_v39, %v814_v31  ;;  %v1002_v46 = vrot.slane %v1001_v35, 2 }
 0x12d   : > { %v1140_v38 = vunpack.c.l.b16 %v1386_v29  ;;  %v838_v42 = vmul.f32 %v1616_v39, %v815_v34  ;;  %v1009_v49 = vrot.slane %v1008_v62, 2  ;;  %v1016_v50 = vrot.slane %v1015_v44, 2 }
 0x12e   : > { %v1141_v40 = vunpack.c.l.b16 %v1387_v27  ;;  %v860_v24 = vadd.f32 %v1626_v47, %v837_v37  ;;  %v1023_v53 = vrot.slane %v1022_v45, 2  ;;  %v1003_v19 = vmax.f32 %v1001_v35, %v1002_v46 }
 0x12f   : > { %v861_v3 = vadd.f32 %v1626_v47, %v838_v42  ;;  %v1010_v58 = vmax.f32 %v1008_v62, %v1009_v49  ;;  %v1017_v60 = vmax.f32 %v1015_v44, %v1016_v50 }
 0x130   : > { %v1155_v43 = vsel %vm1043_vm9, %v1141_v40, %v1140_v38  ;;  %vm876_vm10 = vcmp.gt.f32.partialorder %v860_v24, 0.0  ;;  %v892_v48 = vmul.f32 0.2, %v860_v24  ;;  %v1024_v61 = vmax.f32 %v1022_v45, %v1023_v53 }
 0x131   : > { %vm877_vm11 = vcmp.gt.f32.partialorder %v861_v3, 0.0  ;;  %v893_v36 = vmul.f32 0.2, %v861_v3  ;;  %v1004_v0 = vrot.slane %v1003_v19, 1  ;;  %v1011_v2 = vrot.slane %v1010_v58, 1 }
 0x132   : > { %v908_v51 = vsel %vm876_vm10, %v860_v24, %v892_v48  ;;  %v1018_v5 = vrot.slane %v1017_v60, 1  ;;  %v1025_v7 = vrot.slane %v1024_v61, 1 }
 0x133   : > { %v909_v54 = vsel %vm877_vm11, %v861_v3, %v893_v36  ;;  %v985_v39 = vsel %vm914_vm2, %v908_v51, -inf  ;;  %v1005_v52 = vmax.f32 %v1003_v19, %v1004_v0  ;;  %v1012_v57 = vmax.f32 %v1010_v58, %v1011_v2 }
 0x134   : > { %v986_v55 = vrot.slane %v985_v39, 4  ;;  %v992_v56 = vsel %vm914_vm2, %v909_v54, -inf  ;;  %v1019_v11 = vmax.f32 %v1017_v60, %v1018_v5  ;;  %v1026_v13 = vmax.f32 %v1024_v61, %v1025_v7 }
 0x135   : > { %v993_v59 = vrot.slane %v992_v56, 4  ;;  %v1390_v15 = vpack.c.bf16 %v1005_v52, %v1005_v52  ;;  %v1391_v18 = vpack.c.bf16 %v1012_v57, %v1012_v57 }
 0x136   : > { %v987_v47 = vmax.f32 %v985_v39, %v986_v55  ;;  %v1392_v21 = vpack.c.bf16 %v1019_v11, %v1019_v11  ;;  %v1393_v23 = vpack.c.bf16 %v1026_v13, %v1026_v13 }
 0x137   : > { %v994_v63 = vmax.f32 %v992_v56, %v993_v59  ;;  %v1144_v29 = vunpack.c.l.b16 %v1390_v15 }
 0x138   : > { %v988_v1 = vrot.slane %v987_v47, 2  ;;  %v1146_v34 = vunpack.c.l.b16 %v1392_v21  ;;  %v1147_v37 = vunpack.c.l.b16 %v1393_v23 }
 0x139   : > { %v995_v4 = vrot.slane %v994_v63, 2 }
 0x13a   : > { %v989_v6 = vmax.f32 %v987_v47, %v988_v1 }
 0x13b   : > { %v996_v8 = vmax.f32 %v994_v63, %v995_v4 }
 0x13c   : > { %v990_v9 = vrot.slane %v989_v6, 1 }
 0x13d   : > { %v997_v10 = vrot.slane %v996_v8, 1 }
 0x13e   : > { %v991_v12 = vmax.f32 %v989_v6, %v990_v9 }
 0x13f   : > { %v998_v14 = vmax.f32 %v996_v8, %v997_v10 }
 0x140   : > { %v1058_v16 = vsel %vm1045_vm12, %v991_v12, %v1057_v32  ;;  %v1388_v17 = vpack.c.bf16 %v991_v12, %v991_v12  ;;  %v1145_v32 = vunpack.c.l.b16 %v1391_v18 }
 0x141   : > { %v1059_v41 = vsel %vm1047_vm13, %v998_v14, %v1058_v16  ;;  %v1389_v20 = vpack.c.bf16 %v998_v14, %v998_v14 }
 0x142   : > { %v1060_v25 = vsel %vm1049_vm14, %v1005_v52, %v1059_v41  ;;  %v1142_v22 = vunpack.c.l.b16 %v1388_v17 }
 0x143   : > { %v1061_v28 = vsel %vm1051_vm15, %v1012_v57, %v1060_v25  ;;  %v1143_v26 = vunpack.c.l.b16 %v1389_v20 }
 0x144   : > { %v1062_v30 = vsel %vm1053_vm0, %v1019_v11, %v1061_v28  ;;  %v1156_v31 = vsel %vm1045_vm12, %v1142_v22, %v1155_v43 }
 0x145   : > { %v1063_v27 = vsel %vm1055_vm1, %v1026_v13, %v1062_v30  ;;  %v1157_v33 = vsel %vm1047_vm13, %v1143_v26, %v1156_v31 }
 0x146   : > { %1067 = vst [vmem:[%s1716_s17 + $0x8] sm:$0xff] %v1063_v27  ;;  %v1158_v35 = vsel %vm1049_vm14, %v1144_v29, %v1157_v33 }
 0x147   : > { %v1159_v62 = vsel %vm1051_vm15, %v1145_v32, %v1158_v35 }
 0x148   : > { %v1160_v38 = vsel %vm1053_vm0, %v1146_v34, %v1159_v62 }
 0x149   : > { %v1161_v40 = vsel %vm1055_vm1, %v1147_v37, %v1160_v38 }
 0x14a   : > { %v1163_v42 = vpack.c.b16 %v1161_v40, %v1161_v40 }
 0x14c   : > { %1167 = vst [vmem:[%s1737_s20 + $0x4] sm:$0xf] %v1163_v42 }
 0x14d PF: > { %s18_s26 = sadd.s32 1, %s1497_s26   ;;  %s1798_s24 = smov %s1493_s25 }
 0x14e   : > { %p15_p5 = scmp.ge.s32.totalorder %s18_s26, 4   ;;  %s1799_s25 = smov %s1801_s27 }
 0x150   :  { %17 = sbr.rel (!%p15_p5) target bundleno = 2 (0x2), region = 89 }

// kernel: dgcnn_forward.15
= control target key start
LH: loop header
LB: loop body
LE: loop exit
PB: predicated region body
PF: predicated region fallthrough
CT: control target
= control target key end

     0   :  { %s649_s9 = smov 0   ;;  %s651_s10 = smov 0   ;;  %s745_s0 = inlined_call_operand.vmem [shape: f32[2,16,128], index: 0, kind: input, shape index: {}, may-alias: {0,1}]   ;;  %s746_s1 = inlined_call_operand.vmem [shape: f32[2,16,128], index: 1, kind: input, shape index: {}, may-alias: {0,1}]   ;;  %s747_s2 = inlined_call_operand.vmem [shape: s32[2,16,4], index: 2, kind: output, shape index: {}]  }
   0x1   :  { %s653_s11 = smov 0  }
   0x2 LB: > { %s24_s12 = sadd.s32 1, %s628_s10  ;;  %p542_p0 = scmp.ge.s32.totalorder %s632_s11, 1  ;;  %s632_s11 = sphi %s653_s11, %s12_s11   ;;  %s628_s10 = sphi %s651_s10, %s749_s10   ;;  %s624_s9 = sphi %s649_s9, %s748_s9  }
   0x3   : > { %p26_p1 = scmp.ge.s32.totalorder %s24_s12, 2  ;;  %p143_p2 = scmp.lt.s32.totalorder %s632_s11, 3 }
   0x5   : > { %s751_s12 = smov (%p26_p1, %s24_s12), 0  ;;  %p144_p3 = pnand %p542_p0, %p143_p2 }
   0x6   : > { %p179_p4 = scmp.lt.s32.totalorder (!%p144_p3), %s624_s9, 1  ;;  %v330_v13 = vlaneseq (!%p144_p3)  ;;  %vm339_vm0 = vcmask (!%p144_p3), 130048  }
   0x7   : > { %147 = sbr.rel (%p144_p3) target bundleno = 1463 (0x5b7), region = 28 }
   0x8   : > { %v331_v15 = vshrl.u32 (!%p144_p3), %v330_v13, 7  ;;  %v679_v28 = vand.u32 (!%p144_p3), 127, %v330_v13 }
   0xa   : > { %v332_v18 = vsub.s32 (!%p144_p3), 0, %v331_v15  ;;  %v682_v29 = vcvt.s32.f32 (!%p144_p3), %v679_v28  ;;  %vm356_vm7 = vcmp.eq.s32.totalorder (!%p144_p3), %v679_v28, 0  ;;  %vm381_vm9 = vcmp.eq.s32.totalorder (!%p144_p3), %v679_v28, 1 }
   0xb   : > { %vm406_vm14 = vcmp.eq.s32.totalorder (!%p144_p3), %v679_v28, 2 }
   0xe   : > { %s753_s9 = smov (!%p179_p4, %s624_s9), 1 }
   0xf   : > { %s667_s13 = sshll.u32 %s753_s9, 4 }
  0x10   : > { %s192_s16 = scalar_lea.vmem %s746_s1, %s667_s13  ;;  %s186_s19 = scalar_lea.vmem %s745_s0, %s667_s13 }
  0x11   : > { %v205_v0 = vld [vmem:[%s192_s16] sm:$0xff]  ;;  %v206_v1 = vld [vmem:[%s192_s16 + $0x8] sm:$0xff]  ;;  %s201_s22 = scalar_lea.vmem %s747_s2, %s667_s13 }
  0x12   : > { %v288_v2 = vmul.f32 %v205_v0, %v205_v0  ;;  %v565_v3 = vpack.c.bf16 %v206_v1, %v205_v0  ;;  %v203_v4 = vld [vmem:[%s186_s19] sm:$0xff]  ;;  %v289_v6 = vmul.f32 %v206_v1, %v206_v1  ;;  %v204_v7 = vld [vmem:[%s186_s19 + $0x8] sm:$0xff] }
  0x13   : > { %562 = vmatprep.mubr.f32.mxu0 %v203_v4  ;;  %v282_v5 = vmul.f32 %v203_v4, %v203_v4  ;;  %v283_v8 = vmul.f32 %v204_v7, %v204_v7 }
  0x14   : > { %290 = vadd.xlane.f32.xlu0 %v288_v2  ;;  %566 = vmatprep.subr.bf16.mxu0 %v565_v3 }
  0x15   : > { %568 = vmatpush3.bf16.xpose.msra.mxu0 %v565_v3  ;;  %284 = vadd.xlane.f32.xlu1 %v282_v5 }
  0x18   : > { %292 = vadd.xlane.f32.xlu0 %v289_v6 }
  0x19   : > { %286 = vadd.xlane.f32.xlu1 %v283_v8 }
  0x1c   : > { %563 = vmatmul.mubr.f32.vlgmr.msra.gmra.mrb[0].mxu0 %v204_v7 }
  0xa1   : > { %v291_v9 = vpop.xlane.xlu0 %290 }
  0xa2   : > { %298 = vxpose.xlu0.b32.start [1/2] (short) (narrow) %v291_v9, 8  ;;  %v285_v14 = vpop.xlane.xlu1 %284 }
  0xa5   : > { %v293_v10 = vpop.xlane.xlu0 %292 }
  0xa6   : > { %299 = vxpose.xlu0.b32.end [2/2] (short) (narrow) %v293_v10, 8  ;;  %v287_v19 = vpop.xlane.xlu1 %286 }
  0xef   : > { %v564_v11 = vpop.f32.mrb[0].mxu0 }
  0xf0   : > { %v273_v12 = vpop.f32.mrb[1].mxu0  ;;  %v295_v17 = vmul.f32 2.0, %v564_v11 }
  0xf1   : > { %v294_v16 = vmul.f32 2.0, %v273_v12 }
  0xf2   : > { %v297_v22 = vsub.f32 %v295_v17, %v287_v19 }
  0xf3   : > { %v296_v20 = vsub.f32 %v294_v16, %v285_v14 }
 0x122   : > { %v314_v21 = vpop.trf.xlu0 }
 0x123   : > { %v333_v23 = vrot.slane %v314_v21, %v332_v18 }
 0x125   : > { %v334_v24 = vsub.f32 %v296_v20, %v333_v23  ;;  %v335_v25 = vsub.f32 %v297_v22, %v333_v23 }
 0x127   : > { %v340_v26 = vsel %vm339_vm0, %v334_v24, -inf  ;;  %v343_v27 = vsel %vm339_vm0, %v335_v25, -inf }
 0x128   : > { %341 = vmax.xlane.f32.xlu1 %v340_v26 }
 0x12c   : > { %344 = vmax.xlane.f32.xlu1 %v343_v27 }
 0x1b5   : > { %v342_v30 = vpop.xlane.xlu1 %341 }
 0x1b6   : > { %vm346_vm1 = vcmp.ge.f32.partialorder %v334_v24, %v342_v30 }
 0x1b7   : > { %v348_v31 = vsel %vm346_vm1, %v682_v29, 16.0 }
 0x1b8   : > { %v350_v32 = vsel %vm339_vm0, %v348_v31, inf }
 0x1b9   : > { %351 = vmin.xlane.f32.xlu1 %v350_v32  ;;  %v345_v33 = vpop.xlane.xlu1 %344 }
 0x1ba   : > { %vm347_vm2 = vcmp.ge.f32.partialorder %v335_v25, %v345_v33 }
 0x1bb   : > { %v349_v34 = vsel %vm347_vm2, %v682_v29, 16.0 }
 0x1bc   : > { %v353_v35 = vsel %vm339_vm0, %v349_v34, inf }
 0x1bd   : > { %354 = vmin.xlane.f32.xlu1 %v353_v35 }
 0x246   : > { %v352_v36 = vpop.xlane.xlu1 %351 }
 0x247   : > { %vm361_vm3 = vcmp.eq.f32.partialorder %v682_v29, %v352_v36  ;;  %v569_v48 = vtrunc.f32 %v352_v36 }
 0x248   : > { %v363_v37 = vsel %vm361_vm3, -inf, %v334_v24  ;;  %vm431_vm3 = vcmp.eq.s32.totalorder %v679_v28, 3 }
 0x249   : > { %v365_v38 = vsel %vm339_vm0, %v363_v37, -inf  ;;  %v570_v49 = vcvt.f32.s32 %v569_v48 }
 0x24a   : > { %366 = vmax.xlane.f32.xlu1 %v365_v38  ;;  %v690_v39 = vpop.xlane.xlu1 %354 }
 0x24b   : > { %vm362_vm4 = vcmp.eq.f32.partialorder %v682_v29, %v690_v39  ;;  %v359_v55 = vsel %vm356_vm7, %v570_v49, 0  ;;  %v571_v17 = vtrunc.f32 %v690_v39 }
 0x24c   : > { %v364_v40 = vsel %vm362_vm4, -inf, %v335_v25  ;;  %vm436_vm4 = vcmask 31744  }
 0x24d   : > { %v368_v41 = vsel %vm339_vm0, %v364_v40, -inf  ;;  %v572_v22 = vcvt.f32.s32 %v571_v17 }
 0x24e   : > { %369 = vmax.xlane.f32.xlu1 %v368_v41 }
 0x24f   : > { %v360_v30 = vsel %vm356_vm7, %v572_v22, 0 }
 0x2d7   : > { %v367_v42 = vpop.xlane.xlu1 %366 }
 0x2d8   : > { %vm371_vm5 = vcmp.ge.f32.partialorder %v363_v37, %v367_v42 }
 0x2d9   : > { %v373_v43 = vsel %vm371_vm5, %v682_v29, 16.0 }
 0x2da   : > { %v375_v44 = vsel %vm339_vm0, %v373_v43, inf }
 0x2db   : > { %376 = vmin.xlane.f32.xlu1 %v375_v44  ;;  %v370_v45 = vpop.xlane.xlu1 %369 }
 0x2dc   : > { %vm372_vm6 = vcmp.ge.f32.partialorder %v364_v40, %v370_v45 }
 0x2dd   : > { %v374_v46 = vsel %vm372_vm6, %v682_v29, 16.0 }
 0x2de   : > { %v378_v47 = vsel %vm339_vm0, %v374_v46, inf }
 0x2df   : > { %379 = vmin.xlane.f32.xlu1 %v378_v47 }
 0x368   : > { %v377_v50 = vpop.xlane.xlu1 %376 }
 0x369   : > { %v573_v51 = vtrunc.f32 %v377_v50  ;;  %vm386_vm8 = vcmp.eq.f32.partialorder %v682_v29, %v377_v50 }
 0x36a   : > { %v388_v52 = vsel %vm386_vm8, -inf, %v363_v37 }
 0x36b   : > { %v574_v53 = vcvt.f32.s32 %v573_v51  ;;  %v390_v54 = vsel %vm339_vm0, %v388_v52, -inf }
 0x36c   : > { %391 = vmax.xlane.f32.xlu1 %v390_v54  ;;  %v380_v56 = vpop.xlane.xlu1 %379 }
 0x36d   : > { %v384_v57 = vsel %vm381_vm9, %v574_v53, %v359_v55  ;;  %vm387_vm10 = vcmp.eq.f32.partialorder %v682_v29, %v380_v56  ;;  %v575_v18 = vtrunc.f32 %v380_v56 }
 0x36e   : > { %v389_v58 = vsel %vm387_vm10, -inf, %v364_v40 }
 0x36f   : > { %v393_v59 = vsel %vm339_vm0, %v389_v58, -inf  ;;  %v576_v23 = vcvt.f32.s32 %v575_v18 }
 0x370   : > { %394 = vmax.xlane.f32.xlu1 %v393_v59 }
 0x371   : > { %v385_v31 = vsel %vm381_vm9, %v576_v23, %v360_v30 }
 0x3f9   : > { %v392_v60 = vpop.xlane.xlu1 %391 }
 0x3fa   : > { %vm396_vm11 = vcmp.ge.f32.partialorder %v388_v52, %v392_v60 }
 0x3fb   : > { %v398_v61 = vsel %vm396_vm11, %v682_v29, 16.0 }
 0x3fc   : > { %v400_v62 = vsel %vm339_vm0, %v398_v61, inf }
 0x3fd   : > { %401 = vmin.xlane.f32.xlu1 %v400_v62  ;;  %v395_v63 = vpop.xlane.xlu1 %394 }
 0x3fe   : > { %vm397_vm12 = vcmp.ge.f32.partialorder %v389_v58, %v395_v63 }
 0x3ff   : > { %v399_v0 = vsel %vm397_vm12, %v682_v29, 16.0 }
 0x400   : > { %v403_v1 = vsel %vm339_vm0, %v399_v0, inf }
 0x401   : > { %404 = vmin.xlane.f32.xlu1 %v403_v1 }
 0x48a   : > { %v402_v2 = vpop.xlane.xlu1 %401 }
 0x48b   : > { %v577_v3 = vtrunc.f32 %v402_v2  ;;  %vm411_vm13 = vcmp.eq.f32.partialorder %v682_v29, %v402_v2 }
 0x48c   : > { %v413_v4 = vsel %vm411_vm13, -inf, %v388_v52 }
 0x48d   : > { %v578_v5 = vcvt.f32.s32 %v577_v3  ;;  %v415_v6 = vsel %vm339_vm0, %v413_v4, -inf }
 0x48e   : > { %416 = vmax.xlane.f32.xlu1 %v415_v6  ;;  %v405_v7 = vpop.xlane.xlu1 %404 }
 0x48f   : > { %v409_v8 = vsel %vm406_vm14, %v578_v5, %v384_v57  ;;  %vm412_vm15 = vcmp.eq.f32.partialorder %v682_v29, %v405_v7  ;;  %v579_v19 = vtrunc.f32 %v405_v7 }
 0x490   : > { %v414_v9 = vsel %vm412_vm15, -inf, %v389_v58 }
 0x491   : > { %v418_v10 = vsel %vm339_vm0, %v414_v9, -inf  ;;  %v580_v25 = vcvt.f32.s32 %v579_v19 }
 0x492   : > { %419 = vmax.xlane.f32.xlu0 %v418_v10 }
 0x493   : > { %v410_v33 = vsel %vm406_vm14, %v580_v25, %v385_v31 }
 0x51b   : > { %v417_v11 = vpop.xlane.xlu1 %416 }
 0x51c   : > { %vm421_vm1 = vcmp.ge.f32.partialorder %v413_v4, %v417_v11 }
 0x51d   : > { %v423_v12 = vsel %vm421_vm1, %v682_v29, 16.0 }
 0x51e   : > { %v425_v13 = vsel %vm339_vm0, %v423_v12, inf }
 0x51f   : > { %v420_v14 = vpop.xlane.xlu0 %419  ;;  %426 = vmin.xlane.f32.xlu1 %v425_v13 }
 0x520   : > { %vm422_vm2 = vcmp.ge.f32.partialorder %v414_v9, %v420_v14 }
 0x521   : > { %v424_v15 = vsel %vm422_vm2, %v682_v29, 16.0 }
 0x522   : > { %v428_v16 = vsel %vm339_vm0, %v424_v15, inf }
 0x523   : > { %429 = vmin.xlane.f32.xlu1 %v428_v16 }
 0x5ac   : > { %v427_v20 = vpop.xlane.xlu1 %426 }
 0x5ad   : > { %v581_v21 = vtrunc.f32 %v427_v20 }
 0x5af   : > { %v582_v24 = vcvt.f32.s32 %v581_v21 }
 0x5b0   : > { %v430_v26 = vpop.xlane.xlu1 %429 }
 0x5b1   : > { %v434_v27 = vsel %vm431_vm3, %v582_v24, %v409_v8  ;;  %v583_v29 = vtrunc.f32 %v430_v26 }
 0x5b2   : > { %437 = vst.msk [vmem:[%s201_s22] sm:$0xff] %vm436_vm4, %v434_v27 }
 0x5b3   : > { %v584_v32 = vcvt.f32.s32 %v583_v29 }
 0x5b5   : > { %v435_v34 = vsel %vm431_vm3, %v584_v32, %v410_v33 }
 0x5b6   : > { %438 = vst.msk [vmem:[%s201_s22 + $0x8] sm:$0xff] %vm436_vm4, %v435_v34 }
 0x5b7 PF: > { %s12_s11 = sadd.s32 1, %s632_s11   ;;  %s748_s9 = smov %s628_s10 }
 0x5b8   : > { %p9_p5 = scmp.ge.s32.totalorder %s12_s11, 4   ;;  %s749_s10 = smov %s751_s12 }
 0x5ba   :  { %11 = sbr.rel (!%p9_p5) target bundleno = 2 (0x2), region = 61 }

// kernel: dgcnn_forward.16
= control target key start
LH: loop header
LB: loop body
LE: loop exit
PB: predicated region body
PF: predicated region fallthrough
CT: control target
= control target key end

     0   :  { %13 = vsyncpa [#allocation3], 0  ;;  %s2756_s0 = inlined_call_operand.vmem [shape: bf16[2,64,128], index: 0, kind: input, shape index: {}]   ;;  %s2757_s1 = inlined_call_operand.vmem [shape: bf16[2,16,128], index: 1, kind: input, shape index: {}]   ;;  %s2758_s2 = inlined_call_operand.vmem [shape: bf16[128,256], index: 2, kind: input, shape index: {}]   ;;  %s2759_s3 = inlined_call_operand.vmem [shape: bf16[128,256], index: 3, kind: input, shape index: {}]   ;;  %s2760_s4 = inlined_call_operand.vmem [shape: f32[1,256], index: 4, kind: input, shape index: {}]   ;;  %s2761_s5 = inlined_call_operand.vmem [shape: f32[1,256], index: 5, kind: input, shape index: {}]   ;;  %s2762_s6 = inlined_call_operand.hbm [shape: f32[2,16,256], index: 6, kind: output, shape index: {0}]   ;;  %s2763_s7 = inlined_call_operand.vmem [shape: bf16[2,16,256], index: 7, kind: output, shape index: {1}]  }
   0x1   :  { %15 = vsyncpa [#allocation3 + $0x1], 0  ;;  %s2174_s24 = smov 0   ;;  %s2176_s25 = smov 0  }
   0x2   :  { %s2178_s26 = smov 0   ;;  %s2180_s27 = smov 0  }
   0x3   :  { %s2182_s28 = smov 0   ;;  %s2184_s29 = smov 0  }
   0x4 LB: > { %2766 = sst [smem:[#allocation5_spill]] %s2123_s28  ;;  %s1847_s30 = sadd.s32 4294967295, %s2127_s29   ;;  %s2127_s29 = sphi %s2184_s29, %s21_s29   ;;  %s2123_s28 = sphi %s2182_s28, %s2771_s28   ;;  %s2119_s27 = sphi %s2180_s27, %s2770_s27   ;;  %s2115_s26 = sphi %s2178_s26, %s2774_s26   ;;  %s2111_s25 = sphi %s2176_s25, %s2773_s25   ;;  %s2107_s24 = sphi %s2174_s24, %s2772_s24  }
   0x5   : > { %s1848_s8 = sadd.s32 4294967294, %s2127_s29   ;;  %s33_s9 = sadd.s32 1, %s2123_s28 }
   0x6   : > { %s182_s10 = sadd.s32 1, %s2115_s26  ;;  %p35_p0 = scmp.ge.s32.totalorder %s33_s9, 2 }
   0x7   : > { %p192_p1 = scmp.ne.s32.totalorder %s2115_s26, %s2111_s25  ;;  %p193_p2 = scmp.eq.s32.totalorder %s1847_s30, 1 }
   0x8   : > { %p198_p3 = scmp.ne.s32.totalorder %s2111_s25, %s2107_s24  ;;  %s2776_s9 = smov (%p35_p0, %s33_s9), 0 }
   0x9   : > { %2767 = sst [smem:[#allocation6_spill]] %s2776_s9  ;;  %p2214_p4 = por %p193_p2, %p192_p1 }
   0xa   : > { %p199_p5 = scmp.eq.s32.totalorder %s1848_s8, 1  ;;  %s177_s12 = ssub.s32 %s2123_s28, %s2776_s9 }
   0xb   : > { %p1851_p6 = scmp.ge.s32.totalorder %s2127_s29, 1  ;;  %p180_p7 = scmp.eq.s32.totalorder %s177_s12, 0 }
   0xc   : > { %p2221_p8 = por %p199_p5, %p198_p3  ;;  %p283_p9 = scmp.lt.s32.totalorder %s2127_s29, 3 }
   0xd   : > { %s2227_s14 = scalar_select %p180_p7, %s2115_s26, %s182_s10  }
   0xe   : > { %p284_p10 = pnand %p1851_p6, %p283_p9 }
   0xf   : > { %v1996_v0 = vld [vmem:[%s2758_s2 + $0x4] ss:$8 sps:$4 sm:$0xff] (!%p284_p10)   ;;  %v2129_v2 = vmov (!%p284_p10), 0   ;;  %v2000_v3 = vld [vmem:[%s2758_s2] ss:$8 sps:$4 sm:$0xff] (!%p284_p10)   ;;  %p339_p11 = scmp.lt.s32.totalorder (!%p284_p10), %s2119_s27, 1  ;;  %v776_v40 = vlaneseq (!%p284_p10) }
  0x10   : > { %287 = sbr.rel (%p284_p10) target bundleno = 425 (0x1a9), region = 44  ;;  %v1998_v1 = vld [vmem:[%s2759_s3 + $0x4] ss:$8 sps:$4 sm:$0xff] (!%p284_p10)   ;;  %531 = vmatprep.mubr.bf16.mxu0 (!%p284_p10), %v2129_v2  ;;  %708 = vmatprep.mubr.bf16.mxu1 (!%p284_p10), %v2129_v2  ;;  %v2001_v4 = vld [vmem:[%s2759_s3] ss:$8 sps:$4 sm:$0xff] (!%p284_p10)   ;;  %vm1199_vm0 = vcmask (!%p284_p10), 1043456  }
  0x11   : > { %499 = vmatprep.subr.bf16.mxu0 (!%p284_p10), %v1996_v0  ;;  %676 = vmatprep.subr.bf16.mxu1 (!%p284_p10), %v1998_v1  ;;  %v2002_v5 = vld [vmem:[%s2758_s2 + $0x14] ss:$8 sps:$4 sm:$0xff] (!%p284_p10)   ;;  %v2006_v7 = vld [vmem:[%s2758_s2 + $0x10] ss:$8 sps:$4 sm:$0xff] (!%p284_p10)   ;;  %v2008_v9 = vld [vmem:[%s2758_s2 + $0x24] ss:$8 sps:$4 sm:$0xff] (!%p284_p10)  }
  0x12   : > { %500 = vmatpush1.bf16.msra.mxu0 (!%p284_p10), %v2000_v3  ;;  %677 = vmatpush1.bf16.msra.mxu1 (!%p284_p10), %v2001_v4  ;;  %v2004_v6 = vld [vmem:[%s2759_s3 + $0x14] ss:$8 sps:$4 sm:$0xff] (!%p284_p10)   ;;  %v2007_v8 = vld [vmem:[%s2759_s3 + $0x10] ss:$8 sps:$4 sm:$0xff] (!%p284_p10)   ;;  %v2010_v10 = vld [vmem:[%s2759_s3 + $0x24] ss:$8 sps:$4 sm:$0xff] (!%p284_p10)  }
  0x13   : > { %501 = vmatprep.subr.bf16.mxu0 (!%p284_p10), %v2002_v5  ;;  %678 = vmatprep.subr.bf16.mxu1 (!%p284_p10), %v2004_v6  ;;  %v2012_v11 = vld [vmem:[%s2758_s2 + $0x20] ss:$8 sps:$4 sm:$0xff] (!%p284_p10)   ;;  %v2014_v13 = vld [vmem:[%s2758_s2 + $0x34] ss:$8 sps:$4 sm:$0xff] (!%p284_p10)   ;;  %v2018_v15 = vld [vmem:[%s2758_s2 + $0x30] ss:$8 sps:$4 sm:$0xff] (!%p284_p10)  }
  0x14   : > { %v2013_v12 = vld [vmem:[%s2759_s3 + $0x20] ss:$8 sps:$4 sm:$0xff] (!%p284_p10)   ;;  %v2016_v14 = vld [vmem:[%s2759_s3 + $0x34] ss:$8 sps:$4 sm:$0xff] (!%p284_p10)   ;;  %v2019_v16 = vld [vmem:[%s2759_s3 + $0x30] ss:$8 sps:$4 sm:$0xff] (!%p284_p10)  }
  0x15   : > { %v2020_v17 = vld [vmem:[%s2758_s2 + $0x44] ss:$8 sps:$4 sm:$0xff] (!%p284_p10)   ;;  %v2024_v19 = vld [vmem:[%s2758_s2 + $0x40] ss:$8 sps:$4 sm:$0xff] (!%p284_p10)   ;;  %v2026_v21 = vld [vmem:[%s2758_s2 + $0x54] ss:$8 sps:$4 sm:$0xff] (!%p284_p10)  }
  0x16   : > { %502 = vmatpush1.bf16.msra.mxu0 (!%p284_p10), %v2006_v7  ;;  %679 = vmatpush1.bf16.msra.mxu1 (!%p284_p10), %v2007_v8  ;;  %v2022_v18 = vld [vmem:[%s2759_s3 + $0x44] ss:$8 sps:$4 sm:$0xff] (!%p284_p10)   ;;  %v2025_v20 = vld [vmem:[%s2759_s3 + $0x40] ss:$8 sps:$4 sm:$0xff] (!%p284_p10)   ;;  %v2028_v22 = vld [vmem:[%s2759_s3 + $0x54] ss:$8 sps:$4 sm:$0xff] (!%p284_p10)  }
  0x17   : > { %503 = vmatprep.subr.bf16.mxu0 %v2008_v9  ;;  %680 = vmatprep.subr.bf16.mxu1 %v2010_v10  ;;  %s2287_s8 = scalar_select %p339_p11, %s2119_s27, 1  ;;  %v2030_v23 = vld [vmem:[%s2758_s2 + $0x50] ss:$8 sps:$4 sm:$0xff]   ;;  %v2032_v25 = vld [vmem:[%s2758_s2 + $0x64] ss:$8 sps:$4 sm:$0xff]   ;;  %v777_v42 = vshrl.u32 %v776_v40, 7 }
  0x18   : > { %v2031_v24 = vld [vmem:[%s2759_s3 + $0x50] ss:$8 sps:$4 sm:$0xff]   ;;  %v2034_v26 = vld [vmem:[%s2759_s3 + $0x64] ss:$8 sps:$4 sm:$0xff]   ;;  %v2036_v27 = vld [vmem:[%s2758_s2 + $0x60] ss:$8 sps:$4 sm:$0xff]  }
  0x19   : > { %s1917_s21 = sshll.u32 %s2287_s8, 5  ;;  %s1918_s22 = sshll.u32 %s2287_s8, 3  ;;  %v2037_v28 = vld [vmem:[%s2759_s3 + $0x60] ss:$8 sps:$4 sm:$0xff]   ;;  %v2038_v29 = vld [vmem:[%s2758_s2 + $0x74] ss:$8 sps:$4 sm:$0xff]  }
  0x1a   : > { %504 = vmatpush1.bf16.msra.mxu0 %v2012_v11  ;;  %681 = vmatpush1.bf16.msra.mxu1 %v2013_v12  ;;  %s2315_s19 = scalar_lea.vmem %s2756_s0, %s1917_s21  ;;  %s356_s10 = scalar_lea.vmem %s2757_s1, %s1918_s22  ;;  %v2040_v30 = vld [vmem:[%s2759_s3 + $0x74] ss:$8 sps:$4 sm:$0xff]   ;;  %v2042_v31 = vld [vmem:[%s2758_s2 + $0x70] ss:$8 sps:$4 sm:$0xff]   ;;  %v2130_v38 = vmov 1966171168  }
  0x1b   : > { %505 = vmatprep.subr.bf16.mxu0 %v2014_v13  ;;  %682 = vmatprep.subr.bf16.mxu1 %v2016_v14  ;;  %v2043_v32 = vld [vmem:[%s2759_s3 + $0x70] ss:$8 sps:$4 sm:$0xff]   ;;  %v2044_v33 = vld [vmem:[%s2315_s19] sm:$0xff]   ;;  %v2046_v35 = vld [vmem:[%s2315_s19 + $0x8] sm:$0xff]   ;;  %v774_v39 = vunpack.c.l.s4 %v2130_v38  ;;  %v2351_v44 = vsub.s32 0, %v777_v42  ;;  %v2353_v45 = vsub.s32 1, %v777_v42 }
  0x1c   : > { %v2045_v34 = vld [vmem:[%s356_s10] sm:$0xff]   ;;  %v2047_v36 = vld [vmem:[%s2315_s19 + $0x10] sm:$0xff]   ;;  %v2048_v37 = vld [vmem:[%s2315_s19 + $0x18] sm:$0xff]   ;;  %vm1456_vm5 = vcmask 1041409   ;;  %vm1458_vm6 = vcmask 1042434   ;;  %vm1460_vm7 = vcmask 1043459  }
  0x1d   : > { %v775_v41 = vunpack.c.0.s8 %v774_v39  ;;  %v1047_v43 = vld [vmem:[%s2760_s4] sm:$0x3]  ;;  %vm1462_vm10 = vcmask 1044484   ;;  %vm1464_vm11 = vcmask 1045509   ;;  %vm1466_vm14 = vcmask 1046534   ;;  %s1919_s19 = sshll.u32 %s2287_s8, 4 }
  0x1e   : > { %506 = vmatpush1.bf16.msra.mxu0 %v2018_v15  ;;  %683 = vmatpush1.bf16.msra.mxu1 %v2019_v16  ;;  %v1075_v49 = vld [vmem:[%s2761_s5] sm:$0x3]  ;;  %v1052_v52 = vrot.slane %v1047_v43, %v2351_v44  ;;  %v1056_v53 = vrot.slane %v1047_v43, %v2353_v45  ;;  %s2578_s21 = scalar_lea.vmem %s2763_s7, %s1919_s19  ;;  %s323_s17 = sand.u32 1, %s2111_s25  }
  0x1f   : > { %507 = vmatprep.subr.bf16.mxu0 %v2020_v17  ;;  %684 = vmatprep.subr.bf16.mxu1 %v2022_v18  ;;  %v778_v48 = vsub.s32 %v775_v41, %v777_v42  ;;  %v1080_v60 = vrot.slane %v1075_v49, %v2351_v44  ;;  %v1084_v61 = vrot.slane %v1075_v49, %v2353_v45  ;;  %s1852_s9 = sshll.u32 %s323_s17, 5  ;;  %s1936_s28 = sshll.u32 %s2119_s27, 9 }
  0x20   : > { %v2362_v9 = vcombine.low %v1052_v52, %v1056_v53  ;;  %s2658_s18 = scalar_lea.vmem [#allocation2], %s1852_s9  ;;  %s2696_s30 = scalar_lea.hbm %s2762_s6, %s1936_s28 }
  0x21   : > { %v2364_v11 = vcombine.low %v1080_v60, %v1084_v61  ;;  %s1704_s22 = sshll.u32 %s2658_s18, 4  ;;  %s2707_s27 = scalar_lea.sflag [#allocation3], %s323_s17  ;;  %s2698_s22 = int_to_ptr.vmem [resolvable:$true] %s1704_s22 }
  0x22   : > { %508 = vmatpush1.bf16.msra.mxu0 %v2024_v19  ;;  %685 = vmatpush1.bf16.msra.mxu1 %v2025_v20  ;;  %s2049_s10 = scalar_lea.vmem %s2698_s22, 512  ;;  %s2131_s12 = smov [#allocation2]  }
  0x23   : > { %509 = vmatprep.subr.bf16.mxu0 %v2026_v21  ;;  %686 = vmatprep.subr.bf16.mxu1 %v2028_v22  ;;  %p2050_p12 = scmp.ne.s32.totalorder %s2698_s22, %s2049_s10  ;;  %s2053_s15 = sshll.u32 %s2131_s12, 4  ;;  %s2054_s15 = int_to_ptr.vmem [resolvable:$false] %s2053_s15 }
  0x24   : > { %s2055_s19 = scalar_lea.vmem %s2054_s15, 1024  ;;  %p2056_p1 = scmp.lt.s32.totalorder %s2698_s22, %s2054_s15 }
  0x25   : > { %p2051_p13 = pnand %p2050_p12, %p2214_p4  ;;  %p2057_p2 = scmp.lt.s32.totalorder %s2055_s19, %s2049_s10 }
  0x26   : > { %510 = vmatpush1.bf16.msra.mxu0 %v2030_v23  ;;  %687 = vmatpush1.bf16.msra.mxu1 %v2031_v24 }
  0x27   : > { %511 = vmatprep.subr.bf16.mxu0 %v2032_v25  ;;  %688 = vmatprep.subr.bf16.mxu1 %v2034_v26  ;;  %p2052_p0 = pneg %p2051_p13  ;;  %p2058_p3 = por %p2057_p2, %p2056_p1 }
  0x29   : > { %p2059_p5 = pnand %p2058_p3, %p2052_p0 }
  0x2a   : > { %512 = vmatpush1.bf16.msra.mxu0 %v2036_v27  ;;  %689 = vmatpush1.bf16.msra.mxu1 %v2037_v28 }
  0x2b   : > { %513 = vmatprep.subr.bf16.mxu0 %v2038_v29  ;;  %690 = vmatprep.subr.bf16.mxu1 %v2040_v30 }
  0x2e   : > { %514 = vmatpush1.bf16.msra.mxu0 %v2042_v31  ;;  %691 = vmatpush1.bf16.msra.mxu1 %v2043_v32 }
  0x31   : > { %532 = vmatmul.mubr.bf16.vlgmr.msra.gmra.mrb[0].mxu0 %v2044_v33  ;;  %709 = vmatmul.mubr.bf16.vlgmr.msra.gmra.mrb[0].mxu1 %v2045_v34 }
  0x32   : > { %541 = vmatprep.mubr.bf16.mxu0 %v2129_v2 }
  0x39   : > { %542 = vmatmul.mubr.bf16.gmra.mrb[4].mxu0 %v2046_v35 }
  0x3a   : > { %551 = vmatprep.mubr.bf16.mxu0 %v2129_v2 }
  0x41   : > { %552 = vmatmul.mubr.bf16.gmra.mrb[8].mxu0 %v2047_v36 }
  0x42   : > { %561 = vmatprep.mubr.bf16.mxu0 %v2129_v2 }
  0x49   : > { %562 = vmatmul.mubr.bf16.gmra.mrb[12].mxu0 %v2048_v37 }
 0x104   : > { %v533_v46 = vpop.f32.mrb[0].mxu0  ;;  %v710_v47 = vpop.f32.mrb[0].mxu1 }
 0x105   : > { %v535_v50 = vpop.f32.mrb[1].mxu0  ;;  %v712_v51 = vpop.f32.mrb[1].mxu1 }
 0x106   : > { %v735_v54 = vcombine.low %v533_v46, %v535_v50  ;;  %v736_v55 = vcombine.high %v533_v46, %v535_v50  ;;  %v771_v56 = vcombine.low %v710_v47, %v712_v51  ;;  %v772_v57 = vcombine.high %v710_v47, %v712_v51  ;;  %v537_v58 = vpop.f32.mrb[2].mxu0  ;;  %v714_v59 = vpop.f32.mrb[2].mxu1 }
 0x107   : > { %v539_v62 = vpop.f32.mrb[3].mxu0  ;;  %v716_v63 = vpop.f32.mrb[3].mxu1 }
 0x108   : > { %v779_v0 = vrot.slane %v771_v56, %v778_v48  ;;  %v786_v1 = vrot.slane %v772_v57, %v778_v48  ;;  %v737_v2 = vcombine.low %v537_v58, %v539_v62  ;;  %v738_v3 = vcombine.high %v537_v58, %v539_v62 }
 0x109   : > { %v821_v4 = vcombine.low %v714_v59, %v716_v63  ;;  %v822_v5 = vcombine.high %v714_v59, %v716_v63 }
 0x10a   : > { %v787_v6 = vcombine.high %v779_v0, %v779_v0  ;;  %v788_v7 = vcombine.high %v786_v1, %v786_v1  ;;  %v795_v8 = vrot.slane %v779_v0, %v778_v48  ;;  %v802_v10 = vrot.slane %v786_v1, %v778_v48 }
 0x10b   : > { %v829_v12 = vrot.slane %v821_v4, %v778_v48  ;;  %v836_v13 = vrot.slane %v822_v5, %v778_v48 }
 0x10c   : > { %v809_v14 = vrot.slane %v787_v6, %v778_v48  ;;  %v2366_v15 = vrot.slane %v788_v7, %v778_v48  ;;  %v874_v16 = vrot.slane %v795_v8, %v2351_v44  ;;  %v878_v17 = vrot.slane %v795_v8, %v2353_v45  ;;  %v2370_v18 = vpop.f32.mrb[4].mxu0 }
 0x10d   : > { %v817_v19 = vcombine.high %v795_v8, %v795_v8  ;;  %v837_v20 = vcombine.high %v829_v12, %v829_v12  ;;  %v838_v21 = vcombine.high %v836_v13, %v836_v13  ;;  %v2372_v22 = vrot.slane %v829_v12, %v778_v48  ;;  %v2374_v23 = vpop.f32.mrb[5].mxu0 }
 0x10e   : > { %v882_v24 = vrot.slane %v809_v14, %v2351_v44  ;;  %v886_v25 = vrot.slane %v809_v14, %v2353_v45  ;;  %v999_v26 = vcombine.low %v874_v16, %v878_v17  ;;  %v819_v27 = vcombine.high %v809_v14, %v809_v14  ;;  %v2378_v28 = vpop.f32.mrb[6].mxu0 }
 0x10f   : > { %v890_v29 = vrot.slane %v817_v19, %v2351_v44  ;;  %v894_v30 = vrot.slane %v817_v19, %v2353_v45  ;;  %v2382_v31 = vrot.slane %v836_v13, %v778_v48  ;;  %v2384_v32 = vrot.slane %v837_v20, %v778_v48  ;;  %v2386_v33 = vpop.f32.mrb[7].mxu0 }
 0x110   : > { %v1000_v34 = vcombine.low %v882_v24, %v886_v25  ;;  %v1031_v35 = vadd.f32 %v999_v26, %v735_v54  ;;  %v898_v36 = vrot.slane %v819_v27, %v2351_v44  ;;  %v902_v37 = vrot.slane %v819_v27, %v2353_v45 }
 0x111   : > { %v1001_v38 = vcombine.low %v890_v29, %v894_v30  ;;  %v2390_v39 = vrot.slane %v838_v21, %v778_v48  ;;  %v2394_v40 = vcombine.high %v2372_v22, %v2372_v22  ;;  %v739_v41 = vcombine.low %v2370_v18, %v2374_v23 }
 0x112   : > { %v1032_v42 = vadd.f32 %v1000_v34, %v736_v55  ;;  %v1059_v43 = vmul.f32 %v2362_v9, %v1031_v35  ;;  %v1002_v46 = vcombine.low %v898_v36, %v902_v37  ;;  %v740_v47 = vcombine.high %v2370_v18, %v2374_v23 }
 0x113   : > { %v1033_v49 = vadd.f32 %v1001_v38, %v737_v2  ;;  %v906_v50 = vrot.slane %v802_v10, %v2351_v44  ;;  %v910_v48 = vrot.slane %v802_v10, %v2353_v45  ;;  %v914_v51 = vrot.slane %v2366_v15, %v2351_v44 }
 0x114   : > { %v1060_v52 = vmul.f32 %v2362_v9, %v1032_v42  ;;  %v1087_v53 = vadd.f32 %v2364_v11, %v1059_v43  ;;  %v1034_v54 = vadd.f32 %v1002_v46, %v738_v3  ;;  %v918_v55 = vrot.slane %v2366_v15, %v2353_v45  ;;  %v2409_v56 = vpop.f32.mrb[8].mxu0 }
 0x115   : > { %v1061_v57 = vmul.f32 %v2362_v9, %v1033_v49  ;;  %v1003_v58 = vcombine.low %v906_v50, %v910_v48  ;;  %v741_v59 = vcombine.low %v2378_v28, %v2386_v33  ;;  %v742_v60 = vcombine.high %v2378_v28, %v2386_v33  ;;  %v2416_v61 = vpop.f32.mrb[9].mxu0 }
 0x116   : > { %v1088_v62 = vadd.f32 %v2364_v11, %v1060_v52  ;;  %vm1103_vm1 = vcmp.gt.f32.partialorder %v1087_v53, 0.0  ;;  %v1119_v63 = vmul.f32 0.2, %v1087_v53  ;;  %v1062_v0 = vmul.f32 %v2362_v9, %v1034_v54  ;;  %v2420_v1 = vpop.f32.mrb[10].mxu0 }
 0x117   : > { %v1089_v2 = vadd.f32 %v2364_v11, %v1061_v57  ;;  %v2423_v3 = vcombine.low %v914_v51, %v918_v55  ;;  %v2425_v4 = vadd.f32 %v1003_v58, %v739_v41  ;;  %v2427_v5 = vcombine.high %v802_v10, %v802_v10  ;;  %v2429_v6 = vpop.f32.mrb[11].mxu0 }
 0x118   : > { %vm1104_vm2 = vcmp.gt.f32.partialorder %v1088_v62, 0.0  ;;  %v1120_v7 = vmul.f32 0.2, %v1088_v62  ;;  %v1135_v8 = vsel %vm1103_vm1, %v1087_v53, %v1119_v63  ;;  %v1090_v12 = vadd.f32 %v2364_v11, %v1062_v0 }
 0x119   : > { %v1167_v13 = vcombine.high %v1135_v8, %v1135_v8  ;;  %v1200_v14 = vsel %vm1199_vm0, %v1135_v8, -inf  ;;  %vm1105_vm3 = vcmp.gt.f32.partialorder %v1089_v2, 0.0  ;;  %v1121_v16 = vmul.f32 0.2, %v1089_v2 }
 0x11a   : > { %v1136_v17 = vsel %vm1104_vm2, %v1088_v62, %v1120_v7  ;;  %v1201_v19 = vrot.slane %v1200_v14, 4  ;;  %vm1106_vm4 = vcmp.gt.f32.partialorder %v1090_v12, 0.0  ;;  %v1122_v20 = vmul.f32 0.2, %v1090_v12 }
 0x11b   : > { %v1168_v21 = vcombine.high %v1136_v17, %v1136_v17  ;;  %v1207_v10 = vsel %vm1199_vm0, %v1167_v13, -inf  ;;  %v1214_v24 = vsel %vm1199_vm0, %v1136_v17, -inf  ;;  %v1137_v25 = vsel %vm1105_vm3, %v1089_v2, %v1121_v16 }
 0x11c   : > { %v1202_v26 = vmax.f32 %v1200_v14, %v1201_v19  ;;  %v1208_v27 = vrot.slane %v1207_v10, 4  ;;  %v1215_v29 = vrot.slane %v1214_v24, 4  ;;  %v1138_v30 = vsel %vm1106_vm4, %v1090_v12, %v1122_v20  ;;  %v2435_v34 = vpop.f32.mrb[12].mxu0 }
 0x11d   : > { %v1221_v35 = vsel %vm1199_vm0, %v1168_v21, -inf  ;;  %v1169_v36 = vcombine.high %v1137_v25, %v1137_v25  ;;  %v1170_v37 = vcombine.high %v1138_v30, %v1138_v30  ;;  %v1228_v38 = vsel %vm1199_vm0, %v1137_v25, -inf  ;;  %v2439_v41 = vpop.f32.mrb[13].mxu0 }
 0x11e   : > { %v1203_v42 = vrot.slane %v1202_v26, 2  ;;  %v1209_v43 = vmax.f32 %v1207_v10, %v1208_v27  ;;  %v1216_v46 = vmax.f32 %v1214_v24, %v1215_v29  ;;  %v1222_v49 = vrot.slane %v1221_v35, 4  ;;  %v2441_v50 = vpop.f32.mrb[14].mxu0 }
 0x11f   : > { %v1229_v48 = vrot.slane %v1228_v38, 4  ;;  %v1235_v51 = vsel %vm1199_vm0, %v1169_v36, -inf  ;;  %v1242_v52 = vsel %vm1199_vm0, %v1138_v30, -inf  ;;  %v1249_v53 = vsel %vm1199_vm0, %v1170_v37, -inf  ;;  %v2446_v54 = vpop.f32.mrb[15].mxu0 }
 0x120   : > { %v1204_v55 = vmax.f32 %v1202_v26, %v1203_v42  ;;  %v1210_v57 = vrot.slane %v1209_v43, 2  ;;  %v1217_v58 = vrot.slane %v1216_v46, 2  ;;  %v1223_v62 = vmax.f32 %v1221_v35, %v1222_v49 }
 0x121   : > { %v1230_v63 = vmax.f32 %v1228_v38, %v1229_v48  ;;  %v1236_v0 = vrot.slane %v1235_v51, 4  ;;  %v1243_v2 = vrot.slane %v1242_v52, 4  ;;  %v1250_v7 = vrot.slane %v1249_v53, 4 }
 0x122   : > { %v1205_v8 = vrot.slane %v1204_v55, 1  ;;  %v1211_v12 = vmax.f32 %v1209_v43, %v1210_v57  ;;  %v1218_v13 = vmax.f32 %v1216_v46, %v1217_v58  ;;  %v1224_v14 = vrot.slane %v1223_v62, 2 }
 0x123   : > { %v1231_v16 = vrot.slane %v1230_v63, 2  ;;  %v1237_v17 = vmax.f32 %v1235_v51, %v1236_v0  ;;  %v1244_v19 = vmax.f32 %v1242_v52, %v1243_v2  ;;  %v1251_v20 = vmax.f32 %v1249_v53, %v1250_v7 }
 0x124   : > { %v1206_v21 = vmax.f32 %v1204_v55, %v1205_v8  ;;  %v1212_v10 = vrot.slane %v1211_v12, 1  ;;  %v1219_v24 = vrot.slane %v1218_v13, 1  ;;  %v1225_v25 = vmax.f32 %v1223_v62, %v1224_v14 }
 0x125   : > { %v1232_v26 = vmax.f32 %v1230_v63, %v1231_v16  ;;  %v1238_v27 = vrot.slane %v1237_v17, 2  ;;  %v1245_v29 = vrot.slane %v1244_v19, 2  ;;  %v1252_v30 = vrot.slane %v1251_v20, 2 }
 0x126   : > { %v1213_v35 = vmax.f32 %v1211_v12, %v1212_v10  ;;  %v1226_v36 = vrot.slane %v1225_v25, 1  ;;  %v1220_v37 = vmax.f32 %v1218_v13, %v1219_v24  ;;  %v1036_v38 = vadd.f32 %v2423_v3, %v740_v47 }
 0x127   : > { %v1233_v42 = vrot.slane %v1232_v26, 1  ;;  %v1239_v43 = vmax.f32 %v1237_v17, %v1238_v27  ;;  %v1246_v46 = vmax.f32 %v1244_v19, %v1245_v29  ;;  %v1253_v49 = vmax.f32 %v1251_v20, %v1252_v30 }
 0x128   : > { %v1920_v48 = vpack.c.bf16 %v1213_v35, %v1206_v21  ;;  %v1227_v51 = vmax.f32 %v1225_v25, %v1226_v36  ;;  %v1457_v52 = vsel %vm1456_vm5, %v1220_v37, %v1206_v21  ;;  %v1063_v53 = vmul.f32 %v2362_v9, %v2425_v4 }
 0x129   : > { %v1234_v55 = vmax.f32 %v1232_v26, %v1233_v42  ;;  %v1240_v57 = vrot.slane %v1239_v43, 1  ;;  %v1247_v58 = vrot.slane %v1246_v46, 1  ;;  %v1254_v62 = vrot.slane %v1253_v49, 1 }
 0x12a   : > { %v1611_v63 = vunpack.c.l.b16 %v1920_v48  ;;  %v1612_v0 = vunpack.c.h.b16 %v1920_v48  ;;  %v1470_v18 = vsel %vm1456_vm5, %v1227_v51, %v1213_v35  ;;  %v1921_v23 = vpack.c.bf16 %v1227_v51, %v1220_v37 }
 0x12b   : > { %v1241_v47 = vmax.f32 %v1239_v43, %v1240_v57  ;;  %v1248_v3 = vmax.f32 %v1246_v46, %v1247_v58  ;;  %v1255_v2 = vmax.f32 %v1253_v49, %v1254_v62  ;;  %v1459_v7 = vsel %vm1458_vm6, %v1234_v55, %v1457_v52 }
 0x12c   : > { %v1613_v8 = vunpack.c.l.b16 %v1921_v23  ;;  %v1614_v12 = vunpack.c.h.b16 %v1921_v23  ;;  %v1064_v13 = vmul.f32 %v2362_v9, %v1036_v38  ;;  %v1091_v4 = vadd.f32 %v2364_v11, %v1063_v53 }
 0x12d   : > { %v2460_v14 = vsel %vm1460_vm7, %v1248_v3, %v1459_v7  ;;  %v1471_v16 = vsel %vm1458_vm6, %v1241_v47, %v1470_v18  ;;  %v1922_v17 = vpack.c.bf16 %v1241_v47, %v1234_v55  ;;  %v1923_v19 = vpack.c.bf16 %v1255_v2, %v1248_v3 }
 0x12e   : > { %v2464_v20 = vsel %vm1460_vm7, %v1255_v2, %v1471_v16  ;;  %v1643_v21 = vsel %vm1456_vm5, %v1613_v8, %v1611_v63  ;;  %v1650_v10 = vsel %vm1456_vm5, %v1614_v12, %v1612_v0  ;;  %v1092_v24 = vadd.f32 %v2364_v11, %v1064_v13 }
 0x12f   : > { %v1615_v25 = vunpack.c.l.b16 %v1922_v17  ;;  %v1616_v26 = vunpack.c.h.b16 %v1922_v17  ;;  %v1617_v27 = vunpack.c.l.b16 %v1923_v19  ;;  %v1618_v29 = vunpack.c.h.b16 %v1923_v19 }
 0x130   : > { %vm1107_vm8 = vcmp.gt.f32.partialorder %v1091_v4, 0.0  ;;  %vm1108_vm9 = vcmp.gt.f32.partialorder %v1092_v24, 0.0  ;;  %v1123_v30 = vmul.f32 0.2, %v1091_v4  ;;  %v1124_v35 = vmul.f32 0.2, %v1092_v24 }
 0x131   : > { %v1644_v36 = vsel %vm1458_vm6, %v1615_v25, %v1643_v21  ;;  %v1651_v37 = vsel %vm1458_vm6, %v1616_v26, %v1650_v10  ;;  %v820_v38 = vcombine.high %v2366_v15, %v2366_v15  ;;  %v922_v42 = vrot.slane %v2427_v5, %v2351_v44 }
 0x132   : > { %v2476_v43 = vsel %vm1460_vm7, %v1617_v27, %v1644_v36  ;;  %v2479_v46 = vsel %vm1460_vm7, %v1618_v29, %v1651_v37  ;;  %v1139_v49 = vsel %vm1107_vm8, %v1091_v4, %v1123_v30  ;;  %v1140_v48 = vsel %vm1108_vm9, %v1092_v24, %v1124_v35 }
 0x133   : > { %v1171_v51 = vcombine.high %v1139_v49, %v1139_v49  ;;  %v1172_v52 = vcombine.high %v1140_v48, %v1140_v48  ;;  %v1256_v53 = vsel %vm1199_vm0, %v1139_v49, -inf  ;;  %v1270_v55 = vsel %vm1199_vm0, %v1140_v48, -inf }
 0x134   : > { %v1257_v57 = vrot.slane %v1256_v53, 4  ;;  %v1271_v58 = vrot.slane %v1270_v55, 4  ;;  %v926_v15 = vrot.slane %v2427_v5, %v2353_v45  ;;  %v930_v62 = vrot.slane %v820_v38, %v2351_v44 }
 0x135   : > { %v1263_v63 = vsel %vm1199_vm0, %v1171_v51, -inf  ;;  %v1277_v0 = vsel %vm1199_vm0, %v1172_v52, -inf  ;;  %v934_v18 = vrot.slane %v820_v38, %v2353_v45  ;;  %v743_v23 = vcombine.low %v2409_v56, %v2416_v61 }
 0x136   : > { %v1258_v47 = vmax.f32 %v1256_v53, %v1257_v57  ;;  %v1264_v3 = vrot.slane %v1263_v63, 4  ;;  %v1272_v2 = vmax.f32 %v1270_v55, %v1271_v58  ;;  %v1278_v7 = vrot.slane %v1277_v0, 4 }
 0x137   : > { %v1005_v8 = vcombine.low %v922_v42, %v926_v15  ;;  %v1006_v12 = vcombine.low %v930_v62, %v934_v18  ;;  %v744_v5 = vcombine.high %v2409_v56, %v2416_v61  ;;  %v938_v13 = vrot.slane %v2372_v22, %v2351_v44 }
 0x138   : > { %v1259_v4 = vrot.slane %v1258_v47, 2  ;;  %v1265_v16 = vmax.f32 %v1263_v63, %v1264_v3  ;;  %v1273_v17 = vrot.slane %v1272_v2, 2  ;;  %v1279_v19 = vmax.f32 %v1277_v0, %v1278_v7 }
 0x139   : > { %v1037_v21 = vadd.f32 %v1005_v8, %v741_v59  ;;  %v1038_v10 = vadd.f32 %v1006_v12, %v742_v60  ;;  %v942_v24 = vrot.slane %v2372_v22, %v2353_v45  ;;  %v946_v56 = vrot.slane %v2384_v32, %v2351_v44 }
 0x13a   : > { %v1260_v61 = vmax.f32 %v1258_v47, %v1259_v4  ;;  %v1266_v25 = vrot.slane %v1265_v16, 2  ;;  %v1274_v26 = vmax.f32 %v1272_v2, %v1273_v17  ;;  %v1280_v27 = vrot.slane %v1279_v19, 2 }
 0x13b   : > { %v1065_v29 = vmul.f32 %v2362_v9, %v1037_v21  ;;  %v1066_v30 = vmul.f32 %v2362_v9, %v1038_v10  ;;  %v950_v59 = vrot.slane %v2384_v32, %v2353_v45  ;;  %v1007_v35 = vcombine.low %v938_v13, %v942_v24 }
 0x13c   : > { %v1261_v28 = vrot.slane %v1260_v61, 1  ;;  %v1267_v33 = vmax.f32 %v1265_v16, %v1266_v25  ;;  %v1275_v60 = vrot.slane %v1274_v26, 1  ;;  %v1281_v36 = vmax.f32 %v1279_v19, %v1280_v27 }
 0x13d   : > { %v1093_v22 = vadd.f32 %v2364_v11, %v1065_v29  ;;  %v1094_v37 = vadd.f32 %v2364_v11, %v1066_v30  ;;  %v1008_v38 = vcombine.low %v946_v56, %v950_v59  ;;  %v1039_v42 = vadd.f32 %v1007_v35, %v743_v23 }
 0x13e   : > { %v1262_v49 = vmax.f32 %v1260_v61, %v1261_v28  ;;  %v1268_v48 = vrot.slane %v1267_v33, 1  ;;  %v1276_v51 = vmax.f32 %v1274_v26, %v1275_v60  ;;  %v1282_v52 = vrot.slane %v1281_v36, 1 }
 0x13f   : > { %vm1109_vm12 = vcmp.gt.f32.partialorder %v1093_v22, 0.0  ;;  %vm1110_vm13 = vcmp.gt.f32.partialorder %v1094_v37, 0.0  ;;  %v1125_v53 = vmul.f32 0.2, %v1093_v22  ;;  %v1126_v55 = vmul.f32 0.2, %v1094_v37 }
 0x140   : > { %v1269_v57 = vmax.f32 %v1267_v33, %v1268_v48  ;;  %v1283_v58 = vmax.f32 %v1281_v36, %v1282_v52  ;;  %v1463_v15 = vsel %vm1462_vm10, %v1262_v49, %v2460_v14  ;;  %v1040_v62 = vadd.f32 %v1008_v38, %v744_v5 }
 0x141   : > { %v2514_v63 = vsel %vm1464_vm11, %v1276_v51, %v1463_v15  ;;  %v1141_v0 = vsel %vm1109_vm12, %v1093_v22, %v1125_v53  ;;  %v1142_v18 = vsel %vm1110_vm13, %v1094_v37, %v1126_v55  ;;  %v1067_v23 = vmul.f32 %v2362_v9, %v1039_v42 }
 0x142   : > { %v1473_v47 = vsel %vm1462_vm10, %v1269_v57, %v2464_v20  ;;  %v1924_v3 = vpack.c.bf16 %v1269_v57, %v1262_v49  ;;  %v1925_v2 = vpack.c.bf16 %v1283_v58, %v1276_v51  ;;  %v1173_v7 = vcombine.high %v1141_v0, %v1141_v0 }
 0x143   : > { %v2520_v8 = vsel %vm1464_vm11, %v1283_v58, %v1473_v47  ;;  %v1174_v12 = vcombine.high %v1142_v18, %v1142_v18  ;;  %v1284_v14 = vsel %vm1199_vm0, %v1141_v0, -inf  ;;  %v1298_v5 = vsel %vm1199_vm0, %v1142_v18, -inf }
 0x144   : > { %v1619_v13 = vunpack.c.l.b16 %v1924_v3  ;;  %v1620_v4 = vunpack.c.h.b16 %v1924_v3  ;;  %v1621_v16 = vunpack.c.l.b16 %v1925_v2  ;;  %v1622_v17 = vunpack.c.h.b16 %v1925_v2 }
 0x145   : > { %v1285_v19 = vrot.slane %v1284_v14, 4  ;;  %v1291_v21 = vsel %vm1199_vm0, %v1173_v7, -inf  ;;  %v1299_v10 = vrot.slane %v1298_v5, 4  ;;  %v1305_v20 = vsel %vm1199_vm0, %v1174_v12, -inf }
 0x146   : > { %v1646_v24 = vsel %vm1462_vm10, %v1619_v13, %v2476_v43  ;;  %v1653_v56 = vsel %vm1462_vm10, %v1620_v4, %v2479_v46  ;;  %v1292_v61 = vrot.slane %v1291_v21, 4  ;;  %v1306_v25 = vrot.slane %v1305_v20, 4 }
 0x147   : > { %v2531_v26 = vsel %vm1464_vm11, %v1621_v16, %v1646_v24  ;;  %v2534_v27 = vsel %vm1464_vm11, %v1622_v17, %v1653_v56  ;;  %v1286_v29 = vmax.f32 %v1284_v14, %v1285_v19  ;;  %v1300_v30 = vmax.f32 %v1298_v5, %v1299_v10 }
 0x148   : > { %v1293_v59 = vmax.f32 %v1291_v21, %v1292_v61  ;;  %v1307_v35 = vmax.f32 %v1305_v20, %v1306_v25  ;;  %v1068_v28 = vmul.f32 %v2362_v9, %v1040_v62  ;;  %v1095_v43 = vadd.f32 %v2364_v11, %v1067_v23 }
 0x149   : > { %v1287_v33 = vrot.slane %v1286_v29, 2  ;;  %v1301_v60 = vrot.slane %v1300_v30, 2  ;;  %v745_v46 = vcombine.low %v2420_v1, %v2429_v6  ;;  %v746_v36 = vcombine.high %v2420_v1, %v2429_v6 }
 0x14a   : > { %v1294_v22 = vrot.slane %v1293_v59, 2  ;;  %v1308_v37 = vrot.slane %v1307_v35, 2  ;;  %v1096_v38 = vadd.f32 %v2364_v11, %v1068_v28  ;;  %vm1111_vm15 = vcmp.gt.f32.partialorder %v1095_v43, 0.0 }
 0x14b   : > { %v1288_v42 = vmax.f32 %v1286_v29, %v1287_v33  ;;  %v1302_v49 = vmax.f32 %v1300_v30, %v1301_v60  ;;  %v1127_v48 = vmul.f32 0.2, %v1095_v43  ;;  %v869_v51 = vcombine.high %v2384_v32, %v2384_v32 }
 0x14c   : > { %v1295_v52 = vmax.f32 %v1293_v59, %v1294_v22  ;;  %v1309_v53 = vmax.f32 %v1307_v35, %v1308_v37  ;;  %vm1112_vm1 = vcmp.gt.f32.partialorder %v1096_v38, 0.0  ;;  %v1128_v55 = vmul.f32 0.2, %v1096_v38 }
 0x14d   : > { %v1289_v57 = vrot.slane %v1288_v42, 1  ;;  %v1303_v58 = vrot.slane %v1302_v49, 1  ;;  %v1143_v15 = vsel %vm1111_vm15, %v1095_v43, %v1127_v48  ;;  %v954_v62 = vrot.slane %v2394_v40, %v2351_v44 }
 0x14e   : > { %v1296_v0 = vrot.slane %v1295_v52, 1  ;;  %v1310_v18 = vrot.slane %v1309_v53, 1  ;;  %vm1468_vm2 = vcmask 1047559   ;;  %v1144_v23 = vsel %vm1112_vm1, %v1096_v38, %v1128_v55 }
 0x14f   : > { %v1175_v47 = vcombine.high %v1143_v15, %v1143_v15  ;;  %v1290_v3 = vmax.f32 %v1288_v42, %v1289_v57  ;;  %v2547_v2 = vmax.f32 %v1302_v49, %v1303_v58  ;;  %v1176_v7 = vcombine.high %v1144_v23, %v1144_v23 }
 0x150   : > { %v1312_v32 = vsel %vm1199_vm0, %v1143_v15, -inf  ;;  %v2550_v12 = vmax.f32 %v1295_v52, %v1296_v0  ;;  %v2552_v14 = vmax.f32 %v1309_v53, %v1310_v18  ;;  %v1326_v17 = vsel %vm1199_vm0, %v1144_v23, -inf }
 0x151   : > { %v1313_v5 = vrot.slane %v1312_v32, 4  ;;  %v1319_v13 = vsel %vm1199_vm0, %v1175_v47, -inf  ;;  %v2557_v4 = vsel %vm1466_vm14, %v1290_v3, %v2514_v63  ;;  %v1333_v19 = vsel %vm1199_vm0, %v1176_v7, -inf }
 0x152   : > { %v1320_v16 = vrot.slane %v1319_v13, 4  ;;  %v1926_v21 = vpack.c.bf16 %v2550_v12, %v1290_v3  ;;  %v1927_v10 = vpack.c.bf16 %v2552_v14, %v2547_v2  ;;  %v1327_v24 = vrot.slane %v1326_v17, 4 }
 0x153   : > { %v1314_v20 = vmax.f32 %v1312_v32, %v1313_v5  ;;  %v1334_v61 = vrot.slane %v1333_v19, 4  ;;  %v958_v25 = vrot.slane %v2394_v40, %v2353_v45  ;;  %v962_v63 = vrot.slane %v869_v51, %v2351_v44 }
 0x154   : > { %v1321_v56 = vmax.f32 %v1319_v13, %v1320_v16  ;;  %v1623_v29 = vunpack.c.l.b16 %v1926_v21  ;;  %v1624_v30 = vunpack.c.h.b16 %v1926_v21  ;;  %v1625_v59 = vunpack.c.l.b16 %v1927_v10 }
 0x155   : > { %v1626_v35 = vunpack.c.h.b16 %v1927_v10  ;;  %v1315_v28 = vrot.slane %v1314_v20, 2  ;;  %v1328_v33 = vmax.f32 %v1326_v17, %v1327_v24  ;;  %v1335_v60 = vmax.f32 %v1333_v19, %v1334_v61 }
 0x156   : > { %v1322_v43 = vrot.slane %v1321_v56, 2  ;;  %v1648_v22 = vsel %vm1466_vm14, %v1623_v29, %v2531_v26  ;;  %v1655_v37 = vsel %vm1466_vm14, %v1624_v30, %v2534_v27  ;;  %v966_v38 = vrot.slane %v869_v51, %v2353_v45 }
 0x157   : > { %v1009_v40 = vcombine.low %v954_v62, %v958_v25  ;;  %v1649_v42 = vsel %vm1468_vm2, %v1625_v59, %v1648_v22  ;;  %v1656_v49 = vsel %vm1468_vm2, %v1626_v35, %v1655_v37  ;;  %v1316_v48 = vmax.f32 %v1314_v20, %v1315_v28 }
 0x158   : > { %v1323_v52 = vmax.f32 %v1321_v56, %v1322_v43  ;;  %v1671_v53 = vpack.c.b16 %v1656_v49, %v1649_v42  ;;  %v1329_v26 = vrot.slane %v1328_v33, 2  ;;  %v1336_v55 = vrot.slane %v1335_v60, 2 }
 0x159   : > { %v1010_v57 = vcombine.low %v962_v63, %v966_v38  ;;  %v1317_v27 = vrot.slane %v1316_v48, 1  ;;  %v1041_v51 = vadd.f32 %v1009_v40, %v745_v46  ;;  %v747_v15 = vcombine.low %v2435_v34, %v2439_v41 }
 0x15a   : > { %v1324_v58 = vrot.slane %v1323_v52, 1  ;;  %v1330_v62 = vmax.f32 %v1328_v33, %v1329_v26  ;;  %v1337_v0 = vmax.f32 %v1335_v60, %v1336_v55  ;;  %v748_v23 = vcombine.high %v2435_v34, %v2439_v41  ;;  %1675 = vst [vmem:[%s2578_s21] sm:$0xff] %v1671_v53 }
 0x15b   : > { %v1042_v18 = vadd.f32 %v1010_v57, %v746_v36  ;;  %v1318_v47 = vmax.f32 %v1316_v48, %v1317_v27  ;;  %v1069_v7 = vmul.f32 %v2362_v9, %v1041_v51  ;;  %v970_v46 = vrot.slane %v2382_v31, %v2351_v44 }
 0x15c   : > { %v1325_v3 = vmax.f32 %v1323_v52, %v1324_v58  ;;  %v1331_v32 = vrot.slane %v1330_v62, 1  ;;  %v1338_v5 = vrot.slane %v1337_v0, 1  ;;  %v974_v16 = vrot.slane %v2382_v31, %v2353_v45 }
 0x15d   : > { %v1070_v13 = vmul.f32 %v2362_v9, %v1042_v18  ;;  %v1097_v6 = vadd.f32 %v2364_v11, %v1069_v7  ;;  %v978_v34 = vrot.slane %v2390_v39, %v2351_v44  ;;  %v982_v41 = vrot.slane %v2390_v39, %v2353_v45 }
 0x15e   : > { %v1928_v1 = vpack.c.bf16 %v1325_v3, %v1318_v47  ;;  %v1332_v36 = vmax.f32 %v1330_v62, %v1331_v32  ;;  %v1339_v17 = vmax.f32 %v1337_v0, %v1338_v5  ;;  %v1011_v21 = vcombine.low %v970_v46, %v974_v16 }
 0x15f   : > { %v1098_v19 = vadd.f32 %v2364_v11, %v1070_v13  ;;  %vm1113_vm3 = vcmp.gt.f32.partialorder %v1097_v6, 0.0  ;;  %v1129_v24 = vmul.f32 0.2, %v1097_v6  ;;  %v1012_v30 = vcombine.low %v978_v34, %v982_v41 }
 0x160   : > { %v1627_v10 = vunpack.c.l.b16 %v1928_v1  ;;  %v1628_v20 = vunpack.c.h.b16 %v1928_v1  ;;  %v2604_v56 = vsel %vm1456_vm5, %v1332_v36, %v1318_v47  ;;  %v2607_v61 = vsel %vm1456_vm5, %v1339_v17, %v1325_v3 }
 0x161   : > { %v1929_v25 = vpack.c.bf16 %v1339_v17, %v1332_v36  ;;  %vm1114_vm4 = vcmp.gt.f32.partialorder %v1098_v19, 0.0  ;;  %v1130_v63 = vmul.f32 0.2, %v1098_v19  ;;  %v1145_v29 = vsel %vm1113_vm3, %v1097_v6, %v1129_v24 }
 0x162   : > { %v1043_v59 = vadd.f32 %v1011_v21, %v747_v15  ;;  %v1177_v43 = vcombine.high %v1145_v29, %v1145_v29  ;;  %v1340_v33 = vsel %vm1199_vm0, %v1145_v29, -inf  ;;  %v1044_v37 = vadd.f32 %v1012_v30, %v748_v23 }
 0x163   : > { %v1629_v35 = vunpack.c.l.b16 %v1929_v25  ;;  %v1630_v28 = vunpack.c.h.b16 %v1929_v25  ;;  %v1146_v60 = vsel %vm1114_vm4, %v1098_v19, %v1130_v63  ;;  %v1341_v22 = vrot.slane %v1340_v33, 4 }
 0x164   : > { %v1071_v38 = vmul.f32 %v2362_v9, %v1043_v59  ;;  %v1178_v49 = vcombine.high %v1146_v60, %v1146_v60  ;;  %v1347_v48 = vsel %vm1199_vm0, %v1177_v43, -inf  ;;  %v1354_v26 = vsel %vm1199_vm0, %v1146_v60, -inf }
 0x165   : > { %v2612_v40 = vsel %vm1456_vm5, %v1629_v35, %v1627_v10  ;;  %v2615_v42 = vsel %vm1456_vm5, %v1630_v28, %v1628_v20  ;;  %v1342_v52 = vmax.f32 %v1340_v33, %v1341_v22  ;;  %v1348_v53 = vrot.slane %v1347_v48, 4 }
 0x166   : > { %v1072_v55 = vmul.f32 %v2362_v9, %v1044_v37  ;;  %v1355_v57 = vrot.slane %v1354_v26, 4  ;;  %v1361_v27 = vsel %vm1199_vm0, %v1178_v49, -inf  ;;  %v1099_v58 = vadd.f32 %v2364_v11, %v1071_v38 }
 0x167   : > { %v749_v51 = vcombine.low %v2441_v50, %v2446_v54  ;;  %v1343_v15 = vrot.slane %v1342_v52, 2  ;;  %v1349_v62 = vmax.f32 %v1347_v48, %v1348_v53  ;;  %v1362_v0 = vrot.slane %v1361_v27, 4 }
 0x168   : > { %v1100_v18 = vadd.f32 %v2364_v11, %v1072_v55  ;;  %v1356_v23 = vmax.f32 %v1354_v26, %v1355_v57  ;;  %vm1115_vm5 = vcmp.gt.f32.partialorder %v1099_v58, 0.0  ;;  %v1131_v47 = vmul.f32 0.2, %v1099_v58 }
 0x169   : > { %v750_v3 = vcombine.high %v2441_v50, %v2446_v54  ;;  %v1344_v7 = vmax.f32 %v1342_v52, %v1343_v15  ;;  %v1350_v46 = vrot.slane %v1349_v62, 2  ;;  %v1363_v32 = vmax.f32 %v1361_v27, %v1362_v0 }
 0x16a   : > { %vm1116_vm8 = vcmp.gt.f32.partialorder %v1100_v18, 0.0  ;;  %v1357_v5 = vrot.slane %v1356_v23, 2  ;;  %v1132_v13 = vmul.f32 0.2, %v1100_v18  ;;  %v1147_v16 = vsel %vm1115_vm5, %v1099_v58, %v1131_v47 }
 0x16b   : > { %v868_v1 = vcombine.high %v2382_v31, %v2382_v31  ;;  %v1345_v6 = vrot.slane %v1344_v7, 1  ;;  %v1351_v34 = vmax.f32 %v1349_v62, %v1350_v46  ;;  %v1364_v41 = vrot.slane %v1363_v32, 2 }
 0x16c   : > { %v1179_v36 = vcombine.high %v1147_v16, %v1147_v16  ;;  %v1358_v17 = vmax.f32 %v1356_v23, %v1357_v5  ;;  %v1148_v19 = vsel %vm1116_vm8, %v1100_v18, %v1132_v13  ;;  %v1368_v21 = vsel %vm1199_vm0, %v1147_v16, -inf }
 0x16d   : > { %v870_v10 = vcombine.high %v2390_v39, %v2390_v39  ;;  %v1346_v20 = vmax.f32 %v1344_v7, %v1345_v6  ;;  %v1352_v24 = vrot.slane %v1351_v34, 1  ;;  %v1365_v25 = vmax.f32 %v1363_v32, %v1364_v41 }
 0x16e   : > { %v1180_v63 = vcombine.high %v1148_v19, %v1148_v19  ;;  %v1359_v29 = vrot.slane %v1358_v17, 1  ;;  %v1369_v30 = vrot.slane %v1368_v21, 4  ;;  %v1375_v31 = vsel %vm1199_vm0, %v1179_v36, -inf }
 0x16f   : > { %v1382_v59 = vsel %vm1199_vm0, %v1148_v19, -inf  ;;  %v1353_v35 = vmax.f32 %v1351_v34, %v1352_v24  ;;  %v1366_v28 = vrot.slane %v1365_v25, 1  ;;  %v1478_v43 = vsel %vm1458_vm6, %v1346_v20, %v2604_v56 }
 0x170   : > { %v1376_v33 = vrot.slane %v1375_v31, 4  ;;  %v1360_v60 = vmax.f32 %v1358_v17, %v1359_v29  ;;  %v1370_v22 = vmax.f32 %v1368_v21, %v1369_v30  ;;  %v1383_v39 = vrot.slane %v1382_v59, 4 }
 0x171   : > { %v1389_v37 = vsel %vm1199_vm0, %v1180_v63, -inf  ;;  %v1367_v38 = vmax.f32 %v1365_v25, %v1366_v28  ;;  %v1485_v49 = vsel %vm1458_vm6, %v1353_v35, %v2607_v61  ;;  %v1930_v48 = vpack.c.bf16 %v1353_v35, %v1346_v20 }
 0x172   : > { %v1377_v52 = vmax.f32 %v1375_v31, %v1376_v33  ;;  %v1479_v53 = vsel %vm1460_vm7, %v1360_v60, %v1478_v43  ;;  %v1371_v26 = vrot.slane %v1370_v22, 2  ;;  %v1384_v55 = vmax.f32 %v1382_v59, %v1383_v39 }
 0x173   : > { %v1390_v57 = vrot.slane %v1389_v37, 4  ;;  %v1486_v56 = vsel %vm1460_vm7, %v1367_v38, %v1485_v49  ;;  %v1931_v27 = vpack.c.bf16 %v1367_v38, %v1360_v60  ;;  %v1631_v58 = vunpack.c.l.b16 %v1930_v48 }
 0x174   : > { %v1632_v15 = vunpack.c.h.b16 %v1930_v48  ;;  %v1372_v62 = vmax.f32 %v1370_v22, %v1371_v26  ;;  %v1378_v0 = vrot.slane %v1377_v52, 2  ;;  %v1385_v18 = vrot.slane %v1384_v55, 2 }
 0x175   : > { %v1391_v23 = vmax.f32 %v1389_v37, %v1390_v57  ;;  %v1633_v61 = vunpack.c.l.b16 %v1931_v27  ;;  %v1634_v47 = vunpack.c.h.b16 %v1931_v27  ;;  %v1658_v7 = vsel %vm1458_vm6, %v1631_v58, %v2612_v40 }
 0x176   : > { %v1665_v46 = vsel %vm1458_vm6, %v1632_v15, %v2615_v42  ;;  %v1373_v32 = vrot.slane %v1372_v62, 1  ;;  %v1379_v5 = vmax.f32 %v1377_v52, %v1378_v0  ;;  %v1386_v13 = vmax.f32 %v1384_v55, %v1385_v18 }
 0x177   : > { %v1392_v16 = vrot.slane %v1391_v23, 2  ;;  %v1659_v6 = vsel %vm1460_vm7, %v1633_v61, %v1658_v7  ;;  %v1666_v34 = vsel %vm1460_vm7, %v1634_v47, %v1665_v46  ;;  %v986_v41 = vrot.slane %v868_v1, %v2351_v44 }
 0x178   : > { %v990_v36 = vrot.slane %v868_v1, %v2353_v45  ;;  %v1374_v17 = vmax.f32 %v1372_v62, %v1373_v32  ;;  %v1380_v19 = vrot.slane %v1379_v5, 1  ;;  %v1387_v21 = vrot.slane %v1386_v13, 1 }
 0x179   : > { %v1393_v20 = vmax.f32 %v1391_v23, %v1392_v16  ;;  %v994_v40 = vrot.slane %v870_v10, %v2351_v44  ;;  %v998_v42 = vrot.slane %v870_v10, %v2353_v45  ;;  %v1469_v25 = vsel %vm1468_vm2, %v2547_v2, %v2557_v4 }
 0x17a   : > { %v1013_v24 = vcombine.low %v986_v41, %v990_v36  ;;  %v1381_v63 = vmax.f32 %v1379_v5, %v1380_v19  ;;  %v1388_v29 = vmax.f32 %v1386_v13, %v1387_v21  ;;  %v1480_v31 = vsel %vm1462_vm10, %v1374_v17, %v1479_v53  ;;  %1495 = vst [vmem:[%s2658_s18] sm:$0xff] %v1469_v25 }
 0x17b   : > { %v1394_v30 = vrot.slane %v1393_v20, 1  ;;  %v1014_v1 = vcombine.low %v994_v40, %v998_v42  ;;  %v1475_v45 = vsel %vm1466_vm14, %v2550_v12, %v2520_v8 }
 0x17c   : > { %v1045_v44 = vadd.f32 %v1013_v24, %v749_v51  ;;  %v1481_v4 = vsel %vm1464_vm11, %v1388_v29, %v1480_v31  ;;  %v1487_v10 = vsel %vm1462_vm10, %v1381_v63, %v1486_v56  ;;  %v1932_v59 = vpack.c.bf16 %v1381_v63, %v1374_v17 }
 0x17d   : > { %v1395_v2 = vmax.f32 %v1393_v20, %v1394_v30  ;;  %v1046_v35 = vadd.f32 %v1014_v1, %v750_v3  ;;  %v1476_v43 = vsel %vm1468_vm2, %v2552_v14, %v1475_v45 }
 0x17e   : > { %v1073_v28 = vmul.f32 %v2362_v9, %v1045_v44  ;;  %v1635_v60 = vunpack.c.l.b16 %v1932_v59  ;;  %v1636_v8 = vunpack.c.h.b16 %v1932_v59  ;;  %1496 = vst [vmem:[%s2658_s18 + $0x8] sm:$0xff] %v1476_v43 }
 0x17f   : > { %v1488_v51 = vsel %vm1464_vm11, %v1395_v2, %v1487_v10  ;;  %v1933_v33 = vpack.c.bf16 %v1395_v2, %v1388_v29  ;;  %v1074_v12 = vmul.f32 %v2362_v9, %v1046_v35 }
 0x180   : > { %v1101_v22 = vadd.f32 %v2364_v11, %v1073_v28  ;;  %v1660_v50 = vsel %vm1462_vm10, %v1635_v60, %v1659_v6  ;;  %v1667_v54 = vsel %vm1462_vm10, %v1636_v8, %v1666_v34 }
 0x181   : > { %v1637_v39 = vunpack.c.l.b16 %v1933_v33  ;;  %v1638_v37 = vunpack.c.h.b16 %v1933_v33  ;;  %v1102_v3 = vadd.f32 %v2364_v11, %v1074_v12 }
 0x182   : > { %vm1117_vm6 = vcmp.gt.f32.partialorder %v1101_v22, 0.0  ;;  %v1133_v14 = vmul.f32 0.2, %v1101_v22 }
 0x183   : > { %v1661_v38 = vsel %vm1464_vm11, %v1637_v39, %v1660_v50  ;;  %v1668_v49 = vsel %vm1464_vm11, %v1638_v37, %v1667_v54  ;;  %vm1118_vm7 = vcmp.gt.f32.partialorder %v1102_v3, 0.0  ;;  %v1134_v48 = vmul.f32 0.2, %v1102_v3 }
 0x184   : > { %v1149_v52 = vsel %vm1117_vm6, %v1101_v22, %v1133_v14 }
 0x185   : > { %v1181_v9 = vcombine.high %v1149_v52, %v1149_v52  ;;  %v1396_v53 = vsel %vm1199_vm0, %v1149_v52, -inf  ;;  %v1150_v26 = vsel %vm1118_vm7, %v1102_v3, %v1134_v48 }
 0x186   : > { %v1397_v55 = vrot.slane %v1396_v53, 4  ;;  %v1182_v57 = vcombine.high %v1150_v26, %v1150_v26  ;;  %v1410_v27 = vsel %vm1199_vm0, %v1150_v26, -inf }
 0x187   : > { %v1403_v56 = vsel %vm1199_vm0, %v1181_v9, -inf  ;;  %v1411_v15 = vrot.slane %v1410_v27, 4 }
 0x188   : > { %v1398_v11 = vmax.f32 %v1396_v53, %v1397_v55  ;;  %v1404_v58 = vrot.slane %v1403_v56, 4  ;;  %v1417_v62 = vsel %vm1199_vm0, %v1182_v57, -inf }
 0x189   : > { %v1412_v23 = vmax.f32 %v1410_v27, %v1411_v15  ;;  %v1418_v61 = vrot.slane %v1417_v62, 4 }
 0x18a   : > { %v1399_v0 = vrot.slane %v1398_v11, 2  ;;  %v1405_v18 = vmax.f32 %v1403_v56, %v1404_v58 }
 0x18b   : > { %v1413_v46 = vrot.slane %v1412_v23, 2  ;;  %v1419_v32 = vmax.f32 %v1417_v62, %v1418_v61 }
 0x18c   : > { %v1400_v47 = vmax.f32 %v1398_v11, %v1399_v0  ;;  %v1406_v7 = vrot.slane %v1405_v18, 2 }
 0x18d   : > { %v1414_v16 = vmax.f32 %v1412_v23, %v1413_v46  ;;  %v1420_v6 = vrot.slane %v1419_v32, 2 }
 0x18e   : > { %v1401_v5 = vrot.slane %v1400_v47, 1  ;;  %v1407_v13 = vmax.f32 %v1405_v18, %v1406_v7 }
 0x18f   : > { %v1415_v36 = vrot.slane %v1414_v16, 1  ;;  %v1421_v17 = vmax.f32 %v1419_v32, %v1420_v6 }
 0x190   : > { %v1402_v34 = vmax.f32 %v1400_v47, %v1401_v5  ;;  %v1408_v41 = vrot.slane %v1407_v13, 1 }
 0x191   : > { %v1416_v21 = vmax.f32 %v1414_v16, %v1415_v36  ;;  %v1422_v20 = vrot.slane %v1421_v17, 1 }
 0x192   : > { %v1409_v19 = vmax.f32 %v1407_v13, %v1408_v41  ;;  %v1482_v40 = vsel %vm1466_vm14, %v1402_v34, %v1481_v4 }
 0x193   : > { %v1423_v42 = vmax.f32 %v1421_v17, %v1422_v20  ;;  %v1483_v25 = vsel %vm1468_vm2, %v1416_v21, %v1482_v40 }
 0x194   : > { %v1934_v24 = vpack.c.bf16 %v1409_v19, %v1402_v34  ;;  %v1489_v63 = vsel %vm1466_vm14, %v1409_v19, %v1488_v51  ;;  %1497 = vst [vmem:[%s2658_s18 + $0x10] sm:$0xff] %v1483_v25 }
 0x195   : > { %v1935_v29 = vpack.c.bf16 %v1423_v42, %v1416_v21  ;;  %v1490_v1 = vsel %vm1468_vm2, %v1423_v42, %v1489_v63 }
 0x196   : > { %v1639_v30 = vunpack.c.l.b16 %v1934_v24  ;;  %v1640_v31 = vunpack.c.h.b16 %v1934_v24  ;;  %1498 = vst [vmem:[%s2658_s18 + $0x18] sm:$0xff] %v1490_v1 }
 0x197   : > { %v1641_v44 = vunpack.c.l.b16 %v1935_v29  ;;  %v1642_v45 = vunpack.c.h.b16 %v1935_v29 }
 0x198   : > { %v1662_v2 = vsel %vm1466_vm14, %v1639_v30, %v1661_v38  ;;  %v1669_v4 = vsel %vm1466_vm14, %v1640_v31, %v1668_v49 }
 0x199   : > { %2062 = shalt.err (!%p2059_p5)
}
 0x19a   : > { %s2063_s8 = scalar_lea.hbm %s2696_s30, 512  ;;  %s2067_s9 = scalar_lea.hbm %s2762_s6, 1024 }
 0x19b   : > { %p2064_p6 = scmp.ne.s32.totalorder %s2696_s30, %s2063_s8  ;;  %p2068_p10 = scmp.lt.u32.totalorder %s2696_s30, %s2762_s6 }
 0x19c   : > { %p2069_p11 = scmp.lt.u32.totalorder %s2067_s9, %s2063_s8  ;;  %p2071_p13 = scmp.lt.u32.totalorder %s2063_s8, %s2696_s30 }
 0x19d   : > { %p2065_p7 = pnand %p2064_p6, %p2214_p4 }
 0x19e   : > { %p2070_p12 = por %p2069_p11, %p2068_p10 }
 0x19f   : > { %p2066_p9 = pneg %p2065_p7 }
 0x1a0   : > { %p2072_p0 = por %p2071_p13, %p2070_p12 }
 0x1a2   : > { %p2073_p1 = pnand %p2072_p0, %p2066_p9 }
 0x1a4   : > { %2076 = shalt.err (!%p2073_p1)
}
 0x1a5   : > { %s2132_s20 = smov 256   ;;  %s2133_s23 = smov 16   ;;  %v1663_v10 = vsel %vm1468_vm2, %v1641_v44, %v1662_v2  ;;  %v1670_v59 = vsel %vm1468_vm2, %v1642_v45, %v1669_v4 }
 0x1a6   : > { %1937 = dma.vmem_to_hbm [thread:$0]  (%p2214_p4), %s2698_s22, 512, %s2696_s30, %s2707_s27, %s2132_s20, %s2132_s20, %s2133_s23   ;;  %v1672_v35 = vpack.c.b16 %v1670_v59, %v1663_v10 }
 0x1a8   : > { %1676 = vst [vmem:[%s2578_s21 + $0x8] sm:$0xff] %v1672_v35 }
 0x1a9 PF: > { %p1943_p2 = scmp.ge.s32.totalorder %s2127_s29, 2  ;;  %s1723_s10 = sand.u32 1, %s2107_s24  }
 0x1aa   : > { %s1724_s12 = scalar_lea.sflag [#allocation3], %s1723_s10 }
 0x1ab   : > { %p1940_p3 = pnand %p1943_p2, %p2221_p8 }
 0x1ad   : > { %2102 = dma.done.wait (!%p1940_p3), %s1724_s12, 512  }
 0x1ae   : > { %2104 = vsyncadd (!%p1940_p3), %s1724_s12, 4294966784  ;;  %s21_s29 = sadd.s32 1, %s2127_s29   ;;  %s2770_s27 = sld [smem:[#allocation5_spill]] }
 0x1af   : > { %p18_p4 = scmp.ge.s32.totalorder %s21_s29, 4   ;;  %s2771_s28 = sld [smem:[#allocation6_spill]] }
 0x1b0   : > { %s2772_s24 = smov %s2111_s25  ;;  %s2773_s25 = smov %s2115_s26 }
 0x1b1   : > { %s2774_s26 = smov %s2227_s14  ;;  %20 = sbr.rel (!%p18_p4) target bundleno = 4 (0x4), region = 94 }
 0x1b8   :  { %1742 = vsyncpa [#allocation3], 1 }
 0x1b9   :  { %1744 = vsyncpa [#allocation3 + $0x1], 1 }

// kernel: dgcnn_forward.17
= control target key start
LH: loop header
LB: loop body
LE: loop exit
PB: predicated region body
PF: predicated region fallthrough
CT: control target
= control target key end

     0   :  { %s1879_s0 = inlined_call_operand.vmem [shape: bf16[2,16,64], index: 0, kind: input, shape index: {}]   ;;  %s1880_s1 = inlined_call_operand.vmem [shape: bf16[2,16,64], index: 1, kind: input, shape index: {}]   ;;  %s1881_s2 = inlined_call_operand.vmem [shape: bf16[2,16,128], index: 2, kind: input, shape index: {}]   ;;  %s1882_s3 = inlined_call_operand.vmem [shape: bf16[2,16,256], index: 3, kind: input, shape index: {}]   ;;  %s1883_s4 = inlined_call_operand.vmem [shape: bf16[512,32], index: 4, kind: input, shape index: {}]   ;;  %s1884_s5 = inlined_call_operand.vmem [shape: f32[1,32], index: 5, kind: input, shape index: {}]   ;;  %s1885_s6 = inlined_call_operand.vmem [shape: f32[1,32], index: 6, kind: input, shape index: {}]   ;;  %s1886_s7 = inlined_call_operand.hbm [shape: f32[2,16,32], index: 7, kind: output, shape index: {0}]   ;;  %s1887_s8 = inlined_call_operand.vmem [shape: f32[2,1,32], index: 8, kind: output, shape index: {1}]   ;;  %s1888_s9 = inlined_call_operand.vmem [shape: f32[2,1,32], index: 9, kind: output, shape index: {2}]  }
   0x1   :  { %1891 = sst [smem:[#allocation8_spill]] %s1879_s0 }
   0x2   :  { %15 = vsyncpa [#allocation3], 0 }
   0x3   :  { %17 = vsyncpa [#allocation3 + $0x1], 0  ;;  %s1610_s30 = smov 0   ;;  %s1612_s10 = smov 0  }
   0x4   :  { %s1614_s11 = smov 0   ;;  %s1616_s12 = smov 0  }
   0x5   :  { %s1618_s13 = smov 0   ;;  %s1620_s14 = smov 0  }
   0x6 LB: > { %1892 = sst [smem:[#allocation5_spill]] %s1549_s13  ;;  %s1228_s15 = sadd.s32 4294967295, %s1553_s14   ;;  %s1553_s14 = sphi %s1620_s14, %s23_s14   ;;  %s1549_s13 = sphi %s1618_s13, %s1900_s13   ;;  %s1545_s12 = sphi %s1616_s12, %s1899_s12   ;;  %s1541_s11 = sphi %s1614_s11, %s1903_s11   ;;  %s1537_s10 = sphi %s1612_s10, %s1902_s10   ;;  %s1533_s30 = sphi %s1610_s30, %s1901_s30  }
   0x7   : > { %s1229_s16 = sadd.s32 4294967294, %s1553_s14   ;;  %s35_s17 = sadd.s32 1, %s1549_s13 }
   0x8   : > { %s219_s18 = sadd.s32 1, %s1541_s11  ;;  %p37_p0 = scmp.ge.s32.totalorder %s35_s17, 2 }
   0x9   : > { %p229_p1 = scmp.ne.s32.totalorder %s1541_s11, %s1537_s10  ;;  %p230_p2 = scmp.eq.s32.totalorder %s1228_s15, 1 }
   0xa   : > { %p235_p3 = scmp.ne.s32.totalorder %s1537_s10, %s1533_s30  ;;  %s1905_s17 = smov (%p37_p0, %s35_s17), 0 }
   0xb   : > { %1893 = sst [smem:[#allocation6_spill]] %s1905_s17  ;;  %p1650_p4 = por %p230_p2, %p229_p1 }
   0xc   : > { %p236_p5 = scmp.eq.s32.totalorder %s1229_s16, 1  ;;  %s214_s20 = ssub.s32 %s1549_s13, %s1905_s17 }
   0xd   : > { %p1232_p6 = scmp.ge.s32.totalorder %s1553_s14, 1  ;;  %p217_p7 = scmp.eq.s32.totalorder %s214_s20, 0 }
   0xe   : > { %p1657_p8 = por %p236_p5, %p235_p3  ;;  %p368_p9 = scmp.lt.s32.totalorder %s1553_s14, 3 }
   0xf   : > { %s1663_s22 = scalar_select %p217_p7, %s1541_s11, %s219_s18  }
  0x10   : > { %p369_p10 = pnand %p1232_p6, %p368_p9 }
  0x11   : > { %1896 = sst [smem:[#allocation7_spill]] %s1663_s22  ;;  %v1437_v0 = vld [vmem:[%s1883_s4 + $0x20] sm:$0xff] (!%p369_p10)   ;;  %v1555_v1 = vmov (!%p369_p10), 0.0   ;;  %v1439_v3 = vld [vmem:[%s1883_s4 + $0x28] sm:$0xff] (!%p369_p10)   ;;  %vm1556_vm0 = vmmov (!%p369_p10), 0   ;;  %p443_p11 = scmp.lt.s32.totalorder (!%p369_p10), %s1545_s12, 1 }
  0x12   : > { %372 = sbr.rel (%p369_p10) target bundleno = 330 (0x14a), region = 48  ;;  %1334 = vmatprep.subr.bf16.mxu0 (!%p369_p10), %v1555_v1  ;;  %1346 = vmatprep.subr.bf16.mxu1 (!%p369_p10), %v1555_v1  ;;  %v1438_v2 = vld [vmem:[%s1883_s4] sm:$0xff] (!%p369_p10)   ;;  %v1440_v4 = vld [vmem:[%s1883_s4 + $0x8] sm:$0xff] (!%p369_p10)   ;;  %v1441_v5 = vld [vmem:[%s1883_s4 + $0x30] sm:$0xff] (!%p369_p10)   ;;  %s1897_s0 = sld [smem:[#allocation8_spill]] (!%p369_p10)  ;;  %vm540_vm1 = vcmask (!%p369_p10), 523264  }
  0x13   : > { %1335 = vmatpush3.bf16.msra.mxu0 (!%p369_p10), %v1437_v0  ;;  %1342 = vmatprep.mubr.msk.bf16.mxu0 (!%p369_p10), %vm1556_vm0, %v1555_v1  ;;  %v1442_v6 = vld [vmem:[%s1883_s4 + $0x10] sm:$0xff] (!%p369_p10)   ;;  %v1443_v7 = vld [vmem:[%s1883_s4 + $0x38] sm:$0xff] (!%p369_p10)   ;;  %v1447_v10 = vld [vmem:[%s1883_s4 + $0xc0] sm:$0xff] (!%p369_p10)   ;;  %vm980_vm3 = vcmask (!%p369_p10), 261120   ;;  %s1557_s27 = smov (!%p369_p10), [#allocation2]  }
  0x14   : > { %1347 = vmatpush3.bf16.msra.mxu1 (!%p369_p10), %v1438_v2  ;;  %1336 = vmatprep.subr.bf16.mxu0 (!%p369_p10), %v1555_v1  ;;  %v1444_v8 = vld [vmem:[%s1883_s4 + $0x18] sm:$0xff] (!%p369_p10)   ;;  %v1448_v12 = vld [vmem:[%s1883_s4 + $0x40] sm:$0xff] (!%p369_p10)   ;;  %v1450_v14 = vld [vmem:[%s1883_s4 + $0xc8] sm:$0xff] (!%p369_p10)  }
  0x15   : > { %1348 = vmatprep.subr.bf16.mxu1 (!%p369_p10), %v1555_v1  ;;  %1354 = vmatprep.mubr.msk.bf16.mxu1 (!%p369_p10), %vm1556_vm0, %v1555_v1  ;;  %v1449_v13 = vld [vmem:[%s1883_s4 + $0x80] sm:$0xff] (!%p369_p10)   ;;  %v1451_v15 = vld [vmem:[%s1883_s4 + $0x48] sm:$0xff] (!%p369_p10)   ;;  %v1453_v17 = vld [vmem:[%s1883_s4 + $0xd0] sm:$0xff] (!%p369_p10)  }
  0x16   : > { %v1452_v16 = vld [vmem:[%s1883_s4 + $0x88] sm:$0xff] (!%p369_p10)   ;;  %v1454_v18 = vld [vmem:[%s1883_s4 + $0x50] sm:$0xff] (!%p369_p10)   ;;  %v1456_v20 = vld [vmem:[%s1883_s4 + $0xd8] sm:$0xff] (!%p369_p10)  }
  0x17   : > { %1337 = vmatpush3.bf16.msra.mxu0 (!%p369_p10), %v1439_v3  ;;  %v1455_v19 = vld [vmem:[%s1883_s4 + $0x90] sm:$0xff] (!%p369_p10)   ;;  %v1457_v21 = vld [vmem:[%s1883_s4 + $0x58] sm:$0xff] (!%p369_p10)   ;;  %v1459_v23 = vld [vmem:[%s1883_s4 + $0xe0] sm:$0xff] (!%p369_p10)  }
  0x18   : > { %1349 = vmatpush3.bf16.msra.mxu1 (!%p369_p10), %v1440_v4  ;;  %1338 = vmatprep.subr.bf16.mxu0 (!%p369_p10), %v1555_v1  ;;  %v1458_v22 = vld [vmem:[%s1883_s4 + $0x98] sm:$0xff] (!%p369_p10)   ;;  %v1460_v24 = vld [vmem:[%s1883_s4 + $0x60] sm:$0xff] (!%p369_p10)   ;;  %v1462_v26 = vld [vmem:[%s1883_s4 + $0xe8] sm:$0xff] (!%p369_p10)  }
  0x19   : > { %s1687_s16 = scalar_select %p443_p11, %s1545_s12, 1  ;;  %1350 = vmatprep.subr.bf16.mxu1 %v1555_v1  ;;  %v1461_v25 = vld [vmem:[%s1883_s4 + $0xa0] sm:$0xff]   ;;  %v1463_v27 = vld [vmem:[%s1883_s4 + $0x68] sm:$0xff]   ;;  %v1465_v30 = vld [vmem:[%s1883_s4 + $0xf0] sm:$0xff]  }
  0x1a   : > { %v1464_v28 = vld [vmem:[%s1883_s4 + $0xa8] sm:$0xff]   ;;  %v1466_v31 = vld [vmem:[%s1883_s4 + $0x70] sm:$0xff]   ;;  %v1468_v33 = vld [vmem:[%s1883_s4 + $0xf8] sm:$0xff]  }
  0x1b   : > { %s1693_s23 = sshll.u32 %s1687_s16, 3  ;;  %1339 = vmatpush3.bf16.msra.mxu0 %v1441_v5  ;;  %s1291_s17 = sshll.u32 %s1687_s16, 4  ;;  %v1467_v32 = vld [vmem:[%s1883_s4 + $0xb0] sm:$0xff]   ;;  %v1469_v34 = vld [vmem:[%s1883_s4 + $0x78] sm:$0xff]   ;;  %v1281_v58 = vld [vmem:[%s1884_s5] ss:$0 sm:$0xff] }
  0x1c   : > { %s460_s28 = scalar_lea.vmem %s1880_s1, %s1693_s23  ;;  %s450_s18 = scalar_lea.vmem %s1897_s0, %s1693_s23  ;;  %1351 = vmatpush3.bf16.msra.mxu1 %v1442_v6  ;;  %1340 = vmatprep.subr.bf16.mxu0 %v1555_v1  ;;  %v1470_v35 = vld [vmem:[%s1883_s4 + $0xb8] sm:$0xff]   ;;  %v1282_v62 = vld [vmem:[%s1885_s6] ss:$0 sm:$0xff] }
  0x1d   : > { %v1445_v9 = vld [vmem:[%s460_s28] sm:$0xff]   ;;  %1352 = vmatprep.subr.bf16.mxu1 %v1555_v1  ;;  %s481_s20 = scalar_lea.vmem %s1882_s3, %s1291_s17  ;;  %s470_s0 = scalar_lea.vmem %s1881_s2, %s1693_s23 }
  0x1e   : > { %v1446_v11 = vld [vmem:[%s450_s18] sm:$0xff]   ;;  %s1292_s18 = sshll.u32 %s1545_s12, 8 }
  0x1f   : > { %1341 = vmatpush3.bf16.msra.mxu0 %v1443_v7  ;;  %v1473_v29 = vld [vmem:[%s481_s20 + $0x4] ss:$8 sps:$4 sm:$0xff]   ;;  %v1471_v37 = vld [vmem:[%s481_s20] ss:$8 sps:$4 sm:$0xff]   ;;  %s1819_s13 = scalar_lea.hbm %s1886_s7, %s1292_s18  ;;  %s1479_s20 = sshll.u32 %s1557_s27, 4  ;;  %s1480_s20 = int_to_ptr.vmem [resolvable:$false] %s1479_s20 }
  0x20   : > { %1353 = vmatpush3.bf16.msra.mxu1 %v1444_v8  ;;  %1358 = vmatprep.subr.bf16.mxu0 %v1555_v1  ;;  %v1474_v36 = vld [vmem:[%s470_s0] sm:$0xff]   ;;  %s429_s0 = sand.u32 1, %s1537_s10   ;;  %s1481_s28 = scalar_lea.vmem %s1480_s20, 512 }
  0x21   : > { %1312 = vmatprep.subr.bf16.mxu1 %v1447_v10  ;;  %s1233_s15 = sshll.u32 %s429_s0, 4  ;;  %s1825_s12 = scalar_lea.sflag [#allocation3], %s429_s0 }
  0x22   : > { %1343 = vmatmul.mubr.msk.bf16.vlgmr.msra.gmra.mrb[0].mxu0 %vm540_vm1, %v1445_v9  ;;  %s431_s23 = scalar_lea.vmem [#allocation2], %s1233_s15 }
  0x23   : > { %1355 = vmatmul.mubr.msk.bf16.vlgmr.msra.gmra.mrb[0].mxu1 %vm540_vm1, %v1446_v11  ;;  %1359 = vmatpush3.bf16.msra.mxu0 %v1448_v12  ;;  %s1048_s24 = sshll.u32 %s431_s23, 4  ;;  %s1821_s24 = int_to_ptr.vmem [resolvable:$true] %s1048_s24 }
  0x24   : > { %1313 = vmatpush3.bf16.msra.mxu1 %v1449_v13  ;;  %1360 = vmatprep.subr.bf16.mxu0 %v1555_v1  ;;  %s1475_s22 = scalar_lea.vmem %s1821_s24, 256  ;;  %p1482_p1 = scmp.lt.s32.totalorder %s1821_s24, %s1480_s20 }
  0x25   : > { %1314 = vmatprep.subr.bf16.mxu1 %v1450_v14  ;;  %1374 = vmatprep.mubr.msk.bf16.mxu0 %vm1556_vm0, %v1555_v1  ;;  %p1476_p12 = scmp.ne.s32.totalorder %s1821_s24, %s1475_s22  ;;  %p1483_p2 = scmp.lt.s32.totalorder %s1481_s28, %s1475_s22 }
  0x26   : > { %945 = vmatprep.mubr.bf16.mxu1 %v1473_v29 }
  0x27   : > { %1361 = vmatpush3.bf16.msra.mxu0 %v1451_v15  ;;  %p1477_p13 = pnand %p1476_p12, %p1650_p4  ;;  %p1484_p3 = por %p1483_p2, %p1482_p1 }
  0x28   : > { %1315 = vmatpush3.bf16.msra.mxu1 %v1452_v16  ;;  %1362 = vmatprep.subr.bf16.mxu0 %v1555_v1 }
  0x29   : > { %1316 = vmatprep.subr.bf16.mxu1 %v1453_v17  ;;  %p1478_p0 = pneg %p1477_p13 }
  0x2b   : > { %1363 = vmatpush3.bf16.msra.mxu0 %v1454_v18  ;;  %p1485_p5 = pnand %p1484_p3, %p1478_p0 }
  0x2c   : > { %1317 = vmatpush3.bf16.msra.mxu1 %v1455_v19  ;;  %1364 = vmatprep.subr.bf16.mxu0 %v1555_v1 }
  0x2d   : > { %1318 = vmatprep.subr.bf16.mxu1 %v1456_v20 }
  0x2f   : > { %1365 = vmatpush3.bf16.msra.mxu0 %v1457_v21 }
  0x30   : > { %1319 = vmatpush3.bf16.msra.mxu1 %v1458_v22  ;;  %1366 = vmatprep.subr.bf16.mxu0 %v1555_v1 }
  0x31   : > { %1320 = vmatprep.subr.bf16.mxu1 %v1459_v23 }
  0x33   : > { %1367 = vmatpush3.bf16.msra.mxu0 %v1460_v24 }
  0x34   : > { %1321 = vmatpush3.bf16.msra.mxu1 %v1461_v25  ;;  %1368 = vmatprep.subr.bf16.mxu0 %v1555_v1 }
  0x35   : > { %1322 = vmatprep.subr.bf16.mxu1 %v1462_v26 }
  0x37   : > { %1369 = vmatpush3.bf16.msra.mxu0 %v1463_v27 }
  0x38   : > { %1323 = vmatpush3.bf16.msra.mxu1 %v1464_v28  ;;  %1370 = vmatprep.subr.bf16.mxu0 %v1555_v1 }
  0x39   : > { %1324 = vmatprep.subr.bf16.mxu1 %v1465_v30 }
  0x3b   : > { %1371 = vmatpush3.bf16.msra.mxu0 %v1466_v31 }
  0x3c   : > { %1325 = vmatpush3.bf16.msra.mxu1 %v1467_v32  ;;  %1372 = vmatprep.subr.bf16.mxu0 %v1555_v1 }
  0x3d   : > { %1326 = vmatprep.subr.bf16.mxu1 %v1468_v33 }
  0x3f   : > { %1373 = vmatpush3.bf16.msra.mxu0 %v1469_v34 }
  0x40   : > { %1327 = vmatpush3.bf16.msra.mxu1 %v1470_v35 }
  0x42   : > { %1375 = vmatmul.mubr.bf16.vlgmr.msra.gmra.mrb[4].mxu0 %v1474_v36 }
  0x43   : > { %946 = vmatmul.mubr.bf16.vlgmr.msra.gmra.mrb[4].mxu1 %v1471_v37 }
  0xf5   : > { %v578_v38 = vpop.f32.mrb[0].mxu0 }
  0xf6   : > { %v651_v39 = vpop.f32.mrb[0].mxu1  ;;  %v1344_v40 = vpop.f32.mrb[1].mxu0 }
  0xf7   : > { %v652_v41 = vadd.f32 %v651_v39, %v578_v38  ;;  %v1356_v42 = vpop.f32.mrb[1].mxu1  ;;  %v581_v43 = vpop.f32.mrb[2].mxu0 }
  0xf8   : > { %v654_v44 = vpop.f32.mrb[2].mxu1  ;;  %v1345_v45 = vpop.f32.mrb[3].mxu0 }
  0xf9   : > { %v655_v46 = vadd.f32 %v654_v44, %v581_v43  ;;  %v1357_v47 = vpop.f32.mrb[3].mxu1 }
 0x115   : > { %v764_v48 = vpop.f32.mrb[4].mxu0 }
 0x116   : > { %v771_v49 = vadd.f32 %v764_v48, %v652_v41  ;;  %v1328_v50 = vpop.f32.mrb[4].mxu1  ;;  %v1376_v51 = vpop.f32.mrb[5].mxu0 }
 0x117   : > { %v1329_v52 = vpop.f32.mrb[5].mxu1  ;;  %v767_v53 = vpop.f32.mrb[6].mxu0 }
 0x118   : > { %v1330_v54 = vadd.f32 %v1329_v52, %v1328_v50  ;;  %v772_v55 = vadd.f32 %v767_v53, %v655_v46  ;;  %v1331_v56 = vpop.f32.mrb[6].mxu1  ;;  %v1377_v57 = vpop.f32.mrb[7].mxu0 }
 0x119   : > { %v1332_v59 = vpop.f32.mrb[7].mxu1 }
 0x11a   : > { %v954_v60 = vadd.f32 %v1330_v54, %v771_v49  ;;  %v1333_v61 = vadd.f32 %v1332_v59, %v1331_v56 }
 0x11c   : > { %v963_v63 = vmul.f32 %v1281_v58, %v954_v60  ;;  %v955_v0 = vadd.f32 %v1333_v61, %v772_v55 }
 0x11e   : > { %v972_v1 = vadd.f32 %v1282_v62, %v963_v63  ;;  %v964_v2 = vmul.f32 %v1281_v58, %v955_v0 }
 0x120   : > { %vm974_vm2 = vcmp.gt.f32.partialorder %v972_v1, 0.0  ;;  %v976_v3 = vmul.f32 0.2, %v972_v1  ;;  %v973_v4 = vadd.f32 %v1282_v62, %v964_v2 }
 0x122   : > { %v978_v5 = vsel %vm974_vm2, %v972_v1, %v976_v3  ;;  %vm975_vm4 = vcmp.gt.f32.partialorder %v973_v4, 0.0  ;;  %v977_v6 = vmul.f32 0.2, %v973_v4 }
 0x123   : > { %981 = vst.msk [vmem:[%s431_s23] sm:$0xff] %vm980_vm3, %v978_v5  ;;  %v983_v8 = vsel %vm980_vm3, %v978_v5, -inf  ;;  %v992_v9 = vsel %vm980_vm3, %v978_v5, 0.0 }
 0x124   : > { %v979_v7 = vsel %vm975_vm4, %v973_v4, %v977_v6 }
 0x125   : > { %v984_v10 = vsel %vm980_vm3, %v979_v7, -inf  ;;  %v993_v11 = vsel %vm980_vm3, %v979_v7, 0.0  ;;  %982 = vst.msk [vmem:[%s431_s23 + $0x8] sm:$0xff] %vm980_vm3, %v979_v7 }
 0x126   : > { %v985_v12 = vmax.f32 %v983_v8, %v984_v10  ;;  %v994_v13 = vadd.f32 %v993_v11, %v992_v9 }
 0x127   : > { %1488 = shalt.err (!%p1485_p5)
}
 0x128   : > { %s1489_s0 = scalar_lea.hbm %s1819_s13, 256  ;;  %s1493_s15 = scalar_lea.hbm %s1886_s7, 512 }
 0x129   : > { %p1490_p6 = scmp.ne.s32.totalorder %s1819_s13, %s1489_s0  ;;  %p1494_p10 = scmp.lt.u32.totalorder %s1819_s13, %s1886_s7 }
 0x12a   : > { %p1495_p11 = scmp.lt.u32.totalorder %s1493_s15, %s1489_s0  ;;  %p1497_p13 = scmp.lt.u32.totalorder %s1489_s0, %s1819_s13 }
 0x12b   : > { %p1491_p7 = pnand %p1490_p6, %p1650_p4 }
 0x12c   : > { %p1496_p12 = por %p1495_p11, %p1494_p10 }
 0x12d   : > { %p1492_p9 = pneg %p1491_p7 }
 0x12e   : > { %p1498_p0 = por %p1497_p13, %p1496_p12 }
 0x130   : > { %p1499_p1 = pnand %p1498_p0, %p1492_p9 }
 0x132   : > { %1502 = shalt.err (!%p1499_p1)
}
 0x133   : > { %s1558_s25 = smov 128   ;;  %s1559_s26 = smov 8   ;;  %v986_v14 = vrot.slane %v985_v12, 4  ;;  %v995_v15 = vrot.slane %v994_v13, 4  ;;  %vm1005_vm5 = vcmask 253952  }
 0x134   : > { %1378 = dma.vmem_to_hbm [thread:$0]  (%p1650_p4), %s1821_s24, 256, %s1819_s13, %s1825_s12, %s1558_s25, %s1558_s25, %s1559_s26  }
 0x135   : > { %v987_v16 = vmax.f32 %v985_v12, %v986_v14  ;;  %v996_v17 = vadd.f32 %v995_v15, %v994_v13  ;;  %s486_s20 = scalar_lea.vmem %s1887_s8, %s1687_s16  ;;  %s489_s17 = scalar_lea.vmem %s1888_s9, %s1687_s16 }
 0x137   : > { %v988_v18 = vrot.slane %v987_v16, 2  ;;  %v997_v19 = vrot.slane %v996_v17, 2 }
 0x139   : > { %v989_v20 = vmax.f32 %v987_v16, %v988_v18  ;;  %v998_v21 = vadd.f32 %v997_v19, %v996_v17 }
 0x13b   : > { %v990_v22 = vrot.slane %v989_v20, 1  ;;  %v999_v23 = vrot.slane %v998_v21, 1 }
 0x13d   : > { %v991_v24 = vmax.f32 %v989_v20, %v990_v22  ;;  %v1000_v25 = vadd.f32 %v999_v23, %v998_v21 }
 0x13f   : > { %1006 = vst.msk [vmem:[%s486_s20] sm:$0x1] %vm1005_vm5, %v991_v24  ;;  %1007 = vst.msk [vmem:[%s489_s17] sm:$0x1] %vm1005_vm5, %v1000_v25 }
 0x146   : > { %v1022_v26 = vld [vmem:[%s489_s17] sm:$0x1] }
 0x147   : > { %v1023_v27 = vmul.f32 0.0625, %v1022_v26 }
 0x149   : > { %1025 = vst.msk [vmem:[%s489_s17] sm:$0x1] %vm1005_vm5, %v1023_v27 }
 0x14a PF: > { %p1384_p4 = scmp.ge.s32.totalorder %s1553_s14, 2  ;;  %s1069_s19 = sand.u32 1, %s1533_s30  }
 0x14b   : > { %s1070_s24 = scalar_lea.sflag [#allocation3], %s1069_s19 }
 0x14c   : > { %p1381_p2 = pnand %p1384_p4, %p1657_p8 }
 0x14e   : > { %1528 = dma.done.wait (!%p1381_p2), %s1070_s24, 256  }
 0x14f   : > { %1530 = vsyncadd (!%p1381_p2), %s1070_s24, 4294967040  ;;  %s23_s14 = sadd.s32 1, %s1553_s14   ;;  %s1898_s16 = sld [smem:[#allocation7_spill]] }
 0x150   : > { %p20_p3 = scmp.ge.s32.totalorder %s23_s14, 4   ;;  %s1899_s12 = sld [smem:[#allocation5_spill]] }
 0x151   : > { %s1900_s13 = sld [smem:[#allocation6_spill]]  ;;  %s1901_s30 = smov %s1537_s10 }
 0x152   : > { %s1902_s10 = smov %s1541_s11  ;;  %22 = sbr.rel (!%p20_p3) target bundleno = 6 (0x6), region = 128 }
 0x155   : > { %s1903_s11 = smov %s1898_s16 }
 0x159   :  { %1087 = vsyncpa [#allocation3], 1 }
 0x15a   :  { %1089 = vsyncpa [#allocation3 + $0x1], 1 }

</bundles_post_ra>
